<compile_context>
chip_gen: v7x
topology: tpu7x:2x2x1
jax: 0.10.0
libtpu: 0.0.40
codegen_flags: <defaults>
</compile_context>

<pallas_src>
import functools

import jax
import jax.numpy as jnp
from jax.experimental import pallas as pl
from jax.experimental.pallas import tpu as pltpu

NEG_SLOPE_GAT = 0.2      # GATConv's internal LeakyReLU slope
NEG_SLOPE_ACT = 0.01     # F.leaky_relu_ / nn.LeakyReLU default slope
BN_EPS = 1e-5
MASK_NEG = -1e30
MXU_DTYPE = jnp.bfloat16  # MXU-native operand dtype (f32 accumulation kept)


def _leaky_relu(x, slope):
    return jnp.where(x >= 0, x, slope * x)


def _round_up(x, m):
    return ((x + m - 1) // m) * m


# ----------------------------------------------------------------------------
# Fused kernel: mask build -> GAT(128->64,h=2)+LReLU -> BN(128)
#               -> GAT(128->64,h=1)+LReLU -> BN(64)
#               -> row gather (one-hot matmul) -> MLP(64->32->16->5)
#               -> (logits, sigmoid(logits))
# ----------------------------------------------------------------------------
def fused_gat_kernel(x_ref, src_ref, dst_ref, idx_ref,
                     w0_ref, att0_ref, b0_ref, g0_ref, be0_ref,
                     w1_ref, att1_ref, b1_ref, g1_ref, be1_ref,
                     mw1_ref, mb1_ref, mw2_ref, mb2_ref, mw3_ref, mb3_ref,
                     h_out_ref, sig_out_ref,
                     h0_ref,
                     *, n_pad, n_valid, e_pad, m_pad):
    f32 = jnp.float32

    # ---- additive attention mask from edge_index (one-hot MXU matmul) -------
    # NOTE: duplicate edges collapse to a single softmax term (same caveat as
    # before; PyG's message-passing GATConv counts parallel edges separately).
    dst_oh = (jax.lax.broadcasted_iota(jnp.int32, (n_pad, e_pad), 0)
              == dst_ref[...]).astype(MXU_DTYPE)                    # [N_i, E]
    src_oh = (src_ref[...]
              == jax.lax.broadcasted_iota(jnp.int32, (e_pad, n_pad), 1)
              ).astype(MXU_DTYPE)                                   # [E, N_j]
    adj = jnp.dot(dst_oh, src_oh, preferred_element_type=f32)       # [N_i, N_j]
    eye = (jax.lax.broadcasted_iota(jnp.int32, (n_pad, n_pad), 0)
           == jax.lax.broadcasted_iota(jnp.int32, (n_pad, n_pad), 1))
    adj = adj + eye.astype(f32)                                     # self-loops
    mask_bias = jnp.where(adj > 0.0, 0.0, MASK_NEG)                 # [N, N]

    ones_col = jnp.ones((n_pad, 1), f32)
    # valid-row mask in ROW orientation -> BN sums become MXU matmuls
    rmask_row = (jax.lax.broadcasted_iota(jnp.int32, (1, n_pad), 1)
                 < n_valid).astype(f32)                             # [1, N]
    inv_n = jnp.float32(1.0 / n_valid)

    def attention(xw_h, a_src, a_dst):
        # e[i, j] = LeakyReLU(a_dst[i] + a_src[j], 0.2): K=2 MXU outer-sum,
        # no sublane->lane transpose of a_src.
        lhs = jnp.concatenate([a_dst, ones_col], axis=1)            # [N, 2]
        rhs = jnp.concatenate([ones_col, a_src], axis=1)            # [N, 2]
        e = jax.lax.dot_general(lhs, rhs, (((1,), (1,)), ((), ())),
                                preferred_element_type=f32)         # [N, N]
        e = _leaky_relu(e, NEG_SLOPE_GAT) + mask_bias
        m = jnp.max(e, axis=-1, keepdims=True)                      # XLU row max
        p = jnp.exp(e - m)                                          # EUP
        denom = jnp.dot(p, ones_col, preferred_element_type=f32)    # MXU sum
        attn = p * pl.reciprocal(denom, approx=True)                # [N, N]
        return jnp.dot(attn.astype(MXU_DTYPE), xw_h.astype(MXU_DTYPE),
                       preferred_element_type=f32)                  # [N, F]

    def batchnorm(h, gamma, beta):
        # training-mode batch stats (biased variance), padded rows excluded
        mean = jnp.dot(rmask_row, h, preferred_element_type=f32) * inv_n
        d = h - mean
        var = jnp.dot(rmask_row, d * d, preferred_element_type=f32) * inv_n
        return d * jax.lax.rsqrt(var + BN_EPS) * gamma + beta

    # ---- conv_0: GATConv(128, 64, heads=2, concat) — one fused projection ---
    xw_all = jnp.dot(x_ref[...].astype(MXU_DTYPE), w0_ref[...].astype(MXU_DTYPE),
                     preferred_element_type=f32)                    # [N, 128]
    a_all = jnp.dot(xw_all, att0_ref[...],
                    preferred_element_type=f32)                     # [N, 4]
    for h in range(2):
        out_h = attention(xw_all[:, 64 * h:64 * (h + 1)],
                          a_all[:, 2 * h:2 * h + 1],                # att_src
                          a_all[:, 2 * h + 1:2 * h + 2])            # att_dst
        h0_ref[:, 64 * h:64 * (h + 1)] = out_h                      # lane-half store
    h0 = _leaky_relu(h0_ref[...] + b0_ref[...], NEG_SLOPE_ACT)
    h0 = batchnorm(h0, g0_ref[...], be0_ref[...])                   # bn_0

    # ---- conv_1: GATConv(128, 64, heads=1) ----------------------------------
    xw1 = jnp.dot(h0.astype(MXU_DTYPE), w1_ref[...].astype(MXU_DTYPE),
                  preferred_element_type=f32)                       # [N, 64]
    a1 = jnp.dot(xw1, att1_ref[...], preferred_element_type=f32)    # [N, 2]
    h1 = attention(xw1, a1[:, 0:1], a1[:, 1:2])
    h1 = _leaky_relu(h1 + b1_ref[...], NEG_SLOPE_ACT)
    h1 = batchnorm(h1, g1_ref[...], be1_ref[...])                   # bn_1

    # ---- in-kernel index_select: one-hot selection matmul (exact, f32) ------
    lane = jax.lax.broadcasted_iota(jnp.int32, (m_pad, n_pad), 1)
    sel = (idx_ref[...] == lane).astype(f32)                        # [M, N]
    hs = jnp.dot(sel, h1, preferred_element_type=f32)               # [M, 64]

    # ---- MLP head: 64 -> 32 -> 16 -> 5 (padded to 128 lanes), + sigmoid -----
    z1 = _leaky_relu(jnp.dot(hs, mw1_ref[...], preferred_element_type=f32)
                     + mb1_ref[...], NEG_SLOPE_ACT)
    z2 = _leaky_relu(jnp.dot(z1, mw2_ref[...], preferred_element_type=f32)
                     + mb2_ref[...], NEG_SLOPE_ACT)
    z3 = jnp.dot(z2, mw3_ref[...], preferred_element_type=f32) + mb3_ref[...]
    h_out_ref[...] = z3                                             # [M, 128] lane-dense
    sig_out_ref[...] = 1.0 / (1.0 + jnp.exp(-z3))


# ----------------------------------------------------------------------------
# Parameter init (deterministic, synthetic — shapes follow the module __init__)
# ----------------------------------------------------------------------------
def _glorot(key, shape):
    fan_in, fan_out = shape[-2], shape[-1]
    lim = jnp.sqrt(6.0 / (fan_in + fan_out))
    return jax.random.uniform(key, shape, jnp.float32, -lim, lim)


def init_params(key):
    ks = iter(jax.random.split(key, 16))
    p = {}
    # conv_0: GATConv(128, 64, heads=2) — heads concatenated on the output dim
    p["w0"] = _glorot(next(ks), (128, 128))
    p["as0"] = _glorot(next(ks), (2, 64))
    p["ad0"] = _glorot(next(ks), (2, 64))
    p["b0"] = jnp.zeros((1, 128), jnp.float32)
    # bn_0: BatchNorm(128)
    p["g0"] = jnp.ones((1, 128), jnp.float32)
    p["be0"] = jnp.zeros((1, 128), jnp.float32)
    # conv_1: GATConv(128, 64, heads=1)
    p["w1"] = _glorot(next(ks), (128, 64))
    p["as1"] = _glorot(next(ks), (1, 64))
    p["ad1"] = _glorot(next(ks), (1, 64))
    p["b1"] = jnp.zeros((1, 64), jnp.float32)
    # bn_1: BatchNorm(64)
    p["g1"] = jnp.ones((1, 64), jnp.float32)
    p["be1"] = jnp.zeros((1, 64), jnp.float32)
    # mlp: Linear(64,32) -> Linear(32,16) -> Linear(16,5)
    p["mw1"] = _glorot(next(ks), (64, 32))
    p["mb1"] = jnp.zeros((1, 32), jnp.float32)
    p["mw2"] = _glorot(next(ks), (32, 16))
    p["mb2"] = jnp.zeros((1, 16), jnp.float32)
    p["mw3"] = _glorot(next(ks), (16, 5))
    p["mb3"] = jnp.zeros((1, 5), jnp.float32)
    return p


# ----------------------------------------------------------------------------
# Forward (matches MyOutGAT.forward) — one fused pallas_call; wrapper glue is
# padding / parameter packing only (static slices, no XLA scatter).
# ----------------------------------------------------------------------------
def my_out_gat_forward(params, x, edge_index, idx, *, n_pad=128):
    n, in_dim = x.shape
    e = edge_index.shape[1]
    m = idx.shape[0]
    assert n <= n_pad and in_dim == 128
    e_pad = max(128, _round_up(e, 128))
    m_pad = max(8, _round_up(m, 8))

    # Node features padded; padded edges use sentinel n_pad (matches no node).
    x_pad = jnp.zeros((n_pad, in_dim), jnp.float32).at[:n, :].set(x)
    src = jnp.full((e_pad,), n_pad, jnp.int32).at[:e].set(edge_index[0].astype(jnp.int32))
    dst = jnp.full((e_pad,), n_pad, jnp.int32).at[:e].set(edge_index[1].astype(jnp.int32))
    src_col = src.reshape(e_pad, 1)          # source nodes (j axis), column layout
    dst_row = dst.reshape(1, e_pad)          # target nodes (i axis), row layout
    idx_col = jnp.zeros((m_pad,), jnp.int32).at[:m].set(idx.astype(jnp.int32)).reshape(m_pad, 1)

    # Block-diagonal [att_src | att_dst] per head -> one [128,4] MXU matmul.
    z64 = jnp.zeros((64,), jnp.float32)
    att0 = jnp.concatenate([
        jnp.stack([params["as0"][0], params["ad0"][0], z64, z64], axis=1),
        jnp.stack([z64, z64, params["as0"][1], params["ad0"][1]], axis=1),
    ], axis=0)                                                       # [128, 4]
    att1 = jnp.stack([params["as1"][0], params["ad1"][0]], axis=1)   # [64, 2]

    # Pad final Linear to 128 output lanes (lane-dense stores; sliced below).
    mw3p = jnp.pad(params["mw3"], ((0, 0), (0, 128 - params["mw3"].shape[1])))
    mb3p = jnp.pad(params["mb3"], ((0, 0), (0, 128 - params["mb3"].shape[1])))

    kernel = functools.partial(fused_gat_kernel, n_pad=n_pad, n_valid=n,
                               e_pad=e_pad, m_pad=m_pad)

    flops = 2 * (n_pad * e_pad * n_pad                  # adjacency one-hot matmul
                 + n_pad * 128 * 128                    # x @ W0 (both heads fused)
                 + 3 * (2 * n_pad * n_pad               # outer-sums (K=2)
                        + n_pad * n_pad                 # softmax denominators
                        + n_pad * n_pad * 64)           # attn @ xW
                 + n_pad * 128 * 64                     # h0 @ W1
                 + 4 * n_pad * 128                      # BN sums
                 + m_pad * n_pad * 64                   # index_select matmul
                 + m_pad * (64 * 32 + 32 * 16 + 16 * 128))
    cost = pl.CostEstimate(
        flops=int(flops),
        transcendentals=int(3 * n_pad * n_pad + m_pad * 128),
        bytes_accessed=int(4 * (n_pad * 128 + 2 * e_pad + m_pad + 128 * 128
                                + 128 * 4 + 128 * 64 + 64 * 2 + 64 * 32
                                + 32 * 16 + 16 * 128 + 6 * 128
                                + 2 * m_pad * 128)))

    vmem = pl.BlockSpec(memory_space=pltpu.MemorySpace.VMEM)
    h_pad_out, sig_pad_out = pl.pallas_call(
        kernel,
        out_shape=(jax.ShapeDtypeStruct((m_pad, 128), jnp.float32),
                   jax.ShapeDtypeStruct((m_pad, 128), jnp.float32)),
        in_specs=[vmem] * 20,
        out_specs=(vmem, vmem),
        scratch_shapes=[pltpu.VMEM((n_pad, 128), jnp.float32)],
        compiler_params=pltpu.CompilerParams(vmem_limit_bytes=32 * 1024 * 1024),
        cost_estimate=cost,
    )(x_pad, src_col, dst_row, idx_col,
      params["w0"], att0, params["b0"], params["g0"], params["be0"],
      params["w1"], att1, params["b1"], params["g1"], params["be1"],
      params["mw1"], params["mb1"], params["mw2"], params["mb2"], mw3p, mb3p)

    # TODO(synk): for many-graph workloads, add a leading batch grid axis
    # (dimension_semantics=("parallel",)) instead of one pallas_call per graph.
    return h_pad_out[:m, :5], sig_pad_out[:m, :5]


if __name__ == "__main__":
    key = jax.random.PRNGKey(0)
    k_x, k_src, k_dst, k_idx, k_par = jax.random.split(key, 5)

    N, E, M, IN = 64, 256, 16, 128
    x = jax.random.normal(k_x, (N, IN), jnp.float32)
    src = jax.random.randint(k_src, (E,), 0, N)
    dst = jax.random.randint(k_dst, (E,), 0, N)
    edge_index = jnp.stack([src, dst], axis=0)                  # [2, E]
    # TODO(synk): idx2index() is not defined in the reference repo; treat idx as
    # row indices into the node table directly.
    idx = jnp.sort(jax.random.permutation(k_idx, N)[:M])        # selected node ids

    params = init_params(k_par)

    fwd = jax.jit(functools.partial(my_out_gat_forward, n_pad=128))
    h_logits, out = fwd(params, x, edge_index, idx)
    jax.block_until_ready((h_logits, out))
    assert h_logits.shape == (M, 5) and out.shape == (M, 5)
    assert bool(jnp.all(jnp.isfinite(h_logits))) and bool(jnp.all(jnp.isfinite(out)))
    print("KERNEL_OK")
</pallas_src>

<mosaic_0001>
module attributes {stable_mosaic.version = 11 : i64} {
  func.func @fused_gat_kernel(%arg0: memref<128x128xf32, #tpu.memory_space<vmem>>, %arg1: memref<256x1xi32, #tpu.memory_space<vmem>>, %arg2: memref<1x256xi32, #tpu.memory_space<vmem>>, %arg3: memref<16x1xi32, #tpu.memory_space<vmem>>, %arg4: memref<128x128xf32, #tpu.memory_space<vmem>>, %arg5: memref<128x4xf32, #tpu.memory_space<vmem>>, %arg6: memref<1x128xf32, #tpu.memory_space<vmem>>, %arg7: memref<1x128xf32, #tpu.memory_space<vmem>>, %arg8: memref<1x128xf32, #tpu.memory_space<vmem>>, %arg9: memref<128x64xf32, #tpu.memory_space<vmem>>, %arg10: memref<64x2xf32, #tpu.memory_space<vmem>>, %arg11: memref<1x64xf32, #tpu.memory_space<vmem>>, %arg12: memref<1x64xf32, #tpu.memory_space<vmem>>, %arg13: memref<1x64xf32, #tpu.memory_space<vmem>>, %arg14: memref<64x32xf32, #tpu.memory_space<vmem>>, %arg15: memref<1x32xf32, #tpu.memory_space<vmem>>, %arg16: memref<32x16xf32, #tpu.memory_space<vmem>>, %arg17: memref<1x16xf32, #tpu.memory_space<vmem>>, %arg18: memref<16x128xf32, #tpu.memory_space<vmem>>, %arg19: memref<1x128xf32, #tpu.memory_space<vmem>>, %arg20: memref<16x128xf32, #tpu.memory_space<vmem>>, %arg21: memref<16x128xf32, #tpu.memory_space<vmem>>, %arg22: memref<128x128xf32, #tpu.memory_space<vmem>>) attributes {dimension_semantics = [], scalar_prefetch = 0 : i64, scratch_operands = 1 : i64, tpu.core_type = #tpu.core_type<tc>} {
    %0 = tpu.iota {dimensions = array<i32: 0>} : vector<128x256xi32>
    %c0 = arith.constant 0 : index
    %c0_0 = arith.constant 0 : index
    %1 = vector.load %arg2[%c0, %c0_0] : memref<1x256xi32, #tpu.memory_space<vmem>>, vector<1x256xi32>
    %2 = vector.broadcast %1 : vector<1x256xi32> to vector<128x256xi32>
    %3 = arith.cmpi eq, %0, %2 : vector<128x256xi32>
    %4 = arith.extui %3 : vector<128x256xi1> to vector<128x256xi32>
    %5 = arith.sitofp %4 : vector<128x256xi32> to vector<128x256xf32>
    %6 = arith.truncf %5 : vector<128x256xf32> to vector<128x256xbf16>
    %c0_1 = arith.constant 0 : index
    %c0_2 = arith.constant 0 : index
    %7 = vector.load %arg1[%c0_1, %c0_2] : memref<256x1xi32, #tpu.memory_space<vmem>>, vector<256x1xi32>
    %8 = tpu.iota {dimensions = array<i32: 1>} : vector<256x128xi32>
    %9 = vector.broadcast %7 : vector<256x1xi32> to vector<256x128xi32>
    %10 = arith.cmpi eq, %9, %8 : vector<256x128xi32>
    %11 = arith.extui %10 : vector<256x128xi1> to vector<256x128xi32>
    %12 = arith.sitofp %11 : vector<256x128xi32> to vector<256x128xf32>
    %13 = arith.truncf %12 : vector<256x128xf32> to vector<256x128xbf16>
    %cst = arith.constant dense<0.000000e+00> : vector<128x128xf32>
    %14 = tpu.matmul %6, %13, %cst {dimension_numbers = #tpu.dot_dimension_numbers<[1], [0], [0], [1], [0, 0, 1, 1], [], []>} : vector<128x256xbf16>, vector<256x128xbf16>, vector<128x128xf32> -> vector<128x128xf32>
    %15 = tpu.iota {dimensions = array<i32: 0>} : vector<128x128xi32>
    %16 = tpu.iota {dimensions = array<i32: 1>} : vector<128x128xi32>
    %17 = arith.cmpi eq, %15, %16 : vector<128x128xi32>
    %18 = arith.extui %17 : vector<128x128xi1> to vector<128x128xi32>
    %19 = arith.sitofp %18 : vector<128x128xi32> to vector<128x128xf32>
    %20 = arith.addf %14, %19 : vector<128x128xf32>
    %cst_3 = arith.constant 0.000000e+00 : f32
    %21 = vector.broadcast %cst_3 : f32 to vector<128x128xf32>
    %22 = arith.cmpf ogt, %20, %21 : vector<128x128xf32>
    %cst_4 = arith.constant 0.000000e+00 : f32
    %cst_5 = arith.constant -1.000000e+30 : f32
    %23 = vector.broadcast %cst_4 : f32 to vector<128x128xf32>
    %24 = vector.broadcast %cst_5 : f32 to vector<128x128xf32>
    %25 = arith.select %22, %23, %24 : vector<128x128xi1>, vector<128x128xf32>
    %cst_6 = arith.constant 1.000000e+00 : f32
    %26 = vector.broadcast %cst_6 : f32 to vector<128x1xf32>
    %27 = tpu.iota {dimensions = array<i32: 1>} : vector<1x128xi32>
    %c64_i32 = arith.constant 64 : i32
    %28 = vector.broadcast %c64_i32 : i32 to vector<1x128xi32>
    %29 = arith.cmpi slt, %27, %28 : vector<1x128xi32>
    %30 = arith.extui %29 : vector<1x128xi1> to vector<1x128xi32>
    %31 = arith.sitofp %30 : vector<1x128xi32> to vector<1x128xf32>
    %c0_7 = arith.constant 0 : index
    %c0_8 = arith.constant 0 : index
    %32 = vector.load %arg0[%c0_7, %c0_8] : memref<128x128xf32, #tpu.memory_space<vmem>>, vector<128x128xf32>
    %33 = arith.truncf %32 : vector<128x128xf32> to vector<128x128xbf16>
    %c0_9 = arith.constant 0 : index
    %c0_10 = arith.constant 0 : index
    %34 = vector.load %arg4[%c0_9, %c0_10] : memref<128x128xf32, #tpu.memory_space<vmem>>, vector<128x128xf32>
    %35 = arith.truncf %34 : vector<128x128xf32> to vector<128x128xbf16>
    %cst_11 = arith.constant dense<0.000000e+00> : vector<128x128xf32>
    %36 = tpu.matmul %33, %35, %cst_11 {dimension_numbers = #tpu.dot_dimension_numbers<[1], [0], [0], [1], [0, 0, 1, 1], [], []>} : vector<128x128xbf16>, vector<128x128xbf16>, vector<128x128xf32> -> vector<128x128xf32>
    %c0_12 = arith.constant 0 : index
    %c0_13 = arith.constant 0 : index
    %37 = vector.load %arg5[%c0_12, %c0_13] : memref<128x4xf32, #tpu.memory_space<vmem>>, vector<128x4xf32>
    %cst_14 = arith.constant dense<0.000000e+00> : vector<128x4xf32>
    %38 = tpu.matmul %36, %37, %cst_14 {dimension_numbers = #tpu.dot_dimension_numbers<[1], [0], [0], [1], [0, 0, 1, 1], [], []>} : vector<128x128xf32>, vector<128x4xf32>, vector<128x4xf32> -> vector<128x4xf32>
    %39 = vector.extract_strided_slice %36 {offsets = [0, 0], sizes = [128, 64], strides = [1, 1]} : vector<128x128xf32> to vector<128x64xf32>
    %40 = vector.extract_strided_slice %38 {offsets = [0, 0], sizes = [128, 1], strides = [1, 1]} : vector<128x4xf32> to vector<128x1xf32>
    %41 = vector.extract_strided_slice %38 {offsets = [0, 1], sizes = [128, 1], strides = [1, 1]} : vector<128x4xf32> to vector<128x1xf32>
    %42 = tpu.concatenate %41, %26 in 1 : vector<128x1xf32>, vector<128x1xf32> -> vector<128x2xf32>
    %43 = tpu.concatenate %26, %40 in 1 : vector<128x1xf32>, vector<128x1xf32> -> vector<128x2xf32>
    %cst_15 = arith.constant dense<0.000000e+00> : vector<128x128xf32>
    %44 = tpu.matmul %42, %43, %cst_15 {dimension_numbers = #tpu.dot_dimension_numbers<[1], [1], [0], [0], [0, 0, 1, 0], [], []>} : vector<128x2xf32>, vector<128x2xf32>, vector<128x128xf32> -> vector<128x128xf32>
    %cst_16 = arith.constant 0.000000e+00 : f32
    %45 = vector.broadcast %cst_16 : f32 to vector<128x128xf32>
    %46 = arith.cmpf oge, %44, %45 : vector<128x128xf32>
    %cst_17 = arith.constant 2.000000e-01 : f32
    %47 = vector.broadcast %cst_17 : f32 to vector<128x128xf32>
    %48 = arith.mulf %47, %44 : vector<128x128xf32>
    %49 = arith.select %46, %44, %48 : vector<128x128xi1>, vector<128x128xf32>
    %50 = arith.addf %49, %25 : vector<128x128xf32>
    %cst_18 = arith.constant dense<0xFF800000> : vector<128xf32>
    %51 = vector.multi_reduction <maximumf>, %50, %cst_18 [1] : vector<128x128xf32> to vector<128xf32>
    %52 = vector.shape_cast %51 : vector<128xf32> to vector<128x1xf32>
    %53 = vector.broadcast %52 : vector<128x1xf32> to vector<128x128xf32>
    %54 = arith.subf %50, %53 : vector<128x128xf32>
    %55 = math.exp %54 : vector<128x128xf32>
    %cst_19 = arith.constant dense<0.000000e+00> : vector<128x1xf32>
    %56 = tpu.matmul %55, %26, %cst_19 {dimension_numbers = #tpu.dot_dimension_numbers<[1], [0], [0], [1], [0, 0, 1, 1], [], []>} : vector<128x128xf32>, vector<128x1xf32>, vector<128x1xf32> -> vector<128x1xf32>
    %57 = tpu.reciprocal %56 {approx = true} : vector<128x1xf32> -> vector<128x1xf32>
    %58 = vector.broadcast %57 : vector<128x1xf32> to vector<128x128xf32>
    %59 = arith.mulf %55, %58 : vector<128x128xf32>
    %60 = arith.truncf %59 : vector<128x128xf32> to vector<128x128xbf16>
    %61 = arith.truncf %39 : vector<128x64xf32> to vector<128x64xbf16>
    %cst_20 = arith.constant dense<0.000000e+00> : vector<128x64xf32>
    %62 = tpu.matmul %60, %61, %cst_20 {dimension_numbers = #tpu.dot_dimension_numbers<[1], [0], [0], [1], [0, 0, 1, 1], [], []>} : vector<128x128xbf16>, vector<128x64xbf16>, vector<128x64xf32> -> vector<128x64xf32>
    %c0_21 = arith.constant 0 : index
    %c0_22 = arith.constant 0 : index
    %63 = vector.load %arg22[%c0_21, %c0_22] : memref<128x128xf32, #tpu.memory_space<vmem>>, vector<128x64xf32>
    tpu.vector_store %arg22[%c0_21, %c0_22], %62 {strides = array<i32>} : memref<128x128xf32, #tpu.memory_space<vmem>>, vector<128x64xf32>,
    %64 = vector.extract_strided_slice %36 {offsets = [0, 64], sizes = [128, 64], strides = [1, 1]} : vector<128x128xf32> to vector<128x64xf32>
    %65 = vector.extract_strided_slice %38 {offsets = [0, 2], sizes = [128, 1], strides = [1, 1]} : vector<128x4xf32> to vector<128x1xf32>
    %66 = vector.extract_strided_slice %38 {offsets = [0, 3], sizes = [128, 1], strides = [1, 1]} : vector<128x4xf32> to vector<128x1xf32>
    %67 = tpu.concatenate %66, %26 in 1 : vector<128x1xf32>, vector<128x1xf32> -> vector<128x2xf32>
    %68 = tpu.concatenate %26, %65 in 1 : vector<128x1xf32>, vector<128x1xf32> -> vector<128x2xf32>
    %cst_23 = arith.constant dense<0.000000e+00> : vector<128x128xf32>
    %69 = tpu.matmul %67, %68, %cst_23 {dimension_numbers = #tpu.dot_dimension_numbers<[1], [1], [0], [0], [0, 0, 1, 0], [], []>} : vector<128x2xf32>, vector<128x2xf32>, vector<128x128xf32> -> vector<128x128xf32>
    %cst_24 = arith.constant 0.000000e+00 : f32
    %70 = vector.broadcast %cst_24 : f32 to vector<128x128xf32>
    %71 = arith.cmpf oge, %69, %70 : vector<128x128xf32>
    %cst_25 = arith.constant 2.000000e-01 : f32
    %72 = vector.broadcast %cst_25 : f32 to vector<128x128xf32>
    %73 = arith.mulf %72, %69 : vector<128x128xf32>
    %74 = arith.select %71, %69, %73 : vector<128x128xi1>, vector<128x128xf32>
    %75 = arith.addf %74, %25 : vector<128x128xf32>
    %cst_26 = arith.constant dense<0xFF800000> : vector<128xf32>
    %76 = vector.multi_reduction <maximumf>, %75, %cst_26 [1] : vector<128x128xf32> to vector<128xf32>
    %77 = vector.shape_cast %76 : vector<128xf32> to vector<128x1xf32>
    %78 = vector.broadcast %77 : vector<128x1xf32> to vector<128x128xf32>
    %79 = arith.subf %75, %78 : vector<128x128xf32>
    %80 = math.exp %79 : vector<128x128xf32>
    %cst_27 = arith.constant dense<0.000000e+00> : vector<128x1xf32>
    %81 = tpu.matmul %80, %26, %cst_27 {dimension_numbers = #tpu.dot_dimension_numbers<[1], [0], [0], [1], [0, 0, 1, 1], [], []>} : vector<128x128xf32>, vector<128x1xf32>, vector<128x1xf32> -> vector<128x1xf32>
    %82 = tpu.reciprocal %81 {approx = true} : vector<128x1xf32> -> vector<128x1xf32>
    %83 = vector.broadcast %82 : vector<128x1xf32> to vector<128x128xf32>
    %84 = arith.mulf %80, %83 : vector<128x128xf32>
    %85 = arith.truncf %84 : vector<128x128xf32> to vector<128x128xbf16>
    %86 = arith.truncf %64 : vector<128x64xf32> to vector<128x64xbf16>
    %cst_28 = arith.constant dense<0.000000e+00> : vector<128x64xf32>
    %87 = tpu.matmul %85, %86, %cst_28 {dimension_numbers = #tpu.dot_dimension_numbers<[1], [0], [0], [1], [0, 0, 1, 1], [], []>} : vector<128x128xbf16>, vector<128x64xbf16>, vector<128x64xf32> -> vector<128x64xf32>
    %c0_29 = arith.constant 0 : index
    %c64 = arith.constant 64 : index
    %88 = vector.load %arg22[%c0_29, %c64] : memref<128x128xf32, #tpu.memory_space<vmem>>, vector<128x64xf32>
    tpu.vector_store %arg22[%c0_29, %c64], %87 {strides = array<i32>} : memref<128x128xf32, #tpu.memory_space<vmem>>, vector<128x64xf32>,
    %c0_30 = arith.constant 0 : index
    %c0_31 = arith.constant 0 : index
    %89 = vector.load %arg22[%c0_30, %c0_31] : memref<128x128xf32, #tpu.memory_space<vmem>>, vector<128x128xf32>
    %c0_32 = arith.constant 0 : index
    %c0_33 = arith.constant 0 : index
    %90 = vector.load %arg6[%c0_32, %c0_33] : memref<1x128xf32, #tpu.memory_space<vmem>>, vector<1x128xf32>
    %91 = vector.broadcast %90 : vector<1x128xf32> to vector<128x128xf32>
    %92 = arith.addf %89, %91 : vector<128x128xf32>
    %cst_34 = arith.constant 0.000000e+00 : f32
    %93 = vector.broadcast %cst_34 : f32 to vector<128x128xf32>
    %94 = arith.cmpf oge, %92, %93 : vector<128x128xf32>
    %cst_35 = arith.constant 0.00999999977 : f32
    %95 = vector.broadcast %cst_35 : f32 to vector<128x128xf32>
    %96 = arith.mulf %95, %92 : vector<128x128xf32>
    %97 = arith.select %94, %92, %96 : vector<128x128xi1>, vector<128x128xf32>
    %c0_36 = arith.constant 0 : index
    %c0_37 = arith.constant 0 : index
    %98 = vector.load %arg7[%c0_36, %c0_37] : memref<1x128xf32, #tpu.memory_space<vmem>>, vector<1x128xf32>
    %c0_38 = arith.constant 0 : index
    %c0_39 = arith.constant 0 : index
    %99 = vector.load %arg8[%c0_38, %c0_39] : memref<1x128xf32, #tpu.memory_space<vmem>>, vector<1x128xf32>
    %cst_40 = arith.constant dense<0.000000e+00> : vector<1x128xf32>
    %100 = tpu.matmul %31, %97, %cst_40 {dimension_numbers = #tpu.dot_dimension_numbers<[1], [0], [0], [1], [0, 0, 1, 1], [], []>} : vector<1x128xf32>, vector<128x128xf32>, vector<1x128xf32> -> vector<1x128xf32>
    %cst_41 = arith.constant 1.562500e-02 : f32
    %101 = vector.broadcast %cst_41 : f32 to vector<1x128xf32>
    %102 = arith.mulf %100, %101 : vector<1x128xf32>
    %103 = vector.broadcast %102 : vector<1x128xf32> to vector<128x128xf32>
    %104 = arith.subf %97, %103 : vector<128x128xf32>
    %105 = arith.mulf %104, %104 : vector<128x128xf32>
    %cst_42 = arith.constant dense<0.000000e+00> : vector<1x128xf32>
    %106 = tpu.matmul %31, %105, %cst_42 {dimension_numbers = #tpu.dot_dimension_numbers<[1], [0], [0], [1], [0, 0, 1, 1], [], []>} : vector<1x128xf32>, vector<128x128xf32>, vector<1x128xf32> -> vector<1x128xf32>
    %cst_43 = arith.constant 1.562500e-02 : f32
    %107 = vector.broadcast %cst_43 : f32 to vector<1x128xf32>
    %108 = arith.mulf %106, %107 : vector<1x128xf32>
    %cst_44 = arith.constant 9.99999974E-6 : f32
    %109 = vector.broadcast %cst_44 : f32 to vector<1x128xf32>
    %110 = arith.addf %108, %109 : vector<1x128xf32>
    %111 = math.rsqrt %110 : vector<1x128xf32>
    %112 = vector.broadcast %111 : vector<1x128xf32> to vector<128x128xf32>
    %113 = arith.mulf %104, %112 : vector<128x128xf32>
    %114 = vector.broadcast %98 : vector<1x128xf32> to vector<128x128xf32>
    %115 = arith.mulf %113, %114 : vector<128x128xf32>
    %116 = vector.broadcast %99 : vector<1x128xf32> to vector<128x128xf32>
    %117 = arith.addf %115, %116 : vector<128x128xf32>
    %118 = arith.truncf %117 : vector<128x128xf32> to vector<128x128xbf16>
    %c0_45 = arith.constant 0 : index
    %c0_46 = arith.constant 0 : index
    %119 = vector.load %arg9[%c0_45, %c0_46] : memref<128x64xf32, #tpu.memory_space<vmem>>, vector<128x64xf32>
    %120 = arith.truncf %119 : vector<128x64xf32> to vector<128x64xbf16>
    %cst_47 = arith.constant dense<0.000000e+00> : vector<128x64xf32>
    %121 = tpu.matmul %118, %120, %cst_47 {dimension_numbers = #tpu.dot_dimension_numbers<[1], [0], [0], [1], [0, 0, 1, 1], [], []>} : vector<128x128xbf16>, vector<128x64xbf16>, vector<128x64xf32> -> vector<128x64xf32>
    %c0_48 = arith.constant 0 : index
    %c0_49 = arith.constant 0 : index
    %122 = vector.load %arg10[%c0_48, %c0_49] : memref<64x2xf32, #tpu.memory_space<vmem>>, vector<64x2xf32>
    %cst_50 = arith.constant dense<0.000000e+00> : vector<128x2xf32>
    %123 = tpu.matmul %121, %122, %cst_50 {dimension_numbers = #tpu.dot_dimension_numbers<[1], [0], [0], [1], [0, 0, 1, 1], [], []>} : vector<128x64xf32>, vector<64x2xf32>, vector<128x2xf32> -> vector<128x2xf32>
    %124 = vector.extract_strided_slice %123 {offsets = [0, 0], sizes = [128, 1], strides = [1, 1]} : vector<128x2xf32> to vector<128x1xf32>
    %125 = vector.extract_strided_slice %123 {offsets = [0, 1], sizes = [128, 1], strides = [1, 1]} : vector<128x2xf32> to vector<128x1xf32>
    %126 = tpu.concatenate %125, %26 in 1 : vector<128x1xf32>, vector<128x1xf32> -> vector<128x2xf32>
    %127 = tpu.concatenate %26, %124 in 1 : vector<128x1xf32>, vector<128x1xf32> -> vector<128x2xf32>
    %cst_51 = arith.constant dense<0.000000e+00> : vector<128x128xf32>
    %128 = tpu.matmul %126, %127, %cst_51 {dimension_numbers = #tpu.dot_dimension_numbers<[1], [1], [0], [0], [0, 0, 1, 0], [], []>} : vector<128x2xf32>, vector<128x2xf32>, vector<128x128xf32> -> vector<128x128xf32>
    %cst_52 = arith.constant 0.000000e+00 : f32
    %129 = vector.broadcast %cst_52 : f32 to vector<128x128xf32>
    %130 = arith.cmpf oge, %128, %129 : vector<128x128xf32>
    %cst_53 = arith.constant 2.000000e-01 : f32
    %131 = vector.broadcast %cst_53 : f32 to vector<128x128xf32>
    %132 = arith.mulf %131, %128 : vector<128x128xf32>
    %133 = arith.select %130, %128, %132 : vector<128x128xi1>, vector<128x128xf32>
    %134 = arith.addf %133, %25 : vector<128x128xf32>
    %cst_54 = arith.constant dense<0xFF800000> : vector<128xf32>
    %135 = vector.multi_reduction <maximumf>, %134, %cst_54 [1] : vector<128x128xf32> to vector<128xf32>
    %136 = vector.shape_cast %135 : vector<128xf32> to vector<128x1xf32>
    %137 = vector.broadcast %136 : vector<128x1xf32> to vector<128x128xf32>
    %138 = arith.subf %134, %137 : vector<128x128xf32>
    %139 = math.exp %138 : vector<128x128xf32>
    %cst_55 = arith.constant dense<0.000000e+00> : vector<128x1xf32>
    %140 = tpu.matmul %139, %26, %cst_55 {dimension_numbers = #tpu.dot_dimension_numbers<[1], [0], [0], [1], [0, 0, 1, 1], [], []>} : vector<128x128xf32>, vector<128x1xf32>, vector<128x1xf32> -> vector<128x1xf32>
    %141 = tpu.reciprocal %140 {approx = true} : vector<128x1xf32> -> vector<128x1xf32>
    %142 = vector.broadcast %141 : vector<128x1xf32> to vector<128x128xf32>
    %143 = arith.mulf %139, %142 : vector<128x128xf32>
    %144 = arith.truncf %143 : vector<128x128xf32> to vector<128x128xbf16>
    %145 = arith.truncf %121 : vector<128x64xf32> to vector<128x64xbf16>
    %cst_56 = arith.constant dense<0.000000e+00> : vector<128x64xf32>
    %146 = tpu.matmul %144, %145, %cst_56 {dimension_numbers = #tpu.dot_dimension_numbers<[1], [0], [0], [1], [0, 0, 1, 1], [], []>} : vector<128x128xbf16>, vector<128x64xbf16>, vector<128x64xf32> -> vector<128x64xf32>
    %c0_57 = arith.constant 0 : index
    %c0_58 = arith.constant 0 : index
    %147 = vector.load %arg11[%c0_57, %c0_58] : memref<1x64xf32, #tpu.memory_space<vmem>>, vector<1x64xf32>
    %148 = vector.broadcast %147 : vector<1x64xf32> to vector<128x64xf32>
    %149 = arith.addf %146, %148 : vector<128x64xf32>
    %cst_59 = arith.constant 0.000000e+00 : f32
    %150 = vector.broadcast %cst_59 : f32 to vector<128x64xf32>
    %151 = arith.cmpf oge, %149, %150 : vector<128x64xf32>
    %cst_60 = arith.constant 0.00999999977 : f32
    %152 = vector.broadcast %cst_60 : f32 to vector<128x64xf32>
    %153 = arith.mulf %152, %149 : vector<128x64xf32>
    %154 = arith.select %151, %149, %153 : vector<128x64xi1>, vector<128x64xf32>
    %c0_61 = arith.constant 0 : index
    %c0_62 = arith.constant 0 : index
    %155 = vector.load %arg12[%c0_61, %c0_62] : memref<1x64xf32, #tpu.memory_space<vmem>>, vector<1x64xf32>
    %c0_63 = arith.constant 0 : index
    %c0_64 = arith.constant 0 : index
    %156 = vector.load %arg13[%c0_63, %c0_64] : memref<1x64xf32, #tpu.memory_space<vmem>>, vector<1x64xf32>
    %cst_65 = arith.constant dense<0.000000e+00> : vector<1x64xf32>
    %157 = tpu.matmul %31, %154, %cst_65 {dimension_numbers = #tpu.dot_dimension_numbers<[1], [0], [0], [1], [0, 0, 1, 1], [], []>} : vector<1x128xf32>, vector<128x64xf32>, vector<1x64xf32> -> vector<1x64xf32>
    %cst_66 = arith.constant 1.562500e-02 : f32
    %158 = vector.broadcast %cst_66 : f32 to vector<1x64xf32>
    %159 = arith.mulf %157, %158 : vector<1x64xf32>
    %160 = vector.broadcast %159 : vector<1x64xf32> to vector<128x64xf32>
    %161 = arith.subf %154, %160 : vector<128x64xf32>
    %162 = arith.mulf %161, %161 : vector<128x64xf32>
    %cst_67 = arith.constant dense<0.000000e+00> : vector<1x64xf32>
    %163 = tpu.matmul %31, %162, %cst_67 {dimension_numbers = #tpu.dot_dimension_numbers<[1], [0], [0], [1], [0, 0, 1, 1], [], []>} : vector<1x128xf32>, vector<128x64xf32>, vector<1x64xf32> -> vector<1x64xf32>
    %cst_68 = arith.constant 1.562500e-02 : f32
    %164 = vector.broadcast %cst_68 : f32 to vector<1x64xf32>
    %165 = arith.mulf %163, %164 : vector<1x64xf32>
    %cst_69 = arith.constant 9.99999974E-6 : f32
    %166 = vector.broadcast %cst_69 : f32 to vector<1x64xf32>
    %167 = arith.addf %165, %166 : vector<1x64xf32>
    %168 = math.rsqrt %167 : vector<1x64xf32>
    %169 = vector.broadcast %168 : vector<1x64xf32> to vector<128x64xf32>
    %170 = arith.mulf %161, %169 : vector<128x64xf32>
    %171 = vector.broadcast %155 : vector<1x64xf32> to vector<128x64xf32>
    %172 = arith.mulf %170, %171 : vector<128x64xf32>
    %173 = vector.broadcast %156 : vector<1x64xf32> to vector<128x64xf32>
    %174 = arith.addf %172, %173 : vector<128x64xf32>
    %175 = tpu.iota {dimensions = array<i32: 1>} : vector<16x128xi32>
    %c0_70 = arith.constant 0 : index
    %c0_71 = arith.constant 0 : index
    %176 = vector.load %arg3[%c0_70, %c0_71] : memref<16x1xi32, #tpu.memory_space<vmem>>, vector<16x1xi32>
    %177 = vector.broadcast %176 : vector<16x1xi32> to vector<16x128xi32>
    %178 = arith.cmpi eq, %177, %175 : vector<16x128xi32>
    %179 = arith.extui %178 : vector<16x128xi1> to vector<16x128xi32>
    %180 = arith.sitofp %179 : vector<16x128xi32> to vector<16x128xf32>
    %cst_72 = arith.constant dense<0.000000e+00> : vector<16x64xf32>
    %181 = tpu.matmul %180, %174, %cst_72 {dimension_numbers = #tpu.dot_dimension_numbers<[1], [0], [0], [1], [0, 0, 1, 1], [], []>} : vector<16x128xf32>, vector<128x64xf32>, vector<16x64xf32> -> vector<16x64xf32>
    %c0_73 = arith.constant 0 : index
    %c0_74 = arith.constant 0 : index
    %182 = vector.load %arg14[%c0_73, %c0_74] : memref<64x32xf32, #tpu.memory_space<vmem>>, vector<64x32xf32>
    %cst_75 = arith.constant dense<0.000000e+00> : vector<16x32xf32>
    %183 = tpu.matmul %181, %182, %cst_75 {dimension_numbers = #tpu.dot_dimension_numbers<[1], [0], [0], [1], [0, 0, 1, 1], [], []>} : vector<16x64xf32>, vector<64x32xf32>, vector<16x32xf32> -> vector<16x32xf32>
    %c0_76 = arith.constant 0 : index
    %c0_77 = arith.constant 0 : index
    %184 = vector.load %arg15[%c0_76, %c0_77] : memref<1x32xf32, #tpu.memory_space<vmem>>, vector<1x32xf32>
    %185 = vector.broadcast %184 : vector<1x32xf32> to vector<16x32xf32>
    %186 = arith.addf %183, %185 : vector<16x32xf32>
    %cst_78 = arith.constant 0.000000e+00 : f32
    %187 = vector.broadcast %cst_78 : f32 to vector<16x32xf32>
    %188 = arith.cmpf oge, %186, %187 : vector<16x32xf32>
    %cst_79 = arith.constant 0.00999999977 : f32
    %189 = vector.broadcast %cst_79 : f32 to vector<16x32xf32>
    %190 = arith.mulf %189, %186 : vector<16x32xf32>
    %191 = arith.select %188, %186, %190 : vector<16x32xi1>, vector<16x32xf32>
    %c0_80 = arith.constant 0 : index
    %c0_81 = arith.constant 0 : index
    %192 = vector.load %arg16[%c0_80, %c0_81] : memref<32x16xf32, #tpu.memory_space<vmem>>, vector<32x16xf32>
    %cst_82 = arith.constant dense<0.000000e+00> : vector<16x16xf32>
    %193 = tpu.matmul %191, %192, %cst_82 {dimension_numbers = #tpu.dot_dimension_numbers<[1], [0], [0], [1], [0, 0, 1, 1], [], []>} : vector<16x32xf32>, vector<32x16xf32>, vector<16x16xf32> -> vector<16x16xf32>
    %c0_83 = arith.constant 0 : index
    %c0_84 = arith.constant 0 : index
    %194 = vector.load %arg17[%c0_83, %c0_84] : memref<1x16xf32, #tpu.memory_space<vmem>>, vector<1x16xf32>
    %195 = vector.broadcast %194 : vector<1x16xf32> to vector<16x16xf32>
    %196 = arith.addf %193, %195 : vector<16x16xf32>
    %cst_85 = arith.constant 0.000000e+00 : f32
    %197 = vector.broadcast %cst_85 : f32 to vector<16x16xf32>
    %198 = arith.cmpf oge, %196, %197 : vector<16x16xf32>
    %cst_86 = arith.constant 0.00999999977 : f32
    %199 = vector.broadcast %cst_86 : f32 to vector<16x16xf32>
    %200 = arith.mulf %199, %196 : vector<16x16xf32>
    %201 = arith.select %198, %196, %200 : vector<16x16xi1>, vector<16x16xf32>
    %c0_87 = arith.constant 0 : index
    %c0_88 = arith.constant 0 : index
    %202 = vector.load %arg18[%c0_87, %c0_88] : memref<16x128xf32, #tpu.memory_space<vmem>>, vector<16x128xf32>
    %cst_89 = arith.constant dense<0.000000e+00> : vector<16x128xf32>
    %203 = tpu.matmul %201, %202, %cst_89 {dimension_numbers = #tpu.dot_dimension_numbers<[1], [0], [0], [1], [0, 0, 1, 1], [], []>} : vector<16x16xf32>, vector<16x128xf32>, vector<16x128xf32> -> vector<16x128xf32>
    %c0_90 = arith.constant 0 : index
    %c0_91 = arith.constant 0 : index
    %204 = vector.load %arg19[%c0_90, %c0_91] : memref<1x128xf32, #tpu.memory_space<vmem>>, vector<1x128xf32>
    %205 = vector.broadcast %204 : vector<1x128xf32> to vector<16x128xf32>
    %206 = arith.addf %203, %205 : vector<16x128xf32>
    %c0_92 = arith.constant 0 : index
    %c0_93 = arith.constant 0 : index
    %207 = vector.load %arg20[%c0_92, %c0_93] : memref<16x128xf32, #tpu.memory_space<vmem>>, vector<16x128xf32>
    tpu.vector_store %arg20[%c0_92, %c0_93], %206 {strides = array<i32>} : memref<16x128xf32, #tpu.memory_space<vmem>>, vector<16x128xf32>,
    %cst_94 = arith.constant 0.000000e+00 : f32
    %208 = vector.broadcast %cst_94 : f32 to vector<16x128xf32>
    %209 = arith.subf %208, %206 : vector<16x128xf32>
    %210 = math.exp %209 : vector<16x128xf32>
    %cst_95 = arith.constant 1.000000e+00 : f32
    %211 = vector.broadcast %cst_95 : f32 to vector<16x128xf32>
    %212 = arith.addf %211, %210 : vector<16x128xf32>
    %cst_96 = arith.constant 1.000000e+00 : f32
    %213 = vector.broadcast %cst_96 : f32 to vector<16x128xf32>
    %214 = arith.divf %213, %212 : vector<16x128xf32>
    %c0_97 = arith.constant 0 : index
    %c0_98 = arith.constant 0 : index
    %215 = vector.load %arg21[%c0_97, %c0_98] : memref<16x128xf32, #tpu.memory_space<vmem>>, vector<16x128xf32>
    tpu.vector_store %arg21[%c0_97, %c0_98], %214 {strides = array<i32>} : memref<16x128xf32, #tpu.memory_space<vmem>>, vector<16x128xf32>,
    return
  }
}

</mosaic_0001>

<bundles_post_ra>
// kernel: my_out_gat_forward.1
= control target key start
LH: loop header
LB: loop body
LE: loop exit
PB: predicated region body
PF: predicated region fallthrough
CT: control target
= control target key end

     0   :  { %s7337_s27 = smov 1   ;;  %s7341_s28 = smov 125   ;;  %s9687_s4 = inlined_call_operand.vmem [shape: f32[128,128], index: 4, kind: input, shape index: {}]   ;;  %s9688_s0 = inlined_call_operand.vmem [shape: f32[128,128], index: 0, kind: input, shape index: {}]   ;;  %s9689_s5 = inlined_call_operand.vmem [shape: f32[128,4], index: 5, kind: input, shape index: {}]   ;;  %s9690_s1 = inlined_call_operand.vmem [shape: s32[256,1], index: 1, kind: input, shape index: {}]   ;;  %s9691_s2 = inlined_call_operand.vmem [shape: s32[1,256], index: 2, kind: input, shape index: {}]   ;;  %s9692_s6 = inlined_call_operand.vmem [shape: f32[1,128], index: 6, kind: input, shape index: {}]   ;;  %s9693_s9 = inlined_call_operand.vmem [shape: f32[128,64], index: 9, kind: input, shape index: {}]   ;;  %s9694_s10 = inlined_call_operand.vmem [shape: f32[64,2], index: 10, kind: input, shape index: {}]   ;;  %s9695_s7 = inlined_call_operand.vmem [shape: f32[1,128], index: 7, kind: input, shape index: {}]   ;;  %s9696_s8 = inlined_call_operand.vmem [shape: f32[1,128], index: 8, kind: input, shape index: {}]   ;;  %s9697_s3 = inlined_call_operand.vmem [shape: s32[16,1], index: 3, kind: input, shape index: {}]   ;;  %s9698_s11 = inlined_call_operand.vmem [shape: f32[1,64], index: 11, kind: input, shape index: {}]   ;;  %s9699_s14 = inlined_call_operand.vmem [shape: f32[64,32], index: 14, kind: input, shape index: {}]   ;;  %s9700_s12 = inlined_call_operand.vmem [shape: f32[1,64], index: 12, kind: input, shape index: {}]   ;;  %s9701_s13 = inlined_call_operand.vmem [shape: f32[1,64], index: 13, kind: input, shape index: {}]   ;;  %s9702_s16 = inlined_call_operand.vmem [shape: f32[32,16], index: 16, kind: input, shape index: {}]   ;;  %s9703_s15 = inlined_call_operand.vmem [shape: f32[1,32], index: 15, kind: input, shape index: {}]   ;;  %s9704_s18 = inlined_call_operand.vmem [shape: f32[16,128], index: 18, kind: input, shape index: {}]   ;;  %s9705_s17 = inlined_call_operand.vmem [shape: f32[1,16], index: 17, kind: input, shape index: {}]   ;;  %s9706_s19 = inlined_call_operand.vmem [shape: f32[1,128], index: 19, kind: input, shape index: {}]   ;;  %s9707_s20 = inlined_call_operand.vmem [shape: f32[16,128], index: 20, kind: output, shape index: {0}]   ;;  %s9708_s21 = inlined_call_operand.vmem [shape: f32[16,128], index: 21, kind: output, shape index: {1}]  }
   0x1   :  { %9743 = sst [smem:[#allocation26_spill]] %s9687_s4 }
   0x2   :  { %9744 = sst [smem:[#allocation27_spill]] %s9688_s0  ;;  %s9749_s26 = sld [smem:[#allocation26_spill]] }
   0x3   :  { %9745 = sst [smem:[#allocation28_spill]] %s9689_s5  ;;  %s9750_s5 = sld [smem:[#allocation27_spill]] }
   0x4   :  { %9746 = sst [smem:[#allocation29_spill]] %s9690_s1  ;;  %s9751_s0 = sld [smem:[#allocation28_spill]] }
   0x5   :  { %9747 = sst [smem:[#allocation30_spill]] %s9691_s2  ;;  %s9752_s29 = sld [smem:[#allocation29_spill]] }
   0x6   :  { %9748 = sst [smem:[#allocation31_spill]] %s9692_s6  ;;  %s9764_s25 = sld [smem:[#allocation30_spill]] }
   0x7   :  { %s7338_s1 = smov 127   ;;  %s7342_s2 = smov 64  }
   0x8   :  { %v652_v0 = vld [vmem:[%s9749_s26] sm:$0xff]  ;;  %v653_v1 = vld [vmem:[%s9749_s26 + $0x8] sm:$0xff]  ;;  %v654_v2 = vld [vmem:[%s9749_s26 + $0x10] sm:$0xff]  ;;  %s9804_s4 = sld [smem:[#allocation31_spill]] }
   0x9   :  { %v668_v3 = vpack.c.bf16 %v653_v1, %v652_v0  ;;  %v655_v4 = vld [vmem:[%s9749_s26 + $0x18] sm:$0xff]  ;;  %v656_v6 = vld [vmem:[%s9749_s26 + $0x20] sm:$0xff]  ;;  %v657_v7 = vld [vmem:[%s9749_s26 + $0x28] sm:$0xff] }
   0xa   :  { %v669_v5 = vpack.c.bf16 %v655_v4, %v654_v2  ;;  %v670_v8 = vpack.c.bf16 %v657_v7, %v656_v6  ;;  %v628_v9 = vld [vmem:[%s9750_s5] sm:$0xff]  ;;  %v629_v10 = vld [vmem:[%s9750_s5 + $0x8] sm:$0xff]  ;;  %v658_v11 = vld [vmem:[%s9749_s26 + $0x30] sm:$0xff] }
   0xb   :  { %5838 = vmatprep.subr.bf16.mxu1 %v668_v3  ;;  %v659_v12 = vld [vmem:[%s9749_s26 + $0x38] sm:$0xff]  ;;  %v644_v13 = vpack.c.bf16 %v629_v10, %v628_v9  ;;  %v660_v15 = vld [vmem:[%s9749_s26 + $0x40] sm:$0xff]  ;;  %v661_v16 = vld [vmem:[%s9749_s26 + $0x48] sm:$0xff] }
   0xc   :  { %5839 = vmatpush3.bf16.msra.mxu1 %v668_v3  ;;  %v671_v14 = vpack.c.bf16 %v659_v12, %v658_v11  ;;  %v672_v17 = vpack.c.bf16 %v661_v16, %v660_v15  ;;  %v662_v18 = vld [vmem:[%s9749_s26 + $0x50] sm:$0xff]  ;;  %v663_v19 = vld [vmem:[%s9749_s26 + $0x58] sm:$0xff]  ;;  %v664_v21 = vld [vmem:[%s9749_s26 + $0x60] sm:$0xff] }
   0xd   :  { %5840 = vmatprep.subr.bf16.mxu1 %v669_v5  ;;  %5854 = vmatprep.mubr.bf16.mxu1 %v644_v13  ;;  %v673_v20 = vpack.c.bf16 %v663_v19, %v662_v18  ;;  %v665_v22 = vld [vmem:[%s9749_s26 + $0x68] sm:$0xff]  ;;  %v666_v24 = vld [vmem:[%s9749_s26 + $0x70] sm:$0xff]  ;;  %v667_v25 = vld [vmem:[%s9749_s26 + $0x78] sm:$0xff] }
   0xe   :  { %v674_v23 = vpack.c.bf16 %v665_v22, %v664_v21  ;;  %v675_v26 = vpack.c.bf16 %v667_v25, %v666_v24  ;;  %v773_v27 = vld [vmem:[%s9751_s0] sm:$0xff]  ;;  %v774_v28 = vld [vmem:[%s9751_s0 + $0x8] sm:$0xff]  ;;  %v630_v29 = vld [vmem:[%s9750_s5 + $0x10] sm:$0xff] }
   0xf   :  { %v631_v30 = vld [vmem:[%s9750_s5 + $0x18] sm:$0xff]  ;;  %v632_v31 = vld [vmem:[%s9750_s5 + $0x20] sm:$0xff]  ;;  %v633_v32 = vld [vmem:[%s9750_s5 + $0x28] sm:$0xff]  ;;  %v6642_v33 = vpack.c.bf16 %v774_v28, %v773_v27 }
  0x10   :  { %5841 = vmatpush3.bf16.msra.mxu1 %v669_v5  ;;  %v775_v34 = vld [vmem:[%s9751_s0 + $0x10] sm:$0xff]  ;;  %v776_v35 = vld [vmem:[%s9751_s0 + $0x18] sm:$0xff]  ;;  %v645_v36 = vpack.c.bf16 %v631_v30, %v630_v29  ;;  %v646_v37 = vpack.c.bf16 %v633_v32, %v632_v31  ;;  %v777_v39 = vld [vmem:[%s9751_s0 + $0x20] sm:$0xff] }
  0x11   :  { %5842 = vmatprep.subr.bf16.mxu1 %v670_v8  ;;  %v6646_v38 = vpack.c.bf16 %v776_v35, %v775_v34  ;;  %v778_v40 = vld [vmem:[%s9751_s0 + $0x28] sm:$0xff]  ;;  %v634_v41 = vld [vmem:[%s9750_s5 + $0x30] sm:$0xff]  ;;  %v635_v42 = vld [vmem:[%s9750_s5 + $0x38] sm:$0xff] }
  0x12   :  { %v636_v43 = vld [vmem:[%s9750_s5 + $0x40] sm:$0xff]  ;;  %v637_v44 = vld [vmem:[%s9750_s5 + $0x48] sm:$0xff]  ;;  %v6650_v45 = vpack.c.bf16 %v778_v40, %v777_v39  ;;  %v779_v46 = vld [vmem:[%s9751_s0 + $0x30] sm:$0xff]  ;;  %v647_v48 = vpack.c.bf16 %v635_v42, %v634_v41 }
  0x13   :  { %v780_v47 = vld [vmem:[%s9751_s0 + $0x38] sm:$0xff]  ;;  %v648_v49 = vpack.c.bf16 %v637_v44, %v636_v43  ;;  %v781_v51 = vld [vmem:[%s9751_s0 + $0x40] sm:$0xff]  ;;  %v782_v52 = vld [vmem:[%s9751_s0 + $0x48] sm:$0xff] }
  0x14   :  { %5843 = vmatpush3.bf16.msra.mxu1 %v670_v8  ;;  %v6654_v50 = vpack.c.bf16 %v780_v47, %v779_v46  ;;  %v638_v53 = vld [vmem:[%s9750_s5 + $0x50] sm:$0xff]  ;;  %v639_v54 = vld [vmem:[%s9750_s5 + $0x58] sm:$0xff]  ;;  %v640_v55 = vld [vmem:[%s9750_s5 + $0x60] sm:$0xff]  ;;  %v6658_v57 = vpack.c.bf16 %v782_v52, %v781_v51  ;;  %v7335_v8 = vmov 0  }
  0x15   :  { %5844 = vmatprep.subr.bf16.mxu1 %v671_v14  ;;  %v641_v56 = vld [vmem:[%s9750_s5 + $0x68] sm:$0xff]  ;;  %v783_v58 = vld [vmem:[%s9751_s0 + $0x50] sm:$0xff]  ;;  %v784_v59 = vld [vmem:[%s9751_s0 + $0x58] sm:$0xff]  ;;  %v649_v60 = vpack.c.bf16 %v639_v54, %v638_v53  ;;  %7050 = vset.pattern.permute.xlu1 %v7335_v8 }
  0x16   :  { %v650_v61 = vpack.c.bf16 %v641_v56, %v640_v55  ;;  %v6662_v62 = vpack.c.bf16 %v784_v59, %v783_v58  ;;  %v785_v63 = vld [vmem:[%s9751_s0 + $0x60] sm:$0xff]  ;;  %v786_v0 = vld [vmem:[%s9751_s0 + $0x68] sm:$0xff]  ;;  %v642_v1 = vld [vmem:[%s9750_s5 + $0x70] sm:$0xff]  ;;  %7049 = vset.pattern.permute.xlu0 %v7335_v8 }
  0x17   :  { %v643_v2 = vld [vmem:[%s9750_s5 + $0x78] sm:$0xff]  ;;  %v6666_v3 = vpack.c.bf16 %v786_v0, %v785_v63  ;;  %v787_v5 = vld [vmem:[%s9751_s0 + $0x70] sm:$0xff]  ;;  %v222_v9 = vld [vmem:[%s9752_s29 + $0x80] sm:$0xff] }
  0x18   :  { %5845 = vmatpush3.bf16.msra.mxu1 %v671_v14  ;;  %v651_v4 = vpack.c.bf16 %v643_v2, %v642_v1  ;;  %v788_v6 = vld [vmem:[%s9751_s0 + $0x78] sm:$0xff]  ;;  %v206_v10 = vld [vmem:[%s9752_s29] sm:$0xff]  ;;  %289 = vperm.xlu0 %7049, %v222_v9   ;;  %v223_v11 = vld [vmem:[%s9752_s29 + $0x88] sm:$0xff] }
  0x19   :  { %5846 = vmatprep.subr.bf16.mxu1 %v672_v17  ;;  %v6670_v7 = vpack.c.bf16 %v788_v6, %v787_v5  ;;  %241 = vperm.xlu1 %7050, %v206_v10   ;;  %v207_v12 = vld [vmem:[%s9752_s29 + $0x8] sm:$0xff]  ;;  %v224_v13 = vld [vmem:[%s9752_s29 + $0x90] sm:$0xff]  ;;  %v225_v14 = vld [vmem:[%s9752_s29 + $0x98] sm:$0xff] }
  0x1a   :  { %v208_v15 = vld [vmem:[%s9752_s29 + $0x10] sm:$0xff]  ;;  %v209_v16 = vld [vmem:[%s9752_s29 + $0x18] sm:$0xff]  ;;  %v227_v18 = vld [vmem:[%s9752_s29 + $0xa8] sm:$0xff] }
  0x1b   :  { %v210_v19 = vld [vmem:[%s9752_s29 + $0x20] sm:$0xff]  ;;  %v228_v21 = vld [vmem:[%s9752_s29 + $0xb0] sm:$0xff]  ;;  %v229_v22 = vld [vmem:[%s9752_s29 + $0xb8] sm:$0xff] }
  0x1c   :  { %5847 = vmatpush3.bf16.msra.mxu1 %v672_v17  ;;  %292 = vperm.xlu0 %7049, %v223_v11   ;;  %v226_v17 = vld [vmem:[%s9752_s29 + $0xa0] sm:$0xff]  ;;  %v213_v24 = vld [vmem:[%s9752_s29 + $0x38] sm:$0xff]  ;;  %v215_v28 = vld [vmem:[%s9752_s29 + $0x48] sm:$0xff] }
  0x1d   :  { %5848 = vmatprep.subr.bf16.mxu1 %v673_v20  ;;  %244 = vperm.xlu1 %7050, %v207_v12   ;;  %v230_v25 = vld [vmem:[%s9752_s29 + $0xc0] sm:$0xff]  ;;  %v232_v29 = vld [vmem:[%s9752_s29 + $0xd0] sm:$0xff]  ;;  %v233_v30 = vld [vmem:[%s9752_s29 + $0xd8] sm:$0xff] }
  0x1e   :  { %v214_v27 = vld [vmem:[%s9752_s29 + $0x40] sm:$0xff]  ;;  %v216_v31 = vld [vmem:[%s9752_s29 + $0x50] sm:$0xff]  ;;  %v217_v32 = vld [vmem:[%s9752_s29 + $0x58] sm:$0xff] }
  0x1f   :  { %v235_v34 = vld [vmem:[%s9752_s29 + $0xe8] sm:$0xff]  ;;  %v218_v35 = vld [vmem:[%s9752_s29 + $0x60] sm:$0xff]  ;;  %v220_v39 = vld [vmem:[%s9752_s29 + $0x70] sm:$0xff] }
  0x20   :  { %5849 = vmatpush3.bf16.msra.mxu1 %v673_v20  ;;  %295 = vperm.xlu0 %7049, %v224_v13   ;;  %v211_v20 = vld [vmem:[%s9752_s29 + $0x28] sm:$0xff]  ;;  %v221_v40 = vld [vmem:[%s9752_s29 + $0x78] sm:$0xff] }
  0x21   :  { %5850 = vmatprep.subr.bf16.mxu1 %v674_v23  ;;  %298 = vperm.xlu1 %7050, %v225_v14  }
  0x24   :  { %5851 = vmatpush3.bf16.msra.mxu1 %v674_v23  ;;  %247 = vperm.xlu0 %7049, %v208_v15   ;;  %v212_v23 = vld [vmem:[%s9752_s29 + $0x30] sm:$0xff]  ;;  %v68_v15 = vlaneseq }
  0x25   :  { %5852 = vmatprep.subr.bf16.mxu1 %v675_v26  ;;  %250 = vperm.xlu1 %7050, %v209_v16  }
  0x28   :  { %5853 = vmatpush3.bf16.msra.mxu1 %v675_v26  ;;  %301 = vperm.xlu0 %7049, %v226_v17   ;;  %v231_v26 = vld [vmem:[%s9752_s29 + $0xc8] sm:$0xff] }
  0x29   :  { %6643 = vmatprep.subr.bf16.mxu1 %v6642_v33  ;;  %304 = vperm.xlu1 %7050, %v227_v18   ;;  %v7713_v18 = vand.u32 127, %v68_v15 }
  0x2b   :  { %5855 = vmatmul.mubr.bf16.vlgmr.msra.gmra.mrb[0].mxu1 %v645_v36  ;;  %v219_v36 = vld [vmem:[%s9752_s29 + $0x68] sm:$0xff]  ;;  %9761 = vst [vmem:[#allocation11_spill] sm:$0xff] %v7713_v18 }
  0x2c   :  { %5858 = vmatprep.mubr.bf16.mxu1 %v646_v37  ;;  %6645 = vmatpush3.bf16.msra.mxu1 %v6642_v33  ;;  %v234_v33 = vld [vmem:[%s9752_s29 + $0xe0] sm:$0xff]  ;;  %v236_v37 = vld [vmem:[%s9752_s29 + $0xf0] sm:$0xff] }
  0x2d   :  { %6647 = vmatprep.subr.bf16.mxu1 %v6646_v38  ;;  %253 = vperm.xlu0 %7049, %v210_v19  }
  0x2e   :  { %256 = vperm.xlu1 %7050, %v211_v20  }
  0x30   :  { %6649 = vmatpush3.bf16.msra.mxu1 %v6646_v38  ;;  %v237_v38 = vld [vmem:[%s9752_s29 + $0xf8] sm:$0xff] }
  0x31   :  { %6651 = vmatprep.subr.bf16.mxu1 %v6650_v45  ;;  %307 = vperm.xlu0 %7049, %v228_v21  }
  0x32   :  { %310 = vperm.xlu1 %7050, %v229_v22   ;;  %v9713_v22 = vmov 1.0|1.0  }
  0x33   :  { %5859 = vmatmul.mubr.bf16.gmra.mrb[4].mxu1 %v647_v48 }
  0x34   :  { %5862 = vmatprep.mubr.bf16.mxu1 %v648_v49  ;;  %6653 = vmatpush3.bf16.msra.mxu1 %v6650_v45 }
  0x35   :  { %6655 = vmatprep.subr.bf16.mxu1 %v6654_v50  ;;  %259 = vperm.xlu0 %7049, %v212_v23  }
  0x36   :  { %262 = vperm.xlu1 %7050, %v213_v24  }
  0x38   :  { %6657 = vmatpush3.bf16.msra.mxu1 %v6654_v50 }
  0x39   :  { %6659 = vmatprep.subr.bf16.mxu1 %v6658_v57  ;;  %313 = vperm.xlu0 %7049, %v230_v25  }
  0x3a   :  { %316 = vperm.xlu1 %7050, %v231_v26  }
  0x3b   :  { %5863 = vmatmul.mubr.bf16.gmra.mrb[8].mxu1 %v649_v60 }
  0x3c   :  { %5866 = vmatprep.mubr.bf16.mxu1 %v650_v61  ;;  %6661 = vmatpush3.bf16.msra.mxu1 %v6658_v57 }
  0x3d   :  { %6663 = vmatprep.subr.bf16.mxu1 %v6662_v62  ;;  %265 = vperm.xlu0 %7049, %v214_v27  }
  0x3e   :  { %268 = vperm.xlu1 %7050, %v215_v28  }
  0x40   :  { %6665 = vmatpush3.bf16.msra.mxu1 %v6662_v62 }
  0x41   :  { %6667 = vmatprep.subr.bf16.mxu1 %v6666_v3  ;;  %319 = vperm.xlu0 %7049, %v232_v29  }
  0x42   :  { %322 = vperm.xlu1 %7050, %v233_v30  }
  0x43   :  { %5867 = vmatmul.mubr.bf16.gmra.mrb[12].mxu1 %v651_v4 }
  0x44   :  { %6669 = vmatpush3.bf16.msra.mxu1 %v6666_v3 }
  0x45   :  { %6671 = vmatprep.subr.bf16.mxu1 %v6670_v7  ;;  %271 = vperm.xlu0 %7049, %v216_v31  }
  0x46   :  { %274 = vperm.xlu1 %7050, %v217_v32  }
  0x48   :  { %6673 = vmatpush3.bf16.msra.mxu1 %v6670_v7 }
  0x49   :  { %325 = vperm.xlu0 %7049, %v234_v33   ;;  %6722 = vmatprep.subr.bf16.mxu1 %v9713_v22 }
  0x4a   :  { %328 = vperm.xlu1 %7050, %v235_v34  }
  0x4d   :  { %277 = vperm.xlu0 %7049, %v218_v35  }
  0x4e   :  { %280 = vperm.xlu1 %7050, %v219_v36  }
  0x51   :  { %331 = vperm.xlu0 %7049, %v236_v37   ;;  %v7786_v37 = vshrl.u32 %v68_v15, 7 }
  0x52   :  { %334 = vperm.xlu1 %7050, %v237_v38   ;;  %v85_v38 = vld [vmem:[%s9764_s25] sm:$0x3] }
  0x55   :  { %283 = vperm.xlu0 %7049, %v220_v39   ;;  %v7792_v39 = vadd.s32 8, %v7786_v37 }
  0x56   :  { %286 = vperm.xlu1 %7050, %v221_v40   ;;  %v7795_v40 = vsub.s32 0, %v7786_v37 }
  0x58   :  { %9765 = vst [vmem:[#allocation12_spill] sm:$0xff] %v7795_v40 }
  0x97   :  { %v290_v1 = vpop.permute.xlu0 %289 }
  0x98   :  { %v242_v2 = vpop.permute.xlu1 %241  ;;  %vm352_vm4 = vcmp.eq.s32.totalorder %v290_v1, %v7713_v18 }
  0x99   :  { %vm336_vm2 = vcmp.eq.s32.totalorder %v242_v2, %v7713_v18 }
  0x9b   :  { %v293_v3 = vpop.permute.xlu0 %292 }
  0x9c   :  { %v245_v4 = vpop.permute.xlu1 %244  ;;  %vm353_vm5 = vcmp.eq.s32.totalorder %v293_v3, %v7713_v18 }
  0x9d   :  { %vm337_vm3 = vcmp.eq.s32.totalorder %v245_v4, %v7713_v18  ;;  %vm5156_vm9 = vmpackc.low %vm353_vm5, %vm352_vm4  ;;  %v7907_v4 = vadd.s32 96, %v7786_v37 }
  0x9e   :  { %5340 = vmatprep.subr.msk.bf16.mxu0 %vm5156_vm9, %v9713_v22  ;;  %vm5140_vm12 = vmpackc.low %vm337_vm3, %vm336_vm2 }
  0x9f   :  { %v296_v5 = vpop.permute.xlu0 %295  ;;  %5341 = vmatpush3.bf16.msk.msra.mxu0 %vm5140_vm12, %v9713_v22 }
  0xa0   :  { %v299_v6 = vpop.permute.xlu1 %298  ;;  %vm354_vm0 = vcmp.eq.s32.totalorder %v296_v5, %v7713_v18  ;;  %v7910_v5 = vadd.s32 104, %v7786_v37 }
  0xa1   :  { %vm355_vm1 = vcmp.eq.s32.totalorder %v299_v6, %v7713_v18 }
  0xa2   :  { %vm7721_vm6 = vmpackc.low %vm355_vm1, %vm354_vm0 }
  0xa3   :  { %v248_v7 = vpop.permute.xlu0 %247  ;;  %5342 = vmatprep.subr.msk.bf16.mxu0 %vm7721_vm6, %v9713_v22 }
  0xa4   :  { %v251_v8 = vpop.permute.xlu1 %250  ;;  %vm338_vm7 = vcmp.eq.s32.totalorder %v248_v7, %v7713_v18 }
  0xa5   :  { %vm339_vm8 = vcmp.eq.s32.totalorder %v251_v8, %v7713_v18 }
  0xa6   :  { %vm5142_vm13 = vmpackc.low %vm339_vm8, %vm338_vm7 }
  0xa7   :  { %v302_v9 = vpop.permute.xlu0 %301  ;;  %5343 = vmatpush3.bf16.msk.msra.mxu0 %vm5142_vm13, %v9713_v22 }
  0xa8   :  { %v305_v10 = vpop.permute.xlu1 %304  ;;  %vm356_vm10 = vcmp.eq.s32.totalorder %v302_v9, %v7713_v18 }
  0xa9   :  { %vm357_vm11 = vcmp.eq.s32.totalorder %v305_v10, %v7713_v18 }
  0xaa   :  { %vm5160_vm14 = vmpackc.low %vm357_vm11, %vm356_vm10 }
  0xab   :  { %5344 = vmatprep.subr.msk.bf16.mxu0 %vm5160_vm14, %v9713_v22 }
  0xac   :  { %v254_v11 = vpop.permute.xlu0 %253 }
  0xad   :  { %v257_v12 = vpop.permute.xlu1 %256  ;;  %vm340_vm15 = vcmp.eq.s32.totalorder %v254_v11, %v7713_v18 }
  0xae   :  { %vm341_vm0 = vcmp.eq.s32.totalorder %v257_v12, %v7713_v18  ;;  %v7937_v12 = vadd.s32 112, %v7786_v37 }
  0xaf   :  { %vm5144_vm3 = vmpackc.low %vm341_vm0, %vm340_vm15 }
  0xb0   :  { %v308_v13 = vpop.permute.xlu0 %307  ;;  %5345 = vmatpush3.bf16.msk.msra.mxu0 %vm5144_vm3, %v9713_v22 }
  0xb1   :  { %v311_v14 = vpop.permute.xlu1 %310  ;;  %vm358_vm1 = vcmp.eq.s32.totalorder %v308_v13, %v7713_v18  ;;  %v7940_v13 = vadd.s32 120, %v7786_v37 }
  0xb2   :  { %vm359_vm2 = vcmp.eq.s32.totalorder %v311_v14, %v7713_v18 }
  0xb3   :  { %vm5162_vm4 = vmpackc.low %vm359_vm2, %vm358_vm1 }
  0xb4   :  { %v260_v16 = vpop.permute.xlu0 %259  ;;  %5346 = vmatprep.subr.msk.bf16.mxu0 %vm5162_vm4, %v9713_v22 }
  0xb5   :  { %v263_v17 = vpop.permute.xlu1 %262  ;;  %vm342_vm5 = vcmp.eq.s32.totalorder %v260_v16, %v7713_v18 }
  0xb6   :  { %vm343_vm6 = vcmp.eq.s32.totalorder %v263_v17, %v7713_v18 }
  0xb7   :  { %vm5146_vm9 = vmpackc.low %vm343_vm6, %vm342_vm5 }
  0xb8   :  { %v314_v19 = vpop.permute.xlu0 %313  ;;  %5347 = vmatpush3.bf16.msk.msra.mxu0 %vm5146_vm9, %v9713_v22 }
  0xb9   :  { %v317_v20 = vpop.permute.xlu1 %316  ;;  %vm360_vm7 = vcmp.eq.s32.totalorder %v314_v19, %v7713_v18 }
  0xba   :  { %vm361_vm8 = vcmp.eq.s32.totalorder %v317_v20, %v7713_v18 }
  0xbb   :  { %vm5164_vm10 = vmpackc.low %vm361_vm8, %vm360_vm7 }
  0xbc   :  { %v266_v23 = vpop.permute.xlu0 %265  ;;  %5348 = vmatprep.subr.msk.bf16.mxu0 %vm5164_vm10, %v9713_v22 }
  0xbd   :  { %v269_v24 = vpop.permute.xlu1 %268  ;;  %vm344_vm11 = vcmp.eq.s32.totalorder %v266_v23, %v7713_v18 }
  0xbe   :  { %vm345_vm12 = vcmp.eq.s32.totalorder %v269_v24, %v7713_v18 }
  0xbf   :  { %vm5148_vm15 = vmpackc.low %vm345_vm12, %vm344_vm11 }
  0xc0   :  { %v320_v25 = vpop.permute.xlu0 %319  ;;  %5349 = vmatpush3.bf16.msk.msra.mxu0 %vm5148_vm15, %v9713_v22 }
  0xc1   :  { %v323_v26 = vpop.permute.xlu1 %322  ;;  %vm362_vm13 = vcmp.eq.s32.totalorder %v320_v25, %v7713_v18 }
  0xc2   :  { %vm363_vm14 = vcmp.eq.s32.totalorder %v323_v26, %v7713_v18 }
  0xc3   :  { %vm5166_vm0 = vmpackc.low %vm363_vm14, %vm362_vm13 }
  0xc4   :  { %v272_v27 = vpop.permute.xlu0 %271  ;;  %5350 = vmatprep.subr.msk.bf16.mxu0 %vm5166_vm0, %v9713_v22 }
  0xc5   :  { %v275_v28 = vpop.permute.xlu1 %274  ;;  %vm346_vm1 = vcmp.eq.s32.totalorder %v272_v27, %v7713_v18 }
  0xc6   :  { %vm347_vm2 = vcmp.eq.s32.totalorder %v275_v28, %v7713_v18 }
  0xc7   :  { %vm5150_vm5 = vmpackc.low %vm347_vm2, %vm346_vm1 }
  0xc8   :  { %v326_v29 = vpop.permute.xlu0 %325  ;;  %5351 = vmatpush3.bf16.msk.msra.mxu0 %vm5150_vm5, %v9713_v22 }
  0xc9   :  { %v329_v30 = vpop.permute.xlu1 %328  ;;  %vm364_vm3 = vcmp.eq.s32.totalorder %v326_v29, %v7713_v18 }
  0xca   :  { %vm365_vm4 = vcmp.eq.s32.totalorder %v329_v30, %v7713_v18 }
  0xcb   :  { %vm5168_vm6 = vmpackc.low %vm365_vm4, %vm364_vm3 }
  0xcc   :  { %v278_v31 = vpop.permute.xlu0 %277  ;;  %5352 = vmatprep.subr.msk.bf16.mxu0 %vm5168_vm6, %v9713_v22 }
  0xcd   :  { %v281_v32 = vpop.permute.xlu1 %280  ;;  %vm348_vm7 = vcmp.eq.s32.totalorder %v278_v31, %v7713_v18 }
  0xce   :  { %vm349_vm8 = vcmp.eq.s32.totalorder %v281_v32, %v7713_v18 }
  0xcf   :  { %vm5152_vm11 = vmpackc.low %vm349_vm8, %vm348_vm7 }
  0xd0   :  { %v332_v33 = vpop.permute.xlu0 %331  ;;  %5353 = vmatpush3.bf16.msk.msra.mxu0 %vm5152_vm11, %v9713_v22 }
  0xd1   :  { %v335_v34 = vpop.permute.xlu1 %334  ;;  %vm366_vm9 = vcmp.eq.s32.totalorder %v332_v33, %v7713_v18  ;;  %v9766_v33 = vmov 0 }
  0xd2   :  { %vm367_vm10 = vcmp.eq.s32.totalorder %v335_v34, %v7713_v18 }
  0xd3   :  { %vm5170_vm12 = vmpackc.low %vm367_vm10, %vm366_vm9 }
  0xd4   :  { %v284_v35 = vpop.permute.xlu0 %283  ;;  %5354 = vmatprep.subr.msk.bf16.mxu0 %vm5170_vm12, %v9713_v22 }
  0xd5   :  { %v287_v36 = vpop.permute.xlu1 %286  ;;  %vm350_vm13 = vcmp.eq.s32.totalorder %v284_v35, %v7713_v18 }
  0xd6   :  { %vm351_vm14 = vcmp.eq.s32.totalorder %v287_v36, %v7713_v18 }
  0xd7   :  { %vm5154_vm15 = vmpackc.low %vm351_vm14, %vm350_vm13 }
  0xd8   :  { %5355 = vmatpush3.bf16.msk.msra.mxu0 %vm5154_vm15, %v9713_v22 }
  0xfe   :  { %v5856_v41 = vpop.f32.mrb[0].mxu1 }
  0xff   :  { %v710_v42 = vpop.f32.mrb[1].mxu1 }
 0x100   :  { %v5857_v43 = vpop.f32.mrb[2].mxu1  ;;  %5902 = vmatprep.mubr.f32.mxu1 %v710_v42 }
 0x101   :  { %v7696_v44 = vpack.c.bf16 %v5857_v43, %v5856_v41  ;;  %v713_v45 = vpop.f32.mrb[3].mxu1 }
 0x102   :  { %v7698_v46 = vpack.c.bf16 %v713_v45, %v710_v42  ;;  %5903 = vmatmul.mubr.f32.vlgmr.msra.gmra.mrb[16].mxu1 %v713_v45  ;;  %v7799_v42 = vadd.s32 16, %v7786_v37  ;;  %v7805_v45 = vrot.slane %v85_v38, %v7795_v40 }
 0x103   :  { %9753 = vst [vmem:[#allocation3_spill] sm:$0xff] %v7696_v44  ;;  %5905 = vmatprep.mubr.f32.mxu1 %v5856_v41  ;;  %6723 = vmatpush3.bf16.msra.mxu1 %v9713_v22  ;;  %v92_v41 = vsub.s32 1, %v7786_v37 }
 0x104   :  { %9754 = vst [vmem:[#allocation4_spill] sm:$0xff] %v7698_v46  ;;  %6724 = vmatprep.subr.bf16.mxu1 %v9713_v22  ;;  %vm94_vm2 = vcmp.eq.s32.totalorder %v7786_v37, %v7805_v45  ;;  %vm96_vm3 = vcmp.eq.s32.totalorder %v7792_v39, %v7805_v45  ;;  %vm98_vm9 = vcmp.eq.s32.totalorder %v7799_v42, %v7805_v45 }
 0x105   :  { %vm5174_vm7 = vmpackc.low %vm96_vm3, %vm94_vm2 }
 0x106   :  { %v5860_v47 = vpop.f32.mrb[4].mxu1  ;;  %5906 = vmatmul.mubr.f32.gmra.mrb[18].mxu1 %v5857_v43  ;;  %v7802_v43 = vadd.s32 24, %v7786_v37 }
 0x107   :  { %v726_v48 = vpop.f32.mrb[5].mxu1  ;;  %6725 = vmatpush3.bf16.msra.mxu1 %v9713_v22 }
 0x108   :  { %v5861_v49 = vpop.f32.mrb[6].mxu1  ;;  %5908 = vmatprep.mubr.f32.mxu1 %v726_v48  ;;  %6726 = vmatprep.subr.bf16.mxu1 %v9713_v22  ;;  %vm100_vm10 = vcmp.eq.s32.totalorder %v7802_v43, %v7805_v45 }
 0x109   :  { %v7700_v50 = vpack.c.bf16 %v5861_v49, %v5860_v47  ;;  %v729_v51 = vpop.f32.mrb[7].mxu1  ;;  %vm5178_vm13 = vmpackc.low %vm100_vm10, %vm98_vm9 }
 0x10a   :  { %v7702_v52 = vpack.c.bf16 %v729_v51, %v726_v48  ;;  %5909 = vmatmul.mubr.f32.gmra.mrb[20].mxu1 %v729_v51  ;;  %v7823_v48 = vadd.s32 32, %v7786_v37  ;;  %v7839_v51 = vadd.s32 48, %v7786_v37 }
 0x10b   :  { %9755 = vst [vmem:[#allocation5_spill] sm:$0xff] %v7700_v50  ;;  %5911 = vmatprep.mubr.f32.mxu1 %v5860_v47  ;;  %6727 = vmatpush3.bf16.msra.mxu1 %v9713_v22  ;;  %v7807_v47 = vrot.slane %v85_v38, %v92_v41 }
 0x10c   :  { %9756 = vst [vmem:[#allocation6_spill] sm:$0xff] %v7702_v52  ;;  %6728 = vmatprep.subr.bf16.mxu1 %v9713_v22  ;;  %vm102_vm15 = vcmp.eq.s32.totalorder %v7823_v48, %v7805_v45 }
 0x10d   :  { %vm95_vm0 = vcmp.eq.s32.totalorder %v7786_v37, %v7807_v47  ;;  %vm97_vm1 = vcmp.eq.s32.totalorder %v7792_v39, %v7807_v47  ;;  %vm99_vm5 = vcmp.eq.s32.totalorder %v7799_v42, %v7807_v47  ;;  %vm101_vm6 = vcmp.eq.s32.totalorder %v7802_v43, %v7807_v47 }
 0x10e   :  { %v5864_v53 = vpop.f32.mrb[8].mxu1  ;;  %5912 = vmatmul.mubr.f32.gmra.mrb[22].mxu1 %v5861_v49  ;;  %vm5172_vm4 = vmpackc.low %vm97_vm1, %vm95_vm0  ;;  %v7826_v49 = vadd.s32 40, %v7786_v37  ;;  %vm103_vm11 = vcmp.eq.s32.totalorder %v7823_v48, %v7807_v47  ;;  %vm107_vm1 = vcmp.eq.s32.totalorder %v7839_v51, %v7807_v47 }
 0x10f   :  { %v742_v54 = vpop.f32.mrb[9].mxu1  ;;  %6729 = vmatpush3.bf16.msra.mxu1 %v9713_v22  ;;  %5173 = vmatprep.mubr.msk.bf16.mxu0 %vm5172_vm4, %v9713_v22  ;;  %vm5176_vm8 = vmpackc.low %vm101_vm6, %vm99_vm5  ;;  %vm106_vm5 = vcmp.eq.s32.totalorder %v7839_v51, %v7805_v45 }
 0x110   :  { %v5865_v55 = vpop.f32.mrb[10].mxu1  ;;  %5914 = vmatprep.mubr.f32.mxu1 %v742_v54  ;;  %6730 = vmatprep.subr.bf16.mxu1 %v9713_v22  ;;  %vm105_vm12 = vcmp.eq.s32.totalorder %v7826_v49, %v7807_v47  ;;  %vm104_vm0 = vcmp.eq.s32.totalorder %v7826_v49, %v7805_v45 }
 0x111   :  { %v7704_v56 = vpack.c.bf16 %v5865_v55, %v5864_v53  ;;  %v745_v57 = vpop.f32.mrb[11].mxu1  ;;  %5175 = vmatmul.mubr.msk.bf16.vlgmr.msra.gmra.mrb[0].mxu0 %vm5174_vm7, %v9713_v22  ;;  %vm5180_vm14 = vmpackc.low %vm105_vm12, %vm103_vm11 }
 0x112   :  { %v7706_v58 = vpack.c.bf16 %v745_v57, %v742_v54  ;;  %5915 = vmatmul.mubr.f32.gmra.mrb[24].mxu1 %v745_v57  ;;  %5177 = vmatprep.mubr.msk.bf16.mxu0 %vm5176_vm8, %v9713_v22  ;;  %vm5182_vm3 = vmpackc.low %vm104_vm0, %vm102_vm15  ;;  %v7862_v54 = vadd.s32 64, %v7786_v37  ;;  %v7878_v57 = vadd.s32 80, %v7786_v37 }
 0x113   :  { %9757 = vst [vmem:[#allocation7_spill] sm:$0xff] %v7704_v56  ;;  %5917 = vmatprep.mubr.f32.mxu1 %v5864_v53  ;;  %6731 = vmatpush3.bf16.msra.mxu1 %v9713_v22  ;;  %v7842_v53 = vadd.s32 56, %v7786_v37 }
 0x114   :  { %9758 = vst [vmem:[#allocation8_spill] sm:$0xff] %v7706_v58  ;;  %6732 = vmatprep.subr.bf16.mxu1 %v9713_v22  ;;  %vm111_vm8 = vcmp.eq.s32.totalorder %v7862_v54, %v7807_v47  ;;  %vm110_vm11 = vcmp.eq.s32.totalorder %v7862_v54, %v7805_v45 }
 0x115   :  { %vm109_vm2 = vcmp.eq.s32.totalorder %v7842_v53, %v7807_v47  ;;  %vm108_vm6 = vcmp.eq.s32.totalorder %v7842_v53, %v7805_v45 }
 0x116   :  { %v5868_v59 = vpop.f32.mrb[12].mxu1  ;;  %5918 = vmatmul.mubr.f32.gmra.mrb[26].mxu1 %v5865_v55  ;;  %vm5184_vm4 = vmpackc.low %vm109_vm2, %vm107_vm1  ;;  %v7865_v55 = vadd.s32 72, %v7786_v37  ;;  %vm114_vm1 = vcmp.eq.s32.totalorder %v7878_v57, %v7805_v45 }
 0x117   :  { %v758_v60 = vpop.f32.mrb[13].mxu1  ;;  %6733 = vmatpush3.bf16.msra.mxu1 %v9713_v22  ;;  %vm5186_vm7 = vmpackc.low %vm108_vm6, %vm106_vm5  ;;  %vm121_vm5 = vcmp.eq.s32.totalorder %v7910_v5, %v7807_v47 }
 0x118   :  { %v5869_v61 = vpop.f32.mrb[14].mxu1  ;;  %5920 = vmatprep.mubr.f32.mxu1 %v758_v60  ;;  %6734 = vmatprep.subr.bf16.mxu1 %v9713_v22  ;;  %vm113_vm9 = vcmp.eq.s32.totalorder %v7865_v55, %v7807_v47  ;;  %vm112_vm12 = vcmp.eq.s32.totalorder %v7865_v55, %v7805_v45 }
 0x119   :  { %v7708_v62 = vpack.c.bf16 %v5869_v61, %v5868_v59  ;;  %v761_v63 = vpop.f32.mrb[15].mxu1  ;;  %5179 = vmatmul.mubr.msk.bf16.gmra.mrb[4].mxu0 %vm5178_vm13, %v9713_v22  ;;  %vm5188_vm10 = vmpackc.low %vm113_vm9, %vm111_vm8  ;;  %vm120_vm8 = vcmp.eq.s32.totalorder %v7910_v5, %v7805_v45 }
 0x11a   :  { %v7710_v0 = vpack.c.bf16 %v761_v63, %v758_v60  ;;  %5921 = vmatmul.mubr.f32.gmra.mrb[28].mxu1 %v761_v63  ;;  %5181 = vmatprep.mubr.msk.bf16.mxu0 %vm5180_vm14, %v9713_v22  ;;  %vm5190_vm13 = vmpackc.low %vm112_vm12, %vm110_vm11  ;;  %vm115_vm14 = vcmp.eq.s32.totalorder %v7878_v57, %v7807_v47  ;;  %vm125_vm11 = vcmp.eq.s32.totalorder %v7940_v13, %v7807_v47 }
 0x11b   :  { %9759 = vst [vmem:[#allocation9_spill] sm:$0xff] %v7708_v62  ;;  %5923 = vmatprep.mubr.f32.mxu1 %v5868_v59  ;;  %6735 = vmatpush3.bf16.msra.mxu1 %v9713_v22  ;;  %v7881_v59 = vadd.s32 88, %v7786_v37 }
 0x11c   :  { %9760 = vst [vmem:[#allocation10_spill] sm:$0xff] %v7710_v0  ;;  %6736 = vmatprep.subr.bf16.mxu1 %v9713_v22 }
 0x11d   :  { %vm117_vm15 = vcmp.eq.s32.totalorder %v7881_v59, %v7807_v47  ;;  %vm116_vm2 = vcmp.eq.s32.totalorder %v7881_v59, %v7805_v45 }
 0x11e   :  { %5924 = vmatmul.mubr.f32.gmra.mrb[30].mxu1 %v5869_v61  ;;  %vm5192_vm0 = vmpackc.low %vm117_vm15, %vm115_vm14  ;;  %vm124_vm14 = vcmp.eq.s32.totalorder %v7940_v13, %v7805_v45 }
 0x11f   :  { %6737 = vmatpush3.bf16.msra.mxu1 %v9713_v22 }
 0x121   :  { %5183 = vmatmul.mubr.msk.bf16.gmra.mrb[8].mxu0 %vm5182_vm3, %v9713_v22  ;;  %vm5194_vm3 = vmpackc.low %vm116_vm2, %vm114_vm1  ;;  %vm1079_vm1 = vcmask 15360  }
 0x122   :  { %5185 = vmatprep.mubr.msk.bf16.mxu0 %vm5184_vm4, %v9713_v22  ;;  %vm119_vm4 = vcmp.eq.s32.totalorder %v7907_v4, %v7807_v47  ;;  %vm8017_vm2 = vmpackc.low %vm1079_vm1, %vm1079_vm1 }
 0x123   :  { %vm5196_vm6 = vmpackc.low %vm121_vm5, %vm119_vm4  ;;  %v9767_v33 = vsel %vm8017_vm2, 4294967295, %v9766_v33  ;;  %vm449_vm5 = vcmp.eq.s32.totalorder %v7792_v39, %v7713_v18 }
 0x124   :  { %9768 = vst [vmem:[#allocation13_spill] sm:$0xff] %v9767_v33 }
 0x129   :  { %5187 = vmatmul.mubr.msk.bf16.gmra.mrb[12].mxu0 %vm5186_vm7, %v9713_v22  ;;  %vm118_vm7 = vcmp.eq.s32.totalorder %v7907_v4, %v7805_v45 }
 0x12a   :  { %5189 = vmatprep.mubr.msk.bf16.mxu0 %vm5188_vm10, %v9713_v22  ;;  %vm5198_vm9 = vmpackc.low %vm120_vm8, %vm118_vm7  ;;  %vm123_vm10 = vcmp.eq.s32.totalorder %v7937_v12, %v7807_v47  ;;  %vm450_vm7 = vcmp.eq.s32.totalorder %v7799_v42, %v7713_v18  ;;  %vm451_vm8 = vcmp.eq.s32.totalorder %v7802_v43, %v7713_v18 }
 0x12b   :  { %vm5200_vm12 = vmpackc.low %vm125_vm11, %vm123_vm10  ;;  %vm453_vm10 = vcmp.eq.s32.totalorder %v7826_v49, %v7713_v18  ;;  %vm454_vm11 = vcmp.eq.s32.totalorder %v7839_v51, %v7713_v18 }
 0x131   :  { %5191 = vmatmul.mubr.msk.bf16.gmra.mrb[16].mxu0 %vm5190_vm13, %v9713_v22  ;;  %vm122_vm13 = vcmp.eq.s32.totalorder %v7937_v12, %v7805_v45 }
 0x132   :  { %5193 = vmatprep.mubr.msk.bf16.mxu0 %vm5192_vm0, %v9713_v22  ;;  %vm5202_vm15 = vmpackc.low %vm124_vm14, %vm122_vm13  ;;  %vm998_vm0 = vcmask 7168  }
 0x139   :  { %5195 = vmatmul.mubr.msk.bf16.gmra.mrb[20].mxu0 %vm5194_vm3, %v9713_v22  ;;  %vm462_vm3 = vcmp.eq.s32.totalorder %v7937_v12, %v7713_v18 }
 0x13a   :  { %5197 = vmatprep.mubr.msk.bf16.mxu0 %vm5196_vm6, %v9713_v22  ;;  %vm448_vm6 = vcmp.eq.s32.totalorder %v7786_v37, %v7713_v18 }
 0x141   :  { %5199 = vmatmul.mubr.msk.bf16.gmra.mrb[24].mxu0 %vm5198_vm9, %v9713_v22  ;;  %vm452_vm9 = vcmp.eq.s32.totalorder %v7823_v48, %v7713_v18 }
 0x142   :  { %5201 = vmatprep.mubr.msk.bf16.mxu0 %vm5200_vm12, %v9713_v22 }
 0x149   :  { %5203 = vmatmul.mubr.msk.bf16.gmra.mrb[28].mxu0 %vm5202_vm15, %v9713_v22  ;;  %vm455_vm15 = vcmp.eq.s32.totalorder %v7842_v53, %v7713_v18 }
 0x1d5   :  { %v7883_v60 = vpop.f32.mrb[16].mxu1 }
 0x1d6   :  { %v7889_v61 = vpop.f32.mrb[17].mxu1 }
 0x1d7   :  { %v7051_v63 = vpack.i.bf16 %v7883_v60, %v7889_v61 }
 0x1d9   :  { %7052 = vrot.lane.b32.xlu0 %v7051_v63, %s7337_s27  ;;  %v7900_v1 = vpop.f32.mrb[18].mxu1 }
 0x1da   :  { %v7902_v2 = vpop.f32.mrb[19].mxu1 }
 0x1db   :  { %v7056_v3 = vpack.i.bf16 %v7900_v1, %v7902_v2 }
 0x1dd   :  { %7057 = vrot.lane.b32.xlu1 %v7056_v3, %s7337_s27  ;;  %v7913_v6 = vpop.f32.mrb[20].mxu1 }
 0x1de   :  { %v7919_v7 = vpop.f32.mrb[21].mxu1 }
 0x1df   :  { %v7061_v8 = vpack.i.bf16 %v7913_v6, %v7919_v7 }
 0x1e1   :  { %v7929_v9 = vpop.f32.mrb[22].mxu1  ;;  %7062 = vrot.lane.b32.xlu0 %v7061_v8, %s7337_s27 }
 0x1e2   :  { %v7932_v10 = vpop.f32.mrb[23].mxu1 }
 0x1e3   :  { %v7066_v11 = vpack.i.bf16 %v7929_v9, %v7932_v10 }
 0x1e5   :  { %7067 = vrot.lane.b32.xlu1 %v7066_v11, %s7337_s27  ;;  %v7943_v14 = vpop.f32.mrb[24].mxu1 }
 0x1e6   :  { %v7949_v15 = vpop.f32.mrb[25].mxu1 }
 0x1e7   :  { %v7071_v16 = vpack.i.bf16 %v7943_v14, %v7949_v15 }
 0x1e9   :  { %v7959_v17 = vpop.f32.mrb[26].mxu1  ;;  %7072 = vrot.lane.b32.xlu0 %v7071_v16, %s7337_s27 }
 0x1ea   :  { %v7962_v19 = vpop.f32.mrb[27].mxu1 }
 0x1eb   :  { %v7076_v20 = vpack.i.bf16 %v7959_v17, %v7962_v19 }
 0x1ed   :  { %v7966_v21 = vpop.f32.mrb[28].mxu1  ;;  %7077 = vrot.lane.b32.xlu1 %v7076_v20, %s7337_s27 }
 0x1ee   :  { %v7969_v23 = vpop.f32.mrb[29].mxu1 }
 0x1ef   :  { %v7081_v24 = vpack.i.bf16 %v7966_v21, %v7969_v23 }
 0x1f1   :  { %7082 = vrot.lane.b32.xlu0 %v7081_v24, %s7337_s27  ;;  %v7974_v25 = vpop.f32.mrb[30].mxu1 }
 0x1f2   :  { %v7976_v26 = vpop.f32.mrb[31].mxu1 }
 0x1f3   :  { %v7086_v27 = vpack.i.bf16 %v7974_v25, %v7976_v26 }
 0x1f5   :  { %950 = vrot.lane.b32.xlu0 %v7889_v61, %s7338_s1  ;;  %7087 = vrot.lane.b32.xlu1 %v7086_v27, %s7337_s27 }
 0x1f9   :  { %954 = vrot.lane.b32.xlu0 %v7902_v2, %s7338_s1  ;;  %952 = vrot.lane.b32.xlu1 %v7883_v60, %s7338_s1 }
 0x1fd   :  { %958 = vrot.lane.b32.xlu0 %v7919_v7, %s7338_s1  ;;  %956 = vrot.lane.b32.xlu1 %v7900_v1, %s7338_s1 }
 0x201   :  { %962 = vrot.lane.b32.xlu0 %v7932_v10, %s7338_s1  ;;  %960 = vrot.lane.b32.xlu1 %v7913_v6, %s7338_s1 }
 0x205   :  { %966 = vrot.lane.b32.xlu0 %v7949_v15, %s7338_s1  ;;  %964 = vrot.lane.b32.xlu1 %v7929_v9, %s7338_s1 }
 0x209   :  { %970 = vrot.lane.b32.xlu0 %v7962_v19, %s7338_s1  ;;  %968 = vrot.lane.b32.xlu1 %v7943_v14, %s7338_s1 }
 0x20d   :  { %974 = vrot.lane.b32.xlu0 %v7969_v23, %s7338_s1  ;;  %972 = vrot.lane.b32.xlu1 %v7959_v17, %s7338_s1 }
 0x211   :  { %978 = vrot.lane.b32.xlu0 %v7976_v26, %s7338_s1  ;;  %976 = vrot.lane.b32.xlu1 %v7966_v21, %s7338_s1 }
 0x215   :  { %980 = vrot.lane.b32.xlu1 %v7974_v25, %s7338_s1 }
 0x24b   :  { %v7053_v28 = vpop.permute.xlu0 %7052 }
 0x24c   :  { %v7055_v29 = vunpack.i.h.bf16 %v7053_v28  ;;  %v7054_v30 = vunpack.i.l.bf16 %v7053_v28 }
 0x24e   :  { %v1064_v31 = vsel %vm998_vm0, 1.0, %v7055_v29  ;;  %v1063_v32 = vsel %vm998_vm0, 1.0, %v7054_v30 }
 0x24f   :  { %v6674_v34 = vpack.c.bf16 %v1064_v31, %v1063_v32  ;;  %v7058_v35 = vpop.permute.xlu1 %7057 }
 0x250   :  { %v7060_v36 = vunpack.i.h.bf16 %v7058_v35  ;;  %v7059_v38 = vunpack.i.l.bf16 %v7058_v35 }
 0x251   :  { %6676 = vmatprep.subr.msk.bf16.mxu0 %vm8017_vm2, %v6674_v34 }
 0x252   :  { %v1066_v41 = vsel %vm998_vm0, 1.0, %v7060_v36  ;;  %v1065_v45 = vsel %vm998_vm0, 1.0, %v7059_v38  ;;  %6679 = vmatpush3.bf16.xpose.msk.msra.mxu0 %vm8017_vm2, %v6674_v34 }
 0x253   :  { %v6680_v47 = vpack.c.bf16 %v1066_v41, %v1065_v45  ;;  %v7063_v63 = vpop.permute.xlu0 %7062 }
 0x254   :  { %v7065_v3 = vunpack.i.h.bf16 %v7063_v63  ;;  %v7064_v8 = vunpack.i.l.bf16 %v7063_v63 }
 0x255   :  { %6682 = vmatprep.subr.msk.bf16.mxu0 %vm8017_vm2, %v6680_v47 }
 0x256   :  { %v1068_v11 = vsel %vm998_vm0, 1.0, %v7065_v3  ;;  %v1067_v16 = vsel %vm998_vm0, 1.0, %v7064_v8 }
 0x257   :  { %v6686_v20 = vpack.c.bf16 %v1068_v11, %v1067_v16  ;;  %v7068_v24 = vpop.permute.xlu1 %7067 }
 0x258   :  { %v7070_v27 = vunpack.i.h.bf16 %v7068_v24  ;;  %v7069_v28 = vunpack.i.l.bf16 %v7068_v24 }
 0x25a   :  { %6685 = vmatpush3.bf16.xpose.msk.msra.mxu0 %vm8017_vm2, %v6680_v47  ;;  %v1070_v30 = vsel %vm998_vm0, 1.0, %v7070_v27  ;;  %v1069_v31 = vsel %vm998_vm0, 1.0, %v7069_v28 }
 0x25b   :  { %6688 = vmatprep.subr.msk.bf16.mxu0 %vm8017_vm2, %v6686_v20  ;;  %v7073_v29 = vpop.permute.xlu0 %7072  ;;  %v6692_v35 = vpack.c.bf16 %v1070_v30, %v1069_v31 }
 0x25c   :  { %v7075_v32 = vunpack.i.h.bf16 %v7073_v29  ;;  %v7074_v34 = vunpack.i.l.bf16 %v7073_v29 }
 0x25e   :  { %v1072_v41 = vsel %vm998_vm0, 1.0, %v7075_v32  ;;  %v1071_v45 = vsel %vm998_vm0, 1.0, %v7074_v34 }
 0x25f   :  { %v7078_v36 = vpop.permute.xlu1 %7077  ;;  %v6698_v47 = vpack.c.bf16 %v1072_v41, %v1071_v45 }
 0x260   :  { %v7080_v11 = vunpack.i.h.bf16 %v7078_v36  ;;  %v7079_v16 = vunpack.i.l.bf16 %v7078_v36 }
 0x262   :  { %6691 = vmatpush3.bf16.xpose.msk.msra.mxu0 %vm8017_vm2, %v6686_v20  ;;  %v1074_v29 = vsel %vm998_vm0, 1.0, %v7080_v11  ;;  %v1073_v30 = vsel %vm998_vm0, 1.0, %v7079_v16 }
 0x263   :  { %6694 = vmatprep.subr.msk.bf16.mxu0 %vm8017_vm2, %v6692_v35  ;;  %v7083_v38 = vpop.permute.xlu0 %7082  ;;  %v6704_v34 = vpack.c.bf16 %v1074_v29, %v1073_v30 }
 0x264   :  { %v7085_v31 = vunpack.i.h.bf16 %v7083_v38  ;;  %v7084_v32 = vunpack.i.l.bf16 %v7083_v38 }
 0x266   :  { %v1076_v45 = vsel %vm998_vm0, 1.0, %v7085_v31 }
 0x267   :  { %v951_v63 = vpop.permute.xlu0 %950  ;;  %v7088_v3 = vpop.permute.xlu1 %7087 }
 0x268   :  { %v999_v8 = vsel %vm998_vm0, %v951_v63, 1.0  ;;  %v1916_v24 = vsel %vm998_vm0, 1.0, %v951_v63  ;;  %v1075_v63 = vsel %vm998_vm0, 1.0, %v7084_v32  ;;  %v7089_v29 = vunpack.i.l.bf16 %v7088_v3 }
 0x269   :  { %5958 = vmatprep.mubr.msk.f32.mxu0 %vm1079_vm1, %v999_v8  ;;  %v6710_v38 = vpack.c.bf16 %v1076_v45, %v1075_v63 }
 0x26a   :  { %6697 = vmatpush3.bf16.xpose.msk.msra.mxu0 %vm8017_vm2, %v6692_v35  ;;  %v5356_v35 = vpop.f32.mrb[0].mxu0 }
 0x26b   :  { %v953_v20 = vpop.permute.xlu1 %952  ;;  %6700 = vmatprep.subr.msk.bf16.mxu0 %vm8017_vm2, %v6698_v47  ;;  %v5357_v36 = vpop.f32.mrb[1].mxu0 }
 0x26c   :  { %v1917_v27 = vsel %vm998_vm0, 1.0, %v953_v20  ;;  %v8062_v41 = vadd.f32 %v5357_v36, %v5356_v35  ;;  %v5359_v8 = vpop.f32.mrb[2].mxu0  ;;  %v1077_v36 = vsel %vm998_vm0, 1.0, %v7089_v29 }
 0x26d   :  { %v8051_v28 = vpack.c.bf16 %v1917_v27, %v1916_v24  ;;  %v5360_v11 = vpop.f32.mrb[3].mxu0  ;;  %v7090_v27 = vunpack.i.h.bf16 %v7088_v3  ;;  %v8078_v3 = vpop.permute.xlu0 %954 }
 0x26e   :  { %v8066_v16 = vadd.f32 %v5360_v11, %v5359_v8  ;;  %v5362_v24 = vpop.f32.mrb[4].mxu0 }
 0x26f   :  { %6740 = vmatprep.subr.msk.bf16.mxu1 %vm8017_vm2, %v8051_v28  ;;  %v1078_v32 = vsel %vm998_vm0, 1.0, %v7090_v27 }
 0x270   :  { %v6716_v45 = vpack.c.bf16 %v1078_v32, %v1077_v36 }
 0x272   :  { %6703 = vmatpush3.bf16.xpose.msk.msra.mxu0 %vm8017_vm2, %v6698_v47  ;;  %v5363_v47 = vpop.f32.mrb[5].mxu0 }
 0x273   :  { %6706 = vmatprep.subr.msk.bf16.mxu0 %vm8017_vm2, %v6704_v34  ;;  %v8072_v30 = vadd.f32 %v5363_v47, %v5362_v24  ;;  %v5365_v31 = vpop.f32.mrb[6].mxu0  ;;  %v8086_v47 = vpop.permute.xlu1 %956 }
 0x274   :  { %v5366_v35 = vpop.f32.mrb[7].mxu0 }
 0x275   :  { %v8076_v8 = vadd.f32 %v5366_v35, %v5365_v31  ;;  %v5368_v63 = vpop.f32.mrb[8].mxu0  ;;  %v8090_v31 = vpop.permute.xlu0 %958 }
 0x276   :  { %9769 = vst [vmem:[#allocation14_spill] sm:$0xff] %v8090_v31 }
 0x279   :  { %v8101_v40 = vpop.permute.xlu0 %962 }
 0x27a   :  { %6709 = vmatpush3.bf16.xpose.msk.msra.mxu0 %vm8017_vm2, %v6704_v34  ;;  %v5369_v34 = vpop.f32.mrb[9].mxu0  ;;  %9771 = vst [vmem:[#allocation16_spill] sm:$0xff] %v8101_v40 }
 0x27b   :  { %6712 = vmatprep.subr.msk.bf16.mxu0 %vm8017_vm2, %v6710_v38  ;;  %v8084_v11 = vadd.f32 %v5369_v34, %v5368_v63  ;;  %v5371_v24 = vpop.f32.mrb[10].mxu0 }
 0x27c   :  { %v5372_v27 = vpop.f32.mrb[11].mxu0 }
 0x27d   :  { %v8088_v29 = vadd.f32 %v5372_v27, %v5371_v24  ;;  %v5374_v35 = vpop.f32.mrb[12].mxu0  ;;  %v1000_v24 = vsel %vm998_vm0, %v953_v20, 1.0  ;;  %v1003_v20 = vsel %vm998_vm0, %v8090_v31, 1.0 }
 0x27e   :  { %v5375_v32 = vpop.f32.mrb[13].mxu0 }
 0x27f   :  { %v8097_v36 = vadd.f32 %v5375_v32, %v5374_v35  ;;  %v5377_v63 = vpop.f32.mrb[14].mxu0  ;;  %v8112_v35 = vpop.permute.xlu0 %966  ;;  %v1002_v32 = vsel %vm998_vm0, %v8086_v47, 1.0 }
 0x280   :  { %v5378_v34 = vpop.f32.mrb[15].mxu0  ;;  %9773 = vst [vmem:[#allocation18_spill] sm:$0xff] %v8112_v35 }
 0x281   :  { %v8099_v22 = vadd.f32 %v5378_v34, %v5377_v63 }
 0x282   :  { %6715 = vmatpush3.bf16.xpose.msk.msra.mxu0 %vm8017_vm2, %v6710_v38  ;;  %v8094_v38 = vpop.permute.xlu1 %960 }
 0x283   :  { %6718 = vmatprep.subr.msk.bf16.mxu0 %vm8017_vm2, %v6716_v45  ;;  %9770 = vst [vmem:[#allocation15_spill] sm:$0xff] %v8094_v38  ;;  %v1004_v34 = vsel %vm998_vm0, %v8094_v38, 1.0 }
 0x286   :  { %v8104_v27 = vpop.permute.xlu1 %964 }
 0x287   :  { %9772 = vst [vmem:[#allocation17_spill] sm:$0xff] %v8104_v27 }
 0x28a   :  { %6721 = vmatpush3.bf16.xpose.msk.msra.mxu0 %vm8017_vm2, %v6716_v45  ;;  %v1001_v45 = vsel %vm998_vm0, %v8078_v3, 1.0  ;;  %v8121_v63 = vpop.permute.xlu1 %968 }
 0x28b   :  { %6038 = vmatprep.subr.bf16.mxu0 %v7698_v46  ;;  %9774 = vst [vmem:[#allocation19_spill] sm:$0xff] %v8121_v63 }
 0x291   :  { %5959 = vmatmul.mubr.msk.f32.vlgmr.msra.gmra.mrb[32].mxu0 %vm1079_vm1, %v1000_v24  ;;  %v1005_v24 = vsel %vm998_vm0, %v8101_v40, 1.0 }
 0x292   :  { %5961 = vmatprep.mubr.msk.f32.mxu0 %vm1079_vm1, %v1001_v45  ;;  %6039 = vmatpush3.bf16.msra.mxu0 %v7698_v46  ;;  %v8129_v45 = vpop.permute.xlu0 %970 }
 0x293   :  { %6040 = vmatprep.subr.bf16.mxu0 %v7696_v44  ;;  %9775 = vst [vmem:[#allocation20_spill] sm:$0xff] %v8129_v45  ;;  %v1009_v46 = vsel %vm998_vm0, %v8129_v45, 1.0 }
 0x295   :  { %5962 = vmatmul.mubr.msk.f32.gmra.mrb[34].mxu0 %vm1079_vm1, %v1002_v32  ;;  %v1006_v32 = vsel %vm998_vm0, %v8104_v27, 1.0 }
 0x296   :  { %5964 = vmatprep.mubr.msk.f32.mxu0 %vm1079_vm1, %v1003_v20  ;;  %6041 = vmatpush3.bf16.msra.mxu0 %v7696_v44  ;;  %v8136_v20 = vpop.permute.xlu1 %972 }
 0x297   :  { %6042 = vmatprep.subr.bf16.mxu0 %v7702_v52  ;;  %9776 = vst [vmem:[#allocation21_spill] sm:$0xff] %v8136_v20 }
 0x299   :  { %5965 = vmatmul.mubr.msk.f32.gmra.mrb[36].mxu0 %vm1079_vm1, %v1004_v34  ;;  %v1007_v34 = vsel %vm998_vm0, %v8112_v35, 1.0 }
 0x29a   :  { %5967 = vmatprep.mubr.msk.f32.mxu0 %vm1079_vm1, %v1005_v24  ;;  %6043 = vmatpush3.bf16.msra.mxu0 %v7702_v52  ;;  %v8144_v24 = vpop.permute.xlu0 %974  ;;  %v1008_v52 = vsel %vm998_vm0, %v8121_v63, 1.0 }
 0x29b   :  { %6044 = vmatprep.subr.bf16.mxu0 %v7700_v50  ;;  %9777 = vst [vmem:[#allocation22_spill] sm:$0xff] %v8144_v24 }
 0x29d   :  { %5968 = vmatmul.mubr.msk.f32.gmra.mrb[38].mxu0 %vm1079_vm1, %v1006_v32  ;;  %v8153_v32 = vpop.permute.xlu1 %976 }
 0x29e   :  { %5970 = vmatprep.mubr.msk.f32.mxu0 %vm1079_vm1, %v1007_v34  ;;  %6045 = vmatpush3.bf16.msra.mxu0 %v7700_v50  ;;  %9778 = vst [vmem:[#allocation23_spill] sm:$0xff] %v8153_v32  ;;  %v5380_v34 = vpop.f32.mrb[16].mxu0  ;;  %v1010_v50 = vsel %vm998_vm0, %v8136_v20, 1.0 }
 0x29f   :  { %6046 = vmatprep.subr.bf16.mxu0 %v7706_v58  ;;  %v5381_v44 = vpop.f32.mrb[17].mxu0 }
 0x2a0   :  { %v8161_v35 = vadd.f32 %v5381_v44, %v5380_v34  ;;  %v5383_v45 = vpop.f32.mrb[18].mxu0 }
 0x2a1   :  { %5971 = vmatmul.mubr.msk.f32.gmra.mrb[40].mxu0 %vm1079_vm1, %v1008_v52  ;;  %v1011_v52 = vsel %vm998_vm0, %v8144_v24, 1.0  ;;  %v8172_v20 = vpop.permute.xlu1 %980 }
 0x2a2   :  { %5973 = vmatprep.mubr.msk.f32.mxu0 %vm1079_vm1, %v1009_v46  ;;  %6047 = vmatpush3.bf16.msra.mxu0 %v7706_v58  ;;  %v8163_v46 = vpop.permute.xlu0 %978  ;;  %v5384_v58 = vpop.f32.mrb[19].mxu0  ;;  %9780 = vst [vmem:[#allocation25_spill] sm:$0xff] %v8172_v20 }
 0x2a3   :  { %6048 = vmatprep.subr.bf16.mxu0 %v7704_v56  ;;  %9779 = vst [vmem:[#allocation24_spill] sm:$0xff] %v8163_v46  ;;  %v8168_v63 = vadd.f32 %v5384_v58, %v5383_v45  ;;  %v1013_v44 = vsel %vm998_vm0, %v8163_v46, 1.0  ;;  %v5386_v34 = vpop.f32.mrb[20].mxu0  ;;  %v1014_v58 = vsel %vm998_vm0, %v8172_v20, 1.0 }
 0x2a4   :  { %v5387_v45 = vpop.f32.mrb[21].mxu0 }
 0x2a5   :  { %5974 = vmatmul.mubr.msk.f32.gmra.mrb[42].mxu0 %vm1079_vm1, %v1010_v50  ;;  %v1012_v50 = vsel %vm998_vm0, %v8153_v32, 1.0 }
 0x2a6   :  { %5976 = vmatprep.mubr.msk.f32.mxu0 %vm1079_vm1, %v1011_v52  ;;  %6049 = vmatpush3.bf16.msra.mxu0 %v7704_v56  ;;  %v8183_v52 = vadd.f32 %v5387_v45, %v5386_v34  ;;  %v5389_v56 = vpop.f32.mrb[22].mxu0 }
 0x2a7   :  { %6050 = vmatprep.subr.bf16.mxu0 %v7710_v0 }
 0x2a9   :  { %5977 = vmatmul.mubr.msk.f32.gmra.mrb[44].mxu0 %vm1079_vm1, %v1012_v50  ;;  %v5390_v50 = vpop.f32.mrb[23].mxu0 }
 0x2aa   :  { %5979 = vmatprep.mubr.msk.f32.mxu0 %vm1079_vm1, %v1013_v44  ;;  %6051 = vmatpush3.bf16.msra.mxu0 %v7710_v0  ;;  %v8186_v46 = vadd.f32 %v5390_v50, %v5389_v56  ;;  %v9781_v44 = vmov 1.0|1.0   ;;  %v5392_v0 = vpop.f32.mrb[24].mxu0  ;;  %v9739_v56 = vmov 0.0  }
 0x2ab   :  { %6052 = vmatprep.subr.bf16.mxu0 %v7708_v62  ;;  %v5393_v24 = vpop.f32.mrb[25].mxu0  ;;  %v5138_v50 = vsel %vm462_vm3, 1.0, %v9739_v56  ;;  %v5126_v37 = vsel %vm450_vm7, 1.0, %v9739_v56  ;;  %v5127_v39 = vsel %vm451_vm8, 1.0, %v9739_v56  ;;  %v5128_v42 = vsel %vm452_vm9, 1.0, %v9739_v56 }
 0x2ac   :  { %v8189_v32 = vadd.f32 %v5393_v24, %v5392_v0  ;;  %v5395_v40 = vpop.f32.mrb[26].mxu0  ;;  %v7340_v0 = vmov -1e+30   ;;  %v539_v43 = vadd.f32 %v8072_v30, %v5126_v37  ;;  %v5130_v49 = vsel %vm454_vm11, 1.0, %v9739_v56 }
 0x2ad   :  { %5980 = vmatmul.mubr.msk.f32.gmra.mrb[46].mxu0 %vm1079_vm1, %v1014_v58  ;;  %v5396_v27 = vpop.f32.mrb[27].mxu0 }
 0x2ae   :  { %6053 = vmatpush3.bf16.msra.mxu0 %v7708_v62  ;;  %v8191_v20 = vadd.f32 %v5396_v27, %v5395_v40  ;;  %v5398_v31 = vpop.f32.mrb[28].mxu0  ;;  %v5125_v40 = vsel %vm449_vm5, 1.0, %v9739_v56  ;;  %vm457_vm5 = vcmp.eq.s32.totalorder %v7865_v55, %v7713_v18  ;;  %vm595_vm7 = vcmp.gt.f32.partialorder %v539_v43, 0.0 }
 0x2af   :  { %6786 = vmatprep.subr.bf16.mxu0 %v9781_v44  ;;  %v5399_v58 = vpop.f32.mrb[29].mxu0  ;;  %v534_v12 = vadd.f32 %v8066_v16, %v5125_v40  ;;  %v542_v40 = vadd.f32 %v8076_v8, %v5127_v39  ;;  %v555_v55 = vadd.f32 %v8097_v36, %v5130_v49 }
 0x2b0   :  { %v5400_v34 = vadd.f32 %v5399_v58, %v5398_v31  ;;  %v5401_v45 = vpop.f32.mrb[30].mxu0  ;;  %v5124_v31 = vsel %vm448_vm6, 1.0, %v9739_v56  ;;  %vm458_vm6 = vcmp.eq.s32.totalorder %v7878_v57, %v7713_v18 }
 0x2b1   :  { %v5402_v38 = vpop.f32.mrb[31].mxu0  ;;  %vm594_vm12 = vcmp.gt.f32.partialorder %v534_v12, 0.0  ;;  %v5134_v53 = vsel %vm458_vm6, 1.0, %v9739_v56  ;;  %vm596_vm11 = vcmp.gt.f32.partialorder %v542_v40, 0.0  ;;  %vm461_vm6 = vcmp.eq.s32.totalorder %v7910_v5, %v7713_v18 }
 0x2b2   :  { %v8193_v33 = vadd.f32 %v5402_v38, %v5401_v45  ;;  %v587_v62 = vadd.f32 %v5400_v34, %v5138_v50  ;;  %v8233_v27 = vsel %vm594_vm12, 0.0, %v7340_v0  ;;  %v8285_v49 = vsel %vm596_vm11, 0.0, %v7340_v0 }
 0x2b4   :  { %vm607_vm4 = vcmp.gt.f32.partialorder %v587_v62, 0.0  ;;  %v531_v62 = vadd.f32 %v8062_v41, %v5124_v31  ;;  %v5129_v41 = vsel %vm453_vm10, 1.0, %v9739_v56  ;;  %v547_v31 = vadd.f32 %v8084_v11, %v5128_v42 }
 0x2b5   :  { %v8199_v24 = vsel %vm607_vm4, 0.0, %v7340_v0  ;;  %vm456_vm4 = vcmp.eq.s32.totalorder %v7862_v54, %v7713_v18  ;;  %v5133_v11 = vsel %vm457_vm5, 1.0, %v9739_v56  ;;  %vm459_vm10 = vcmp.eq.s32.totalorder %v7881_v59, %v7713_v18 }
 0x2b6   :  { %vm593_vm13 = vcmp.gt.f32.partialorder %v531_v62, 0.0  ;;  %v5132_v8 = vsel %vm456_vm4, 1.0, %v9739_v56  ;;  %v8272_v54 = vsel %vm595_vm7, 0.0, %v7340_v0  ;;  %vm597_vm12 = vcmp.gt.f32.partialorder %v547_v31, 0.0 }
 0x2b7   :  { %v8242_v45 = vsel %vm593_vm13, 0.0, %v7340_v0  ;;  %v5135_v59 = vsel %vm459_vm10, 1.0, %v9739_v56  ;;  %vm599_vm4 = vcmp.gt.f32.partialorder %v555_v55, 0.0  ;;  %v9782_v31 = vmov 0.0  }
 0x2b8   :  { %v5137_v55 = vsel %vm461_vm6, 1.0, %v9782_v31 }
 0x364   :  { %v5960_v16 = vpop.f32.mrb[32].mxu0 }
 0x365   :  { %vm1322_vm14 = vcmp.ge.f32.partialorder %v5960_v16, 0.0  ;;  %v1338_v48 = vmul.f32 0.2, %v5960_v16  ;;  %v1242_v38 = vpop.f32.mrb[33].mxu0 }
 0x366   :  { %vm1321_vm3 = vcmp.ge.f32.partialorder %v1242_v38, 0.0  ;;  %v1337_v51 = vmul.f32 0.2, %v1242_v38 }
 0x367   :  { %v1354_v30 = vsel %vm1322_vm14, %v5960_v16, %v1338_v48  ;;  %v5131_v16 = vsel %vm455_vm15, 1.0, %v9739_v56  ;;  %vm460_vm15 = vcmp.eq.s32.totalorder %v7907_v4, %v7713_v18  ;;  %v566_v56 = vadd.f32 %v8168_v63, %v5133_v11 }
 0x368   :  { %v5963_v58 = vpop.f32.mrb[34].mxu0  ;;  %v8238_v34 = vadd.f32 %v1354_v30, %v8233_v27  ;;  %v1353_v50 = vsel %vm1321_vm3, %v1242_v38, %v1337_v51  ;;  %v550_v38 = vadd.f32 %v8088_v29, %v5129_v41  ;;  %v558_v43 = vadd.f32 %v8099_v22, %v5131_v16 }
 0x369   :  { %v1252_v12 = vpop.f32.mrb[35].mxu0  ;;  %v8247_v37 = vadd.f32 %v1353_v50, %v8242_v45  ;;  %v1340_v48 = vmul.f32 0.2, %v5963_v58  ;;  %vm1324_vm9 = vcmp.ge.f32.partialorder %v5963_v58, 0.0  ;;  %v8289_v50 = vsel %vm597_vm12, 0.0, %v7340_v0 }
 0x36a   :  { %vm1323_vm8 = vcmp.ge.f32.partialorder %v1252_v12, 0.0  ;;  %v1339_v62 = vmul.f32 0.2, %v1252_v12  ;;  %1387 = vmax.xlane.f32.xlu1 %v8238_v34  ;;  %vm598_vm14 = vcmp.gt.f32.partialorder %v550_v38, 0.0  ;;  %v8313_v63 = vsel %vm599_vm4, 0.0, %v7340_v0 }
 0x36b   :  { %1385 = vmax.xlane.f32.xlu0 %v8247_v37  ;;  %v1356_v30 = vsel %vm1324_vm9, %v5963_v58, %v1340_v48  ;;  %v571_v11 = vadd.f32 %v8183_v52, %v5134_v53  ;;  %vm602_vm11 = vcmp.gt.f32.partialorder %v566_v56, 0.0  ;;  %vm463_vm12 = vcmp.eq.s32.totalorder %v7940_v13, %v7713_v18 }
 0x36c   :  { %v5966_v29 = vpop.f32.mrb[36].mxu0  ;;  %v1355_v39 = vsel %vm1323_vm8, %v1252_v12, %v1339_v62  ;;  %v563_v12 = vadd.f32 %v8161_v35, %v5132_v8  ;;  %v8293_v62 = vadd.f32 %v1356_v30, %v8285_v49  ;;  %vm600_vm8 = vcmp.gt.f32.partialorder %v558_v43, 0.0 }
 0x36d   :  { %v1262_v42 = vpop.f32.mrb[37].mxu0  ;;  %v8276_v41 = vadd.f32 %v1355_v39, %v8272_v54  ;;  %v1342_v51 = vmul.f32 0.2, %v5966_v29  ;;  %vm1326_vm3 = vcmp.ge.f32.partialorder %v5966_v29, 0.0  ;;  %v8309_v8 = vsel %vm598_vm14, 0.0, %v7340_v0 }
 0x36e   :  { %vm1325_vm13 = vcmp.ge.f32.partialorder %v1262_v42, 0.0  ;;  %v1341_v57 = vmul.f32 0.2, %v1262_v42  ;;  %vm601_vm9 = vcmp.gt.f32.partialorder %v563_v12, 0.0  ;;  %v574_v52 = vadd.f32 %v8186_v46, %v5135_v59 }
 0x36f   :  { %1389 = vmax.xlane.f32.xlu0 %v8276_v41  ;;  %v1358_v16 = vsel %vm1326_vm3, %v5966_v29, %v1342_v51  ;;  %vm603_vm14 = vcmp.gt.f32.partialorder %v571_v11, 0.0  ;;  %v5139_v12 = vsel %vm463_vm12, 1.0, %v9782_v31  ;;  %v582_v13 = vadd.f32 %v8191_v20, %v5137_v55 }
 0x370   :  { %v5969_v36 = vpop.f32.mrb[38].mxu0  ;;  %v1357_v58 = vsel %vm1325_vm13, %v1262_v42, %v1341_v57  ;;  %v5136_v42 = vsel %vm460_vm15, 1.0, %v9782_v31  ;;  %v8317_v51 = vadd.f32 %v1358_v16, %v8309_v8  ;;  %vm604_vm4 = vcmp.gt.f32.partialorder %v574_v52, 0.0 }
 0x371   :  { %v1272_v48 = vpop.f32.mrb[39].mxu0  ;;  %v8296_v39 = vadd.f32 %v1357_v58, %v8289_v50  ;;  %v1344_v22 = vmul.f32 0.2, %v5969_v36  ;;  %vm1328_vm7 = vcmp.ge.f32.partialorder %v5969_v36, 0.0  ;;  %v8374_v20 = vsel %vm604_vm4, 0.0, %v7340_v0 }
 0x372   :  { %vm1327_vm5 = vcmp.ge.f32.partialorder %v1272_v48, 0.0  ;;  %v1343_v40 = vmul.f32 0.2, %v1272_v48 }
 0x373   :  { %1391 = vmax.xlane.f32.xlu0 %v8293_v62  ;;  %1393 = vmax.xlane.f32.xlu1 %v8296_v39  ;;  %v1360_v58 = vsel %vm1328_vm7, %v5969_v36, %v1344_v22  ;;  %v8334_v36 = vsel %vm600_vm8, 0.0, %v7340_v0  ;;  %v579_v22 = vadd.f32 %v8189_v32, %v5136_v42  ;;  %v8356_v42 = vsel %vm602_vm11, 0.0, %v7340_v0 }
 0x374   :  { %v5972_v35 = vpop.f32.mrb[40].mxu0  ;;  %v1359_v4 = vsel %vm1327_vm5, %v1272_v48, %v1343_v40  ;;  %v8338_v48 = vsel %vm601_vm9, 0.0, %v7340_v0  ;;  %v8342_v16 = vadd.f32 %v1360_v58, %v8334_v36  ;;  %vm606_vm8 = vcmp.gt.f32.partialorder %v582_v13, 0.0 }
 0x375   :  { %v1282_v29 = vpop.f32.mrb[41].mxu0  ;;  %v8320_v57 = vadd.f32 %v1359_v4, %v8313_v63  ;;  %v1346_v30 = vmul.f32 0.2, %v5972_v35  ;;  %vm1330_vm13 = vcmp.ge.f32.partialorder %v5972_v35, 0.0  ;;  %vm605_vm5 = vcmp.gt.f32.partialorder %v579_v22, 0.0 }
 0x376   :  { %vm1329_vm10 = vcmp.ge.f32.partialorder %v1282_v29, 0.0  ;;  %v1345_v38 = vmul.f32 0.2, %v1282_v29  ;;  %v8377_v55 = vsel %vm605_vm5, 0.0, %v7340_v0  ;;  %v8389_v52 = vsel %vm606_vm8, 0.0, %v7340_v0 }
 0x377   :  { %1395 = vmax.xlane.f32.xlu0 %v8317_v51  ;;  %1397 = vmax.xlane.f32.xlu1 %v8320_v57  ;;  %v1362_v43 = vsel %vm1330_vm13, %v5972_v35, %v1346_v30 }
 0x378   :  { %v5975_v53 = vpop.f32.mrb[42].mxu0  ;;  %v1361_v5 = vsel %vm1329_vm10, %v1282_v29, %v1345_v38  ;;  %v8360_v29 = vsel %vm603_vm14, 0.0, %v7340_v0  ;;  %v8364_v38 = vadd.f32 %v1362_v43, %v8356_v42 }
 0x379   :  { %v1292_v40 = vpop.f32.mrb[43].mxu0  ;;  %v8345_v4 = vadd.f32 %v1361_v5, %v8338_v48  ;;  %v1348_v46 = vmul.f32 0.2, %v5975_v53  ;;  %vm1332_vm3 = vcmp.ge.f32.partialorder %v5975_v53, 0.0 }
 0x37a   :  { %vm1331_vm15 = vcmp.ge.f32.partialorder %v1292_v40, 0.0  ;;  %v1347_v59 = vmul.f32 0.2, %v1292_v40 }
 0x37b   :  { %1399 = vmax.xlane.f32.xlu0 %v8342_v16  ;;  %1401 = vmax.xlane.f32.xlu1 %v8345_v4  ;;  %v1364_v18 = vsel %vm1332_vm3, %v5975_v53, %v1348_v46 }
 0x37c   :  { %v5978_v32 = vpop.f32.mrb[44].mxu0  ;;  %v1363_v35 = vsel %vm1331_vm15, %v1292_v40, %v1347_v59  ;;  %v590_v40 = vadd.f32 %v8193_v33, %v5139_v12  ;;  %v8381_v53 = vadd.f32 %v1364_v18, %v8374_v20 }
 0x37d   :  { %v1302_v30 = vpop.f32.mrb[45].mxu0  ;;  %v8367_v58 = vadd.f32 %v1363_v35, %v8360_v29  ;;  %v1350_v5 = vmul.f32 0.2, %v5978_v32  ;;  %vm1334_vm7 = vcmp.ge.f32.partialorder %v5978_v32, 0.0 }
 0x37e   :  { %vm1333_vm6 = vcmp.ge.f32.partialorder %v1302_v30, 0.0  ;;  %v1349_v56 = vmul.f32 0.2, %v1302_v30  ;;  %vm608_vm10 = vcmp.gt.f32.partialorder %v590_v40, 0.0 }
 0x37f   :  { %1403 = vmax.xlane.f32.xlu0 %v8364_v38  ;;  %1405 = vmax.xlane.f32.xlu1 %v8367_v58  ;;  %v1366_v35 = vsel %vm1334_vm7, %v5978_v32, %v1350_v5  ;;  %v8396_v18 = vsel %vm608_vm10, 0.0, %v7340_v0 }
 0x380   :  { %v5981_v11 = vpop.f32.mrb[46].mxu0  ;;  %v1365_v22 = vsel %vm1333_vm6, %v1302_v30, %v1349_v56  ;;  %v8392_v33 = vadd.f32 %v1366_v35, %v8389_v52 }
 0x381   :  { %v1312_v59 = vpop.f32.mrb[47].mxu0  ;;  %v8384_v46 = vadd.f32 %v1365_v22, %v8377_v55  ;;  %v1352_v43 = vmul.f32 0.2, %v5981_v11  ;;  %vm1336_vm9 = vcmp.ge.f32.partialorder %v5981_v11, 0.0 }
 0x382   :  { %v1351_v13 = vmul.f32 0.2, %v1312_v59  ;;  %vm1335_vm11 = vcmp.ge.f32.partialorder %v1312_v59, 0.0 }
 0x383   :  { %1407 = vmax.xlane.f32.xlu0 %v8381_v53  ;;  %1409 = vmax.xlane.f32.xlu1 %v8384_v46  ;;  %v1368_v12 = vsel %vm1336_vm9, %v5981_v11, %v1352_v43 }
 0x384   :  { %v8399_v32 = vadd.f32 %v1368_v12, %v8396_v18  ;;  %v1367_v0 = vsel %vm1335_vm11, %v1312_v59, %v1351_v13 }
 0x385   :  { %v8410_v30 = vadd.f32 %v1367_v0, %v8199_v24 }
 0x387   :  { %1411 = vmax.xlane.f32.xlu0 %v8392_v33 }
 0x38b   :  { %1415 = vmax.xlane.f32.xlu0 %v8399_v32 }
 0x394   :  { %1852 = vrot.lane.b32.xlu1 %v7889_v61, %s7341_s28 }
 0x3a1   :  { %1854 = vrot.lane.b32.xlu0 %v7883_v60, %s7341_s28 }
 0x3a5   :  { %1860 = vrot.lane.b32.xlu0 %v7919_v7, %s7341_s28 }
 0x3a9   :  { %1864 = vrot.lane.b32.xlu0 %v7932_v10, %s7341_s28 }
 0x3ad   :  { %1868 = vrot.lane.b32.xlu0 %v7949_v15, %s7341_s28 }
 0x3b1   :  { %1872 = vrot.lane.b32.xlu0 %v7962_v19, %s7341_s28 }
 0x3b5   :  { %1876 = vrot.lane.b32.xlu0 %v7969_v23, %s7341_s28 }
 0x3b8   :  { %1413 = vmax.xlane.f32.xlu1 %v8410_v30 }
 0x3b9   :  { %1880 = vrot.lane.b32.xlu0 %v7976_v26, %s7341_s28 }
 0x3c9   :  { %1856 = vrot.lane.b32.xlu1 %v7902_v2, %s7341_s28 }
 0x3cd   :  { %1858 = vrot.lane.b32.xlu1 %v7900_v1, %s7341_s28 }
 0x3d1   :  { %1862 = vrot.lane.b32.xlu1 %v7913_v6, %s7341_s28 }
 0x3d5   :  { %1866 = vrot.lane.b32.xlu1 %v7929_v9, %s7341_s28 }
 0x3d9   :  { %1870 = vrot.lane.b32.xlu1 %v7943_v14, %s7341_s28 }
 0x3dd   :  { %1874 = vrot.lane.b32.xlu1 %v7959_v17, %s7341_s28 }
 0x3e1   :  { %1878 = vrot.lane.b32.xlu1 %v7966_v21, %s7341_s28 }
 0x3e5   :  { %1882 = vrot.lane.b32.xlu1 %v7974_v25, %s7341_s28 }
 0x3f7   :  { %v1388_v60 = vpop.xlane.xlu1 %1387 }
 0x3f8   :  { %v1418_v61 = vsub.f32 %v8238_v34, %v1388_v60  ;;  %v1386_v7 = vpop.xlane.xlu0 %1385  ;;  %v9784_v60 = vld [vmem:[#allocation15_spill] sm:$0xff] }
 0x3f9   :  { %v1417_v2 = vsub.f32 %v8247_v37, %v1386_v7 }
 0x3fa   :  { %v1435_v10 = vmul.f32 1.442695, %v1418_v61  ;;  %v1921_v61 = vsel %vm998_vm0, 1.0, %v9784_v60 }
 0x3fb   :  { %v1433_v1 = vmul.f32 1.442695, %v1417_v2 }
 0x3fc   :  { %v1390_v15 = vpop.xlane.xlu0 %1389 }
 0x3fd   :  { %7131 = vpow2.f32 %v1433_v1  ;;  %v1419_v6 = vsub.f32 %v8276_v41, %v1390_v15  ;;  %v1919_v41 = vsel %vm998_vm0, 1.0, %v8086_v47  ;;  %v9785_v1 = vld [vmem:[#allocation14_spill] sm:$0xff] }
 0x3fe   :  { %7133 = vpow2.f32 %v1435_v10  ;;  %v1920_v15 = vsel %vm998_vm0, 1.0, %v9785_v1  ;;  %v9793_v1 = vld [vmem:[#allocation22_spill] sm:$0xff] }
 0x3ff   :  { %v1437_v9 = vmul.f32 1.442695, %v1419_v6 }
 0x400   :  { %v1392_v14 = vpop.xlane.xlu0 %1391  ;;  %v1394_v17 = vpop.xlane.xlu1 %1393 }
 0x401   :  { %7135 = vpow2.f32 %v1437_v9  ;;  %v1420_v19 = vsub.f32 %v8293_v62, %v1392_v14  ;;  %v1421_v21 = vsub.f32 %v8296_v39, %v1394_v17  ;;  %v1918_v39 = vsel %vm998_vm0, 1.0, %v8078_v3 }
 0x403   :  { %v1439_v23 = vmul.f32 1.442695, %v1420_v19  ;;  %v1441_v25 = vmul.f32 1.442695, %v1421_v21 }
 0x404   :  { %v1396_v26 = vpop.xlane.xlu0 %1395  ;;  %v1398_v34 = vpop.xlane.xlu1 %1397 }
 0x405   :  { %7137 = vpow2.f32 %v1439_v23  ;;  %v1422_v37 = vsub.f32 %v8317_v51, %v1396_v26  ;;  %v1423_v5 = vsub.f32 %v8320_v57, %v1398_v34  ;;  %v6744_v51 = vpack.c.bf16 %v1919_v41, %v1918_v39  ;;  %v9787_v41 = vld [vmem:[#allocation16_spill] sm:$0xff] }
 0x406   :  { %7139 = vpow2.f32 %v1441_v25  ;;  %v9786_v25 = vld [vmem:[#allocation17_spill] sm:$0xff] }
 0x407   :  { %v8431_v56 = vpop.eup %7131  ;;  %v1443_v11 = vmul.f32 1.442695, %v1422_v37  ;;  %v1445_v22 = vmul.f32 1.442695, %v1423_v5  ;;  %v1923_v26 = vsel %vm998_vm0, 1.0, %v9786_v25 }
 0x408   :  { %v8433_v62 = vpop.eup %7133  ;;  %6014 = vmatprep.mubr.f32.mxu1 %v8431_v56  ;;  %v1400_v40 = vpop.xlane.xlu0 %1399 }
 0x409   :  { %v1402_v59 = vpop.xlane.xlu1 %1401  ;;  %7141 = vpow2.f32 %v1443_v11  ;;  %v1424_v57 = vsub.f32 %v8342_v16, %v1400_v40  ;;  %6015 = vmatmul.mubr.f32.vlgmr.msra.gmra.mrb[32].mxu1 %v8433_v62  ;;  %v1922_v11 = vsel %vm998_vm0, 1.0, %v9787_v41  ;;  %v9788_v40 = vld [vmem:[#allocation19_spill] sm:$0xff] }
 0x40a   :  { %v1425_v47 = vsub.f32 %v8345_v4, %v1402_v59  ;;  %7143 = vpow2.f32 %v1445_v22  ;;  %6743 = vmatpush3.bf16.xpose.msk.msra.mxu1 %vm8017_vm2, %v8051_v28  ;;  %v6756_v22 = vpack.c.bf16 %v1923_v26, %v1922_v11  ;;  %v1925_v59 = vsel %vm998_vm0, 1.0, %v9788_v40 }
 0x40b   :  { %v8444_v35 = vpop.eup %7135  ;;  %v1447_v3 = vmul.f32 1.442695, %v1424_v57  ;;  %6746 = vmatprep.subr.msk.bf16.mxu1 %vm8017_vm2, %v6744_v51 }
 0x40c   :  { %v1449_v12 = vmul.f32 1.442695, %v1425_v47  ;;  %6017 = vmatprep.mubr.f32.mxu1 %v8444_v35  ;;  %v1404_v13 = vpop.xlane.xlu0 %1403  ;;  %v9789_v47 = vld [vmem:[#allocation18_spill] sm:$0xff] }
 0x40d   :  { %v1406_v16 = vpop.xlane.xlu1 %1405  ;;  %7145 = vpow2.f32 %v1447_v3  ;;  %v1426_v4 = vsub.f32 %v8364_v38, %v1404_v13  ;;  %v6750_v38 = vpack.c.bf16 %v1921_v61, %v1920_v15  ;;  %v1924_v3 = vsel %vm998_vm0, 1.0, %v9789_v47 }
 0x40e   :  { %v1427_v0 = vsub.f32 %v8367_v58, %v1406_v16  ;;  %7147 = vpow2.f32 %v1449_v12  ;;  %v6762_v12 = vpack.c.bf16 %v1925_v59, %v1924_v3  ;;  %v9790_v16 = vld [vmem:[#allocation21_spill] sm:$0xff]  ;;  %v1928_v15 = vsel %vm998_vm0, 1.0, %v9793_v1 }
 0x40f   :  { %v8453_v28 = vpop.eup %7137  ;;  %v1451_v7 = vmul.f32 1.442695, %v1426_v4  ;;  %v1927_v4 = vsel %vm998_vm0, 1.0, %v9790_v16 }
 0x410   :  { %v1453_v2 = vmul.f32 1.442695, %v1427_v0  ;;  %v8455_v10 = vpop.eup %7139  ;;  %6018 = vmatmul.mubr.f32.gmra.mrb[34].mxu1 %v8453_v28  ;;  %v1408_v6 = vpop.xlane.xlu0 %1407  ;;  %v9791_v0 = vld [vmem:[#allocation20_spill] sm:$0xff] }
 0x411   :  { %v1410_v9 = vpop.xlane.xlu1 %1409  ;;  %7149 = vpow2.f32 %v1451_v7  ;;  %v1428_v58 = vsub.f32 %v8381_v53, %v1408_v6  ;;  %6020 = vmatprep.mubr.f32.mxu1 %v8455_v10  ;;  %v1926_v60 = vsel %vm998_vm0, 1.0, %v9791_v0  ;;  %v9792_v7 = vld [vmem:[#allocation23_spill] sm:$0xff] }
 0x412   :  { %v1429_v14 = vsub.f32 %v8384_v46, %v1410_v9  ;;  %7151 = vpow2.f32 %v1453_v2  ;;  %6749 = vmatpush3.bf16.xpose.msk.msra.mxu1 %vm8017_vm2, %v6744_v51  ;;  %v6768_v61 = vpack.c.bf16 %v1927_v4, %v1926_v60  ;;  %v1929_v2 = vsel %vm998_vm0, 1.0, %v9792_v7  ;;  %v9794_v9 = vld [vmem:[#allocation25_spill] sm:$0xff] }
 0x413   :  { %v8465_v17 = vpop.eup %7141  ;;  %v1455_v19 = vmul.f32 1.442695, %v1428_v58  ;;  %6752 = vmatprep.subr.msk.bf16.mxu1 %vm8017_vm2, %v6750_v38  ;;  %v6774_v6 = vpack.c.bf16 %v1929_v2, %v1928_v15  ;;  %v9795_v58 = vld [vmem:[#allocation24_spill] sm:$0xff] }
 0x414   :  { %v1457_v21 = vmul.f32 1.442695, %v1429_v14  ;;  %v8469_v23 = vpop.eup %7143  ;;  %6021 = vmatmul.mubr.f32.gmra.mrb[36].mxu1 %v8465_v17  ;;  %v1412_v53 = vpop.xlane.xlu0 %1411  ;;  %v1930_v14 = vsel %vm998_vm0, 1.0, %v9795_v58 }
 0x415   :  { %7153 = vpow2.f32 %v1455_v19  ;;  %v1430_v46 = vsub.f32 %v8392_v33, %v1412_v53  ;;  %6023 = vmatprep.mubr.f32.mxu1 %v8469_v23  ;;  %v1853_v53 = vpop.permute.xlu1 %1852 }
 0x416   :  { %7155 = vpow2.f32 %v1457_v21 }
 0x417   :  { %v8476_v34 = vpop.eup %7145  ;;  %v1459_v37 = vmul.f32 1.442695, %v1430_v46 }
 0x418   :  { %v8478_v5 = vpop.eup %7147  ;;  %6024 = vmatmul.mubr.f32.gmra.mrb[38].mxu1 %v8476_v34  ;;  %v1416_v21 = vpop.xlane.xlu0 %1415 }
 0x419   :  { %7157 = vpow2.f32 %v1459_v37  ;;  %6026 = vmatprep.mubr.f32.mxu1 %v8478_v5  ;;  %v1432_v46 = vsub.f32 %v8399_v32, %v1416_v21  ;;  %v1900_v32 = vsel %vm998_vm0, %v1853_v53, 1.0 }
 0x41a   :  { %6755 = vmatpush3.bf16.xpose.msk.msra.mxu1 %vm8017_vm2, %v6750_v38  ;;  %v1931_v38 = vsel %vm998_vm0, 1.0, %v9794_v9 }
 0x41b   :  { %v8486_v33 = vpop.eup %7149  ;;  %6758 = vmatprep.subr.msk.bf16.mxu1 %vm8017_vm2, %v6756_v22  ;;  %v6780_v19 = vpack.c.bf16 %v1931_v38, %v1930_v14  ;;  %v1463_v37 = vmul.f32 1.442695, %v1432_v46 }
 0x41c   :  { %v8490_v39 = vpop.eup %7151  ;;  %6027 = vmatmul.mubr.f32.gmra.mrb[40].mxu1 %v8486_v33 }
 0x41d   :  { %6029 = vmatprep.mubr.f32.mxu1 %v8490_v39 }
 0x41f   :  { %v8496_v51 = vpop.eup %7153 }
 0x420   :  { %v8498_v57 = vpop.eup %7155  ;;  %6030 = vmatmul.mubr.f32.gmra.mrb[42].mxu1 %v8496_v51 }
 0x421   :  { %6032 = vmatprep.mubr.f32.mxu1 %v8498_v57 }
 0x422   :  { %6761 = vmatpush3.bf16.xpose.msk.msra.mxu1 %vm8017_vm2, %v6756_v22  ;;  %v1855_v22 = vpop.permute.xlu0 %1854 }
 0x423   :  { %v8506_v13 = vpop.eup %7157  ;;  %6764 = vmatprep.subr.msk.bf16.mxu1 %vm8017_vm2, %v6762_v12  ;;  %v1901_v16 = vsel %vm998_vm0, %v1855_v22, 1.0 }
 0x424   :  { %6033 = vmatmul.mubr.f32.gmra.mrb[44].mxu1 %v8506_v13 }
 0x426   :  { %v1861_v59 = vpop.permute.xlu0 %1860 }
 0x427   :  { %v1904_v7 = vsel %vm998_vm0, %v1861_v59, 1.0 }
 0x42a   :  { %6767 = vmatpush3.bf16.xpose.msk.msra.mxu1 %vm8017_vm2, %v6762_v12 }
 0x42b   :  { %6770 = vmatprep.subr.msk.bf16.mxu1 %vm8017_vm2, %v6768_v61 }
 0x432   :  { %6773 = vmatpush3.bf16.xpose.msk.msra.mxu1 %vm8017_vm2, %v6768_v61 }
 0x433   :  { %6776 = vmatprep.subr.msk.bf16.mxu1 %vm8017_vm2, %v6774_v6 }
 0x43a   :  { %6779 = vmatpush3.bf16.xpose.msk.msra.mxu1 %vm8017_vm2, %v6774_v6 }
 0x43b   :  { %6782 = vmatprep.subr.msk.bf16.mxu1 %vm8017_vm2, %v6780_v19 }
 0x442   :  { %6785 = vmatpush3.bf16.xpose.msk.msra.mxu1 %vm8017_vm2, %v6780_v19 }
 0x445   :  { %v1414_v25 = vpop.xlane.xlu1 %1413 }
 0x446   :  { %v1431_v26 = vsub.f32 %v8410_v30, %v1414_v25  ;;  %v1865_v30 = vpop.permute.xlu0 %1864 }
 0x447   :  { %v1906_v15 = vsel %vm998_vm0, %v1865_v30, 1.0 }
 0x448   :  { %v1461_v41 = vmul.f32 1.442695, %v1431_v26 }
 0x449   :  { %v1857_v11 = vpop.permute.xlu1 %1856 }
 0x44a   :  { %7159 = vpow2.f32 %v1461_v41  ;;  %v1902_v4 = vsel %vm998_vm0, %v1857_v11, 1.0  ;;  %v1869_v60 = vpop.permute.xlu0 %1868 }
 0x44b   :  { %7161 = vpow2.f32 %v1463_v37  ;;  %v1908_v38 = vsel %vm998_vm0, %v1869_v60, 1.0 }
 0x44d   :  { %v1859_v40 = vpop.permute.xlu1 %1858 }
 0x44e   :  { %v1903_v61 = vsel %vm998_vm0, %v1859_v40, 1.0  ;;  %v1873_v6 = vpop.permute.xlu0 %1872 }
 0x44f   :  { %v1910_v21 = vsel %vm998_vm0, %v1873_v6, 1.0 }
 0x451   :  { %v1863_v3 = vpop.permute.xlu1 %1862 }
 0x452   :  { %v1905_v1 = vsel %vm998_vm0, %v1863_v3, 1.0  ;;  %v1877_v14 = vpop.permute.xlu0 %1876 }
 0x453   :  { %v1912_v25 = vsel %vm998_vm0, %v1877_v14, 1.0 }
 0x454   :  { %v8539_v47 = vpop.eup %7159 }
 0x455   :  { %v8541_v12 = vpop.eup %7161  ;;  %6035 = vmatprep.mubr.f32.mxu1 %v8539_v47  ;;  %v1867_v0 = vpop.permute.xlu1 %1866 }
 0x456   :  { %6036 = vmatmul.mubr.f32.gmra.mrb[46].mxu1 %v8541_v12  ;;  %v1907_v9 = vsel %vm998_vm0, %v1867_v0, 1.0  ;;  %v1881_v26 = vpop.permute.xlu0 %1880 }
 0x457   :  { %6102 = vmatprep.mubr.msk.f32.mxu1 %vm1079_vm1, %v1900_v32  ;;  %v1914_v41 = vsel %vm998_vm0, %v1881_v26, 1.0 }
 0x459   :  { %v1871_v2 = vpop.permute.xlu1 %1870 }
 0x45a   :  { %6103 = vmatmul.mubr.msk.f32.vlgmr.msra.gmra.mrb[48].mxu1 %vm1079_vm1, %v1901_v16  ;;  %v1909_v19 = vsel %vm998_vm0, %v1871_v2, 1.0 }
 0x45b   :  { %6105 = vmatprep.mubr.msk.f32.mxu1 %vm1079_vm1, %v1902_v4 }
 0x45d   :  { %v1875_v58 = vpop.permute.xlu1 %1874 }
 0x45e   :  { %6106 = vmatmul.mubr.msk.f32.gmra.mrb[50].mxu1 %vm1079_vm1, %v1903_v61  ;;  %v1911_v46 = vsel %vm998_vm0, %v1875_v58, 1.0 }
 0x45f   :  { %6108 = vmatprep.mubr.msk.f32.mxu1 %vm1079_vm1, %v1904_v7 }
 0x461   :  { %v1879_v53 = vpop.permute.xlu1 %1878 }
 0x462   :  { %6109 = vmatmul.mubr.msk.f32.gmra.mrb[52].mxu1 %vm1079_vm1, %v1905_v1  ;;  %v1913_v37 = vsel %vm998_vm0, %v1879_v53, 1.0 }
 0x463   :  { %6111 = vmatprep.mubr.msk.f32.mxu1 %vm1079_vm1, %v1906_v15 }
 0x465   :  { %v1883_v11 = vpop.permute.xlu1 %1882 }
 0x466   :  { %6112 = vmatmul.mubr.msk.f32.gmra.mrb[54].mxu1 %vm1079_vm1, %v1907_v9  ;;  %v1915_v22 = vsel %vm998_vm0, %v1883_v11, 1.0 }
 0x467   :  { %6114 = vmatprep.mubr.msk.f32.mxu1 %vm1079_vm1, %v1908_v38 }
 0x46a   :  { %6115 = vmatmul.mubr.msk.f32.gmra.mrb[56].mxu1 %vm1079_vm1, %v1909_v19 }
 0x46b   :  { %6117 = vmatprep.mubr.msk.f32.mxu1 %vm1079_vm1, %v1910_v21 }
 0x46e   :  { %6118 = vmatmul.mubr.msk.f32.gmra.mrb[58].mxu1 %vm1079_vm1, %v1911_v46 }
 0x46f   :  { %6120 = vmatprep.mubr.msk.f32.mxu1 %vm1079_vm1, %v1912_v25 }
 0x472   :  { %6121 = vmatmul.mubr.msk.f32.gmra.mrb[60].mxu1 %vm1079_vm1, %v1913_v37 }
 0x473   :  { %6123 = vmatprep.mubr.msk.f32.mxu1 %vm1079_vm1, %v1914_v41 }
 0x476   :  { %6124 = vmatmul.mubr.msk.f32.gmra.mrb[62].mxu1 %vm1079_vm1, %v1915_v22 }
 0x4dc   :  { %v6016_v40 = vpop.f32.mrb[32].mxu1 }
 0x4dd   :  { %7163 = vrcp.f32 %v6016_v40  ;;  %v1531_v59 = vpop.f32.mrb[33].mxu1 }
 0x4de   :  { %7165 = vrcp.f32 %v1531_v59 }
 0x4e3   :  { %v6019_v3 = vpop.f32.mrb[34].mxu1 }
 0x4e4   :  { %7167 = vrcp.f32 %v6019_v3  ;;  %v1541_v32 = vpop.f32.mrb[35].mxu1 }
 0x4e5   :  { %7169 = vrcp.f32 %v1541_v32 }
 0x4e7   :  { %v7164_v30 = vpop.eup %7163  ;;  %v6022_v16 = vpop.f32.mrb[36].mxu1 }
 0x4e8   :  { %v7166_v4 = vpop.eup %7165  ;;  %7171 = vrcp.f32 %v6022_v16  ;;  %v1551_v0 = vpop.f32.mrb[37].mxu1  ;;  %1633 = vperm.xlu1 %7050, %v7164_v30  }
 0x4e9   :  { %7173 = vrcp.f32 %v1551_v0  ;;  %1628 = vperm.xlu0 %7049, %v7166_v4  }
 0x4eb   :  { %v6025_v60 = vpop.f32.mrb[38].mxu1 }
 0x4ec   :  { %7175 = vrcp.f32 %v6025_v60  ;;  %v1561_v61 = vpop.f32.mrb[39].mxu1 }
 0x4ed   :  { %7177 = vrcp.f32 %v1561_v61 }
 0x4ee   :  { %v7168_v7 = vpop.eup %7167 }
 0x4ef   :  { %v7170_v2 = vpop.eup %7169  ;;  %v6028_v1 = vpop.f32.mrb[40].mxu1  ;;  %1643 = vperm.xlu1 %7050, %v7168_v7  }
 0x4f0   :  { %7179 = vrcp.f32 %v6028_v1  ;;  %v1571_v15 = vpop.f32.mrb[41].mxu1  ;;  %1638 = vperm.xlu0 %7049, %v7170_v2  }
 0x4f1   :  { %7181 = vrcp.f32 %v1571_v15 }
 0x4f2   :  { %v7172_v6 = vpop.eup %7171 }
 0x4f3   :  { %v7174_v9 = vpop.eup %7173  ;;  %v6031_v38 = vpop.f32.mrb[42].mxu1  ;;  %1653 = vperm.xlu1 %7050, %v7172_v6  }
 0x4f4   :  { %7183 = vrcp.f32 %v6031_v38  ;;  %v1581_v58 = vpop.f32.mrb[43].mxu1  ;;  %1648 = vperm.xlu0 %7049, %v7174_v9  }
 0x4f5   :  { %7185 = vrcp.f32 %v1581_v58 }
 0x4f6   :  { %v7176_v14 = vpop.eup %7175 }
 0x4f7   :  { %v7178_v19 = vpop.eup %7177  ;;  %v6034_v21 = vpop.f32.mrb[44].mxu1  ;;  %1663 = vperm.xlu1 %7050, %v7176_v14  }
 0x4f8   :  { %7187 = vrcp.f32 %v6034_v21  ;;  %v1591_v53 = vpop.f32.mrb[45].mxu1  ;;  %1658 = vperm.xlu0 %7049, %v7178_v19  }
 0x4f9   :  { %7189 = vrcp.f32 %v1591_v53 }
 0x4fa   :  { %v7180_v46 = vpop.eup %7179 }
 0x4fb   :  { %v7182_v25 = vpop.eup %7181  ;;  %1673 = vperm.xlu1 %7050, %v7180_v46  }
 0x4fc   :  { %1668 = vperm.xlu0 %7049, %v7182_v25  }
 0x4fe   :  { %v7184_v26 = vpop.eup %7183 }
 0x4ff   :  { %v7186_v37 = vpop.eup %7185  ;;  %1683 = vperm.xlu1 %7050, %v7184_v26  }
 0x500   :  { %1678 = vperm.xlu0 %7049, %v7186_v37  }
 0x502   :  { %v7188_v41 = vpop.eup %7187 }
 0x503   :  { %v7190_v11 = vpop.eup %7189 }
 0x504   :  { %1693 = vperm.xlu0 %7049, %v7188_v41   ;;  %1688 = vperm.xlu1 %7050, %v7190_v11  }
 0x529   :  { %v8577_v22 = vpop.f32.mrb[46].mxu1 }
 0x52a   :  { %v1601_v40 = vpop.f32.mrb[47].mxu1 }
 0x52b   :  { %7191 = vrcp.f32 %v1601_v40 }
 0x52c   :  { %7193 = vrcp.f32 %v8577_v22 }
 0x52d   :  { %v8579_v59 = vpop.f32.mrb[48].mxu1 }
 0x52e   :  { %v2094_v3 = vpop.f32.mrb[49].mxu1  ;;  %vm2174_vm9 = vcmp.ge.f32.partialorder %v8579_v59, 0.0 }
 0x52f   :  { %vm2173_vm12 = vcmp.ge.f32.partialorder %v2094_v3, 0.0  ;;  %v2189_v32 = vmul.f32 0.2, %v2094_v3 }
 0x531   :  { %v2205_v30 = vsel %vm2173_vm12, %v2094_v3, %v2189_v32  ;;  %v8581_v16 = vpop.f32.mrb[50].mxu1 }
 0x532   :  { %v2104_v4 = vpop.f32.mrb[51].mxu1  ;;  %v8584_v0 = vadd.f32 %v2205_v30, %v8242_v45  ;;  %vm2176_vm10 = vcmp.ge.f32.partialorder %v8581_v16, 0.0 }
 0x533   :  { %vm2175_vm13 = vcmp.ge.f32.partialorder %v2104_v4, 0.0  ;;  %v2191_v60 = vmul.f32 0.2, %v2104_v4 }
 0x534   :  { %2237 = vmax.xlane.f32.xlu0 %v8584_v0 }
 0x535   :  { %v7192_v61 = vpop.eup %7191  ;;  %v2207_v7 = vsel %vm2175_vm13, %v2104_v4, %v2191_v60  ;;  %v6110_v2 = vpop.f32.mrb[52].mxu1 }
 0x536   :  { %vm2178_vm14 = vcmp.ge.f32.partialorder %v6110_v2, 0.0  ;;  %v2194_v1 = vmul.f32 0.2, %v6110_v2  ;;  %1698 = vperm.xlu1 %7050, %v7192_v61   ;;  %v2114_v15 = vpop.f32.mrb[53].mxu1  ;;  %v8588_v6 = vadd.f32 %v2207_v7, %v8272_v54 }
 0x537   :  { %v2193_v9 = vmul.f32 0.2, %v2114_v15  ;;  %vm2177_vm15 = vcmp.ge.f32.partialorder %v2114_v15, 0.0 }
 0x538   :  { %v2210_v38 = vsel %vm2178_vm14, %v6110_v2, %v2194_v1  ;;  %2241 = vmax.xlane.f32.xlu0 %v8588_v6 }
 0x539   :  { %v8591_v58 = vpop.f32.mrb[54].mxu1  ;;  %v8594_v14 = vadd.f32 %v2210_v38, %v8309_v8  ;;  %v2209_v21 = vsel %vm2177_vm15, %v2114_v15, %v2193_v9  ;;  %vm1835_vm15 = vcmask 523264  }
 0x53a   :  { %v2124_v19 = vpop.f32.mrb[55].mxu1  ;;  %v8598_v26 = vadd.f32 %v2209_v21, %v8289_v50  ;;  %vm2180_vm11 = vcmp.ge.f32.partialorder %v8591_v58, 0.0 }
 0x53b   :  { %v2195_v53 = vmul.f32 0.2, %v2124_v19  ;;  %vm2179_vm3 = vcmp.ge.f32.partialorder %v2124_v19, 0.0 }
 0x53c   :  { %2247 = vmax.xlane.f32.xlu0 %v8594_v14 }
 0x53d   :  { %v6116_v46 = vpop.f32.mrb[56].mxu1  ;;  %v2211_v37 = vsel %vm2179_vm3, %v2124_v19, %v2195_v53  ;;  %vm7344_vm3 = vmmov 0  }
 0x53e   :  { %v2134_v25 = vpop.f32.mrb[57].mxu1  ;;  %v8604_v3 = vadd.f32 %v2211_v37, %v8313_v63  ;;  %v2198_v32 = vmul.f32 0.2, %v6116_v46  ;;  %vm2182_vm5 = vcmp.ge.f32.partialorder %v6116_v46, 0.0  ;;  %6246 = vmatprep.mubr.msk.f32.mxu1 %vm7344_vm3, %v9782_v31 }
 0x53f   :  { %v2197_v41 = vmul.f32 0.2, %v2134_v25  ;;  %vm2181_vm4 = vcmp.ge.f32.partialorder %v2134_v25, 0.0 }
 0x540   :  { %2245 = vmax.xlane.f32.xlu0 %v8598_v26  ;;  %v2214_v7 = vsel %vm2182_vm5, %v6116_v46, %v2198_v32  ;;  %v2192_v32 = vmul.f32 0.2, %v8581_v16 }
 0x541   :  { %v6119_v11 = vpop.f32.mrb[58].mxu1  ;;  %v2213_v30 = vsel %vm2181_vm4, %v2134_v25, %v2197_v41  ;;  %v8616_v9 = vadd.f32 %v2214_v7, %v8356_v42  ;;  %v2190_v25 = vmul.f32 0.2, %v8579_v59  ;;  %vm2775_vm4 = vcmask 1048064  }
 0x542   :  { %v8601_v40 = vpop.f32.mrb[59].mxu1  ;;  %v8610_v61 = vadd.f32 %v2213_v30, %v8338_v48  ;;  %v2200_v2 = vmul.f32 0.2, %v6119_v11  ;;  %vm2184_vm6 = vcmp.ge.f32.partialorder %v6119_v11, 0.0  ;;  %v2208_v7 = vsel %vm2176_vm10, %v8581_v16, %v2192_v32  ;;  %v9796_v16 = vld [vmem:[#allocation3_spill] sm:$0xff] }
 0x543   :  { %vm2183_vm12 = vcmp.ge.f32.partialorder %v8601_v40, 0.0 }
 0x544   :  { %2249 = vmax.xlane.f32.xlu0 %v8604_v3  ;;  %v2216_v38 = vsel %vm2184_vm6, %v6119_v11, %v2200_v2  ;;  %v2206_v11 = vsel %vm2174_vm9, %v8579_v59, %v2190_v25  ;;  %v8642_v2 = vadd.f32 %v2208_v7, %v8285_v49 }
 0x545   :  { %v6122_v4 = vpop.f32.mrb[60].mxu1  ;;  %v8620_v21 = vadd.f32 %v2216_v38, %v8374_v20 }
 0x546   :  { %v8607_v60 = vpop.f32.mrb[61].mxu1  ;;  %v2202_v19 = vmul.f32 0.2, %v6122_v4  ;;  %vm2186_vm7 = vcmp.ge.f32.partialorder %v6122_v4, 0.0 }
 0x547   :  { %vm2185_vm13 = vcmp.ge.f32.partialorder %v8607_v60, 0.0 }
 0x548   :  { %2253 = vmax.xlane.f32.xlu0 %v8610_v61  ;;  %v2218_v53 = vsel %vm2186_vm7, %v6122_v4, %v2202_v19  ;;  %v8637_v4 = vadd.f32 %v2206_v11, %v8233_v27 }
 0x549   :  { %v6125_v1 = vpop.f32.mrb[62].mxu1  ;;  %v8626_v37 = vadd.f32 %v2218_v53, %v8389_v52 }
 0x54a   :  { %v8613_v15 = vpop.f32.mrb[63].mxu1  ;;  %v2204_v46 = vmul.f32 0.2, %v6125_v1  ;;  %vm2188_vm8 = vcmp.ge.f32.partialorder %v6125_v1, 0.0 }
 0x54b   :  { %vm2187_vm14 = vcmp.ge.f32.partialorder %v8613_v15, 0.0 }
 0x54c   :  { %2255 = vmax.xlane.f32.xlu0 %v8616_v9  ;;  %v2220_v41 = vsel %vm2188_vm8, %v6125_v1, %v2204_v46  ;;  %v7194_v46 = vpop.eup %7193 }
 0x54d   :  { %v8633_v30 = vadd.f32 %v2220_v41, %v8396_v18 }
 0x550   :  { %2259 = vmax.xlane.f32.xlu0 %v8620_v21 }
 0x554   :  { %2263 = vmax.xlane.f32.xlu0 %v8626_v37 }
 0x558   :  { %2267 = vmax.xlane.f32.xlu0 %v8633_v30 }
 0x55a   :  { %2239 = vmax.xlane.f32.xlu1 %v8637_v4 }
 0x55e   :  { %2243 = vmax.xlane.f32.xlu1 %v8642_v2 }
 0x567   :  { %v1634_v59 = vpop.permute.xlu1 %1633 }
 0x568   :  { %v1707_v1 = vmul.f32 %v8433_v62, %v1634_v59  ;;  %v1629_v38 = vpop.permute.xlu0 %1628  ;;  %v9797_v62 = vld [vmem:[#allocation8_spill] sm:$0xff] }
 0x569   :  { %v1706_v19 = vmul.f32 %v8431_v56, %v1629_v38 }
 0x56b   :  { %v1722_v53 = vpack.c.bf16 %v1707_v1, %v1706_v19 }
 0x56d   :  { %6054 = vmatprep.mubr.bf16.mxu0 %v1722_v53 }
 0x56e   :  { %2592 = vrot.lane.b32.xlu0 %v9796_v16, %s7342_s2  ;;  %v1644_v25 = vpop.permute.xlu1 %1643 }
 0x56f   :  { %v1709_v41 = vmul.f32 %v8453_v28, %v1644_v25  ;;  %v1639_v11 = vpop.permute.xlu0 %1638  ;;  %1703 = vperm.xlu1 %7050, %v7194_v46   ;;  %v9798_v28 = vld [vmem:[#allocation10_spill] sm:$0xff] }
 0x570   :  { %v1708_v22 = vmul.f32 %v8444_v35, %v1639_v11 }
 0x572   :  { %v1723_v32 = vpack.c.bf16 %v1709_v41, %v1708_v22  ;;  %2598 = vrot.lane.b32.xlu0 %v9797_v62, %s7342_s2  ;;  %v1654_v7 = vpop.permute.xlu1 %1653 }
 0x573   :  { %v1711_v56 = vmul.f32 %v8465_v17, %v1654_v7  ;;  %v1649_v59 = vpop.permute.xlu0 %1648 }
 0x574   :  { %v1710_v1 = vmul.f32 %v8455_v10, %v1649_v59  ;;  %6055 = vmatmul.mubr.bf16.vlgmr.msra.gmra.mrb[48].mxu0 %v1723_v32 }
 0x575   :  { %6787 = vmatpush3.bf16.msra.mxu0 %v9781_v44 }
 0x576   :  { %v1724_v38 = vpack.c.bf16 %v1711_v56, %v1710_v1  ;;  %2602 = vrot.lane.b32.xlu0 %v9798_v28, %s7342_s2  ;;  %v1664_v19 = vpop.permute.xlu1 %1663  ;;  %6788 = vmatprep.subr.bf16.mxu0 %v9781_v44 }
 0x577   :  { %v1713_v35 = vmul.f32 %v8476_v34, %v1664_v19  ;;  %v1659_v53 = vpop.permute.xlu0 %1658  ;;  %v2203_v19 = vmul.f32 0.2, %v8613_v15 }
 0x578   :  { %v1712_v46 = vmul.f32 %v8469_v23, %v1659_v53  ;;  %6058 = vmatprep.mubr.bf16.mxu0 %v1724_v38  ;;  %v2201_v38 = vmul.f32 0.2, %v8607_v60 }
 0x579   :  { %6789 = vmatpush3.bf16.msra.mxu0 %v9781_v44 }
 0x57a   :  { %v1725_v17 = vpack.c.bf16 %v1713_v35, %v1712_v46  ;;  %v1674_v10 = vpop.permute.xlu1 %1673  ;;  %6790 = vmatprep.subr.bf16.mxu0 %v9781_v44  ;;  %v2217_v28 = vsel %vm2185_vm13, %v8607_v60, %v2201_v38  ;;  %v9799_v60 = vld [vmem:[#allocation4_spill] sm:$0xff]  ;;  %v9800_v46 = vld [vmem:[#allocation6_spill] sm:$0xff] }
 0x57b   :  { %v1715_v16 = vmul.f32 %v8486_v33, %v1674_v10  ;;  %v1669_v25 = vpop.permute.xlu0 %1668  ;;  %v8701_v35 = vadd.f32 %v2217_v28, %v8377_v55  ;;  %v9802_v10 = vld [vmem:[#allocation7_spill] sm:$0xff] }
 0x57c   :  { %v1714_v41 = vmul.f32 %v8478_v5, %v1669_v25  ;;  %6059 = vmatmul.mubr.bf16.gmra.mrb[52].mxu0 %v1725_v17  ;;  %v9801_v17 = vld [vmem:[#allocation5_spill] sm:$0xff] }
 0x57d   :  { %6791 = vmatpush3.bf16.msra.mxu0 %v9781_v44 }
 0x57e   :  { %v1726_v11 = vpack.c.bf16 %v1715_v16, %v1714_v41  ;;  %v1684_v34 = vpop.permute.xlu1 %1683  ;;  %6792 = vmatprep.subr.bf16.mxu0 %v9781_v44 }
 0x57f   :  { %v1717_v23 = vmul.f32 %v8496_v51, %v1684_v34  ;;  %v1679_v22 = vpop.permute.xlu0 %1678 }
 0x580   :  { %v1716_v32 = vmul.f32 %v8490_v39, %v1679_v22  ;;  %6062 = vmatprep.mubr.bf16.mxu0 %v1726_v11  ;;  %v2196_v39 = vmul.f32 0.2, %v8591_v58 }
 0x581   :  { %6793 = vmatpush3.bf16.msra.mxu0 %v9781_v44 }
 0x582   :  { %v1727_v62 = vpack.c.bf16 %v1717_v23, %v1716_v32  ;;  %6794 = vmatprep.subr.bf16.mxu0 %v9781_v44  ;;  %v2212_v51 = vsel %vm2180_vm11, %v8591_v58, %v2196_v39 }
 0x583   :  { %v1694_v33 = vpop.permute.xlu0 %1693  ;;  %v1689_v5 = vpop.permute.xlu1 %1688 }
 0x584   :  { %v1719_v7 = vmul.f32 %v8506_v13, %v1694_v33  ;;  %v1718_v56 = vmul.f32 %v8498_v57, %v1689_v5  ;;  %6063 = vmatmul.mubr.bf16.gmra.mrb[56].mxu0 %v1727_v62  ;;  %v2199_v57 = vmul.f32 0.2, %v8601_v40  ;;  %v8686_v13 = vadd.f32 %v2212_v51, %v8334_v36 }
 0x585   :  { %6795 = vmatpush3.bf16.msra.mxu0 %v9781_v44 }
 0x586   :  { %v1728_v59 = vpack.c.bf16 %v1719_v7, %v1718_v56  ;;  %6796 = vmatprep.subr.bf16.mxu0 %v9781_v44  ;;  %v2215_v1 = vsel %vm2183_vm12, %v8601_v40, %v2199_v57  ;;  %v2219_v40 = vsel %vm2187_vm14, %v8613_v15, %v2203_v19  ;;  %v9803_v15 = vld [vmem:[#allocation9_spill] sm:$0xff] }
 0x587   :  { %v8694_v58 = vadd.f32 %v2215_v1, %v8360_v29  ;;  %v8706_v53 = vadd.f32 %v2219_v40, %v8199_v24 }
 0x588   :  { %6066 = vmatprep.mubr.bf16.mxu0 %v1728_v59 }
 0x589   :  { %6797 = vmatpush3.bf16.msra.mxu0 %v9781_v44 }
 0x58a   :  { %6798 = vmatprep.subr.bf16.mxu0 %v9781_v44 }
 0x58d   :  { %6799 = vmatpush3.bf16.msra.mxu0 %v9781_v44 }
 0x58e   :  { %6800 = vmatprep.subr.bf16.mxu0 %v9781_v44 }
 0x591   :  { %6801 = vmatpush3.bf16.msra.mxu0 %v9781_v44 }
 0x593   :  { %2251 = vmax.xlane.f32.xlu1 %v8686_v13 }
 0x597   :  { %2257 = vmax.xlane.f32.xlu1 %v8694_v58 }
 0x59b   :  { %2261 = vmax.xlane.f32.xlu1 %v8701_v35 }
 0x59f   :  { %2265 = vmax.xlane.f32.xlu1 %v8706_v53 }
 0x5b0   :  { %2590 = vrot.lane.b32.xlu1 %v9799_v60, %s7342_s2 }
 0x5b4   :  { %2594 = vrot.lane.b32.xlu1 %v9800_v46, %s7342_s2 }
 0x5b5   :  { %v1699_v11 = vpop.permute.xlu1 %1698 }
 0x5b8   :  { %2596 = vrot.lane.b32.xlu1 %v9801_v17, %s7342_s2 }
 0x5bc   :  { %2600 = vrot.lane.b32.xlu1 %v9802_v10, %s7342_s2 }
 0x5c0   :  { %2604 = vrot.lane.b32.xlu1 %v9803_v15, %s7342_s2 }
 0x5c1   :  { %v2238_v16 = vpop.xlane.xlu0 %2237 }
 0x5c2   :  { %v2269_v41 = vsub.f32 %v8584_v0, %v2238_v16  ;;  %v1720_v0 = vmul.f32 %v8539_v47, %v1699_v11 }
 0x5c4   :  { %v2285_v23 = vmul.f32 1.442695, %v2269_v41 }
 0x5c5   :  { %v2242_v25 = vpop.xlane.xlu0 %2241 }
 0x5c6   :  { %7195 = vpow2.f32 %v2285_v23  ;;  %v2271_v33 = vsub.f32 %v8588_v6, %v2242_v25 }
 0x5c8   :  { %v2289_v59 = vmul.f32 1.442695, %v2271_v33 }
 0x5c9   :  { %v2248_v34 = vpop.xlane.xlu0 %2247 }
 0x5ca   :  { %v2274_v38 = vsub.f32 %v8594_v14, %v2248_v34 }
 0x5cd   :  { %v2246_v32 = vpop.xlane.xlu0 %2245 }
 0x5ce   :  { %v2273_v39 = vsub.f32 %v8598_v26, %v2246_v32 }
 0x5d0   :  { %v2293_v28 = vmul.f32 1.442695, %v2273_v39  ;;  %v8728_v40 = vpop.eup %7195 }
 0x5d1   :  { %v2250_v51 = vpop.xlane.xlu0 %2249 }
 0x5d2   :  { %v2275_v6 = vsub.f32 %v8604_v3, %v2250_v51 }
 0x5d4   :  { %v2297_v47 = vmul.f32 1.442695, %v2275_v6 }
 0x5d5   :  { %v2254_v17 = vpop.xlane.xlu0 %2253 }
 0x5d6   :  { %v2277_v15 = vsub.f32 %v8610_v61, %v2254_v17 }
 0x5d8   :  { %v2301_v34 = vmul.f32 1.442695, %v2277_v15 }
 0x5d9   :  { %v2256_v10 = vpop.xlane.xlu0 %2255 }
 0x5da   :  { %v2278_v25 = vsub.f32 %v8616_v9, %v2256_v10 }
 0x5dd   :  { %v2260_v16 = vpop.xlane.xlu0 %2259 }
 0x5de   :  { %v2280_v32 = vsub.f32 %v8620_v21, %v2260_v16 }
 0x5e0   :  { %v2307_v61 = vmul.f32 1.442695, %v2280_v32 }
 0x5e7   :  { %v2240_v22 = vpop.xlane.xlu1 %2239 }
 0x5e8   :  { %v2270_v62 = vsub.f32 %v8637_v4, %v2240_v22  ;;  %v2303_v22 = vmul.f32 1.442695, %v2278_v25 }
 0x5ea   :  { %v2287_v7 = vmul.f32 1.442695, %v2270_v62  ;;  %v2264_v62 = vpop.xlane.xlu0 %2263 }
 0x5eb   :  { %v2244_v5 = vpop.xlane.xlu1 %2243 }
 0x5ec   :  { %v2272_v56 = vsub.f32 %v8642_v2, %v2244_v5  ;;  %7197 = vpow2.f32 %v2287_v7  ;;  %v2295_v2 = vmul.f32 1.442695, %v2274_v38 }
 0x5ed   :  { %7199 = vpow2.f32 %v2289_v59 }
 0x5ee   :  { %v2291_v4 = vmul.f32 1.442695, %v2272_v56  ;;  %v2282_v56 = vsub.f32 %v8626_v37, %v2264_v62  ;;  %v2268_v59 = vpop.xlane.xlu0 %2267 }
 0x5ef   :  { %v1704_v57 = vpop.permute.xlu1 %1703 }
 0x5f0   :  { %v1721_v1 = vmul.f32 %v8541_v12, %v1704_v57  ;;  %7201 = vpow2.f32 %v2291_v4  ;;  %v2311_v51 = vmul.f32 1.442695, %v2282_v56  ;;  %v2284_v57 = vsub.f32 %v8633_v30, %v2268_v59 }
 0x5f1   :  { %7203 = vpow2.f32 %v2293_v28 }
 0x5f2   :  { %v1729_v19 = vpack.c.bf16 %v1721_v1, %v1720_v0  ;;  %7205 = vpow2.f32 %v2295_v2  ;;  %v2593_v30 = vpop.permute.xlu0 %2592 }
 0x5f3   :  { %7207 = vpow2.f32 %v2297_v47 }
 0x5f4   :  { %6067 = vmatmul.mubr.bf16.gmra.mrb[60].mxu0 %v1729_v19 }
 0x5f5   :  { %6158 = vmatprep.mubr.f32.mxu0 %v8728_v40 }
 0x5f6   :  { %v8731_v12 = vpop.eup %7197  ;;  %v2599_v10 = vpop.permute.xlu0 %2598 }
 0x5f7   :  { %v8733_v14 = vpop.eup %7199 }
 0x5fa   :  { %v8737_v26 = vpop.eup %7201  ;;  %v2603_v25 = vpop.permute.xlu0 %2602 }
 0x5fb   :  { %v8739_v3 = vpop.eup %7203 }
 0x5fc   :  { %6159 = vmatmul.mubr.f32.vlgmr.msra.gmra.mrb[64].mxu0 %v8731_v12  ;;  %v8743_v60 = vpop.eup %7205 }
 0x5fd   :  { %6161 = vmatprep.mubr.f32.mxu0 %v8733_v14  ;;  %v8745_v46 = vpop.eup %7207 }
 0x600   :  { %6162 = vmatmul.mubr.f32.gmra.mrb[66].mxu0 %v8737_v26 }
 0x601   :  { %6164 = vmatprep.mubr.f32.mxu0 %v8739_v3 }
 0x604   :  { %6165 = vmatmul.mubr.f32.gmra.mrb[68].mxu0 %v8743_v60 }
 0x605   :  { %6167 = vmatprep.mubr.f32.mxu0 %v8745_v46 }
 0x620   :  { %v2252_v41 = vpop.xlane.xlu1 %2251 }
 0x621   :  { %v2276_v11 = vsub.f32 %v8686_v13, %v2252_v41 }
 0x623   :  { %v2299_v23 = vmul.f32 1.442695, %v2276_v11 }
 0x624   :  { %v2258_v33 = vpop.xlane.xlu1 %2257 }
 0x625   :  { %7209 = vpow2.f32 %v2299_v23  ;;  %v2279_v5 = vsub.f32 %v8694_v58, %v2258_v33 }
 0x626   :  { %7211 = vpow2.f32 %v2301_v34 }
 0x627   :  { %v2305_v7 = vmul.f32 1.442695, %v2279_v5  ;;  %7213 = vpow2.f32 %v2303_v22 }
 0x628   :  { %v2262_v9 = vpop.xlane.xlu1 %2261 }
 0x629   :  { %7215 = vpow2.f32 %v2305_v7  ;;  %v2281_v13 = vsub.f32 %v8701_v35, %v2262_v9  ;;  %v2315_v35 = vmul.f32 1.442695, %v2284_v57 }
 0x62a   :  { %7217 = vpow2.f32 %v2307_v61 }
 0x62b   :  { %v2309_v39 = vmul.f32 1.442695, %v2281_v13 }
 0x62c   :  { %v2266_v21 = vpop.xlane.xlu1 %2265 }
 0x62d   :  { %7219 = vpow2.f32 %v2309_v39  ;;  %v2283_v58 = vsub.f32 %v8706_v53, %v2266_v21 }
 0x62e   :  { %7221 = vpow2.f32 %v2311_v51 }
 0x62f   :  { %v8758_v0 = vpop.eup %7209  ;;  %v2313_v1 = vmul.f32 1.442695, %v2283_v58 }
 0x630   :  { %v8760_v38 = vpop.eup %7211  ;;  %6168 = vmatmul.mubr.f32.gmra.mrb[70].mxu0 %v8758_v0  ;;  %v2591_v37 = vpop.permute.xlu1 %2590 }
 0x631   :  { %7223 = vpow2.f32 %v2313_v1  ;;  %6170 = vmatprep.mubr.f32.mxu0 %v8760_v38  ;;  %6182 = vmatprep.subr.bf16.mxu0 %v2591_v37  ;;  %v8764_v4 = vpop.eup %7213 }
 0x632   :  { %6183 = vmatpush3.bf16.msra.mxu0 %v2591_v37  ;;  %7225 = vpow2.f32 %v2315_v35 }
 0x633   :  { %v8766_v28 = vpop.eup %7215  ;;  %6184 = vmatprep.subr.bf16.mxu0 %v2593_v30 }
 0x634   :  { %6171 = vmatmul.mubr.f32.gmra.mrb[72].mxu0 %v8764_v4  ;;  %v2595_v53 = vpop.permute.xlu1 %2594  ;;  %v8770_v6 = vpop.eup %7217 }
 0x635   :  { %6173 = vmatprep.mubr.f32.mxu0 %v8766_v28 }
 0x636   :  { %6185 = vmatpush3.bf16.msra.mxu0 %v2593_v30 }
 0x637   :  { %v8772_v19 = vpop.eup %7219  ;;  %6186 = vmatprep.subr.bf16.mxu0 %v2595_v53 }
 0x638   :  { %6174 = vmatmul.mubr.f32.gmra.mrb[74].mxu0 %v8770_v6  ;;  %v8776_v2 = vpop.eup %7221  ;;  %v2597_v47 = vpop.permute.xlu1 %2596 }
 0x639   :  { %6176 = vmatprep.mubr.f32.mxu0 %v8772_v19 }
 0x63a   :  { %6187 = vmatpush3.bf16.msra.mxu0 %v2595_v53 }
 0x63b   :  { %v8778_v17 = vpop.eup %7223  ;;  %6188 = vmatprep.subr.bf16.mxu0 %v2597_v47 }
 0x63c   :  { %6177 = vmatmul.mubr.f32.gmra.mrb[76].mxu0 %v8776_v2  ;;  %v8782_v15 = vpop.eup %7225  ;;  %v2601_v16 = vpop.permute.xlu1 %2600 }
 0x63d   :  { %6179 = vmatprep.mubr.f32.mxu0 %v8778_v17 }
 0x63e   :  { %6189 = vmatpush3.bf16.msra.mxu0 %v2597_v47 }
 0x63f   :  { %6190 = vmatprep.subr.bf16.mxu0 %v2599_v10 }
 0x640   :  { %6180 = vmatmul.mubr.f32.gmra.mrb[78].mxu0 %v8782_v15  ;;  %v2605_v23 = vpop.permute.xlu1 %2604 }
 0x642   :  { %6191 = vmatpush3.bf16.msra.mxu0 %v2599_v10 }
 0x643   :  { %6192 = vmatprep.subr.bf16.mxu0 %v2601_v16 }
 0x646   :  { %6193 = vmatpush3.bf16.msra.mxu0 %v2601_v16 }
 0x647   :  { %v6056_v41 = vpop.f32.mrb[48].mxu0  ;;  %6194 = vmatprep.subr.bf16.mxu0 %v2603_v25 }
 0x648   :  { %1838 = vst.msk [vmem:[#allocation2 + $0x10] sm:$0xff] %vm1835_vm15, %v6056_v41  ;;  %v1772_v11 = vpop.f32.mrb[49].mxu0 }
 0x649   :  { %1836 = vst.msk [vmem:[#allocation2] sm:$0xff] %vm1835_vm15, %v1772_v11  ;;  %v6057_v34 = vpop.f32.mrb[50].mxu0 }
 0x64a   :  { %1839 = vst.msk [vmem:[#allocation2 + $0x18] sm:$0xff] %vm1835_vm15, %v6057_v34  ;;  %v1775_v22 = vpop.f32.mrb[51].mxu0  ;;  %6195 = vmatpush3.bf16.msra.mxu0 %v2603_v25 }
 0x64b   :  { %1837 = vst.msk [vmem:[#allocation2 + $0x8] sm:$0xff] %vm1835_vm15, %v1775_v22  ;;  %6196 = vmatprep.subr.bf16.mxu0 %v2605_v23 }
 0x64e   :  { %6197 = vmatpush3.bf16.msra.mxu0 %v2605_v23 }
 0x64f   :  { %v6060_v32 = vpop.f32.mrb[52].mxu0 }
 0x650   :  { %1842 = vst.msk [vmem:[#allocation2 + $0x30] sm:$0xff] %vm1835_vm15, %v6060_v32  ;;  %v1788_v62 = vpop.f32.mrb[53].mxu0 }
 0x651   :  { %1840 = vst.msk [vmem:[#allocation2 + $0x20] sm:$0xff] %vm1835_vm15, %v1788_v62  ;;  %v6061_v33 = vpop.f32.mrb[54].mxu0 }
 0x652   :  { %1843 = vst.msk [vmem:[#allocation2 + $0x38] sm:$0xff] %vm1835_vm15, %v6061_v33  ;;  %v1791_v5 = vpop.f32.mrb[55].mxu0 }
 0x653   :  { %1841 = vst.msk [vmem:[#allocation2 + $0x28] sm:$0xff] %vm1835_vm15, %v1791_v5 }
 0x657   :  { %v6064_v7 = vpop.f32.mrb[56].mxu0 }
 0x658   :  { %1846 = vst.msk [vmem:[#allocation2 + $0x50] sm:$0xff] %vm1835_vm15, %v6064_v7  ;;  %v1804_v61 = vpop.f32.mrb[57].mxu0 }
 0x659   :  { %1844 = vst.msk [vmem:[#allocation2 + $0x40] sm:$0xff] %vm1835_vm15, %v1804_v61  ;;  %v6065_v56 = vpop.f32.mrb[58].mxu0 }
 0x65a   :  { %1847 = vst.msk [vmem:[#allocation2 + $0x58] sm:$0xff] %vm1835_vm15, %v6065_v56  ;;  %v1807_v9 = vpop.f32.mrb[59].mxu0 }
 0x65b   :  { %1845 = vst.msk [vmem:[#allocation2 + $0x48] sm:$0xff] %vm1835_vm15, %v1807_v9 }
 0x6c7   :  { %v6068_v13 = vpop.f32.mrb[60].mxu0 }
 0x6c8   :  { %1850 = vst.msk [vmem:[#allocation2 + $0x70] sm:$0xff] %vm1835_vm15, %v6068_v13  ;;  %v1820_v59 = vpop.f32.mrb[61].mxu0 }
 0x6c9   :  { %1848 = vst.msk [vmem:[#allocation2 + $0x60] sm:$0xff] %vm1835_vm15, %v1820_v59  ;;  %v6069_v39 = vpop.f32.mrb[62].mxu0 }
 0x6ca   :  { %1851 = vst.msk [vmem:[#allocation2 + $0x78] sm:$0xff] %vm1835_vm15, %v6069_v39  ;;  %v1823_v51 = vpop.f32.mrb[63].mxu0 }
 0x6cb   :  { %1849 = vst.msk [vmem:[#allocation2 + $0x68] sm:$0xff] %vm1835_vm15, %v1823_v51 }
 0x6cf   :  { %v6160_v21 = vpop.f32.mrb[64].mxu0 }
 0x6d0   :  { %7227 = vrcp.f32 %v6160_v21  ;;  %v2383_v57 = vpop.f32.mrb[65].mxu0 }
 0x6d1   :  { %7229 = vrcp.f32 %v2383_v57 }
 0x6d3   :  { %v6163_v58 = vpop.f32.mrb[66].mxu0 }
 0x6d4   :  { %7231 = vrcp.f32 %v6163_v58  ;;  %v2393_v1 = vpop.f32.mrb[67].mxu0 }
 0x6d5   :  { %7233 = vrcp.f32 %v2393_v1 }
 0x6d7   :  { %v6166_v37 = vpop.f32.mrb[68].mxu0 }
 0x6d8   :  { %7235 = vrcp.f32 %v6166_v37  ;;  %v2403_v35 = vpop.f32.mrb[69].mxu0 }
 0x6d9   :  { %7237 = vrcp.f32 %v2403_v35 }
 0x6da   :  { %v7228_v30 = vpop.eup %7227 }
 0x6db   :  { %v7230_v53 = vpop.eup %7229  ;;  %2485 = vperm.xlu0 %7049, %v7228_v30  }
 0x6dc   :  { %2480 = vperm.xlu1 %7050, %v7230_v53  }
 0x6de   :  { %v7232_v47 = vpop.eup %7231 }
 0x6df   :  { %v7234_v10 = vpop.eup %7233 }
 0x6e0   :  { %2495 = vperm.xlu1 %7050, %v7232_v47   ;;  %2490 = vperm.xlu0 %7049, %v7234_v10  }
 0x6e2   :  { %v7236_v16 = vpop.eup %7235 }
 0x6e3   :  { %v7238_v25 = vpop.eup %7237 }
 0x6e4   :  { %2505 = vperm.xlu0 %7049, %v7236_v16   ;;  %2500 = vperm.xlu1 %7050, %v7238_v25  }
 0x703   :  { %v6169_v41 = vpop.f32.mrb[70].mxu0 }
 0x704   :  { %7239 = vrcp.f32 %v6169_v41  ;;  %v2413_v11 = vpop.f32.mrb[71].mxu0 }
 0x705   :  { %7241 = vrcp.f32 %v2413_v11 }
 0x707   :  { %v6172_v34 = vpop.f32.mrb[72].mxu0 }
 0x708   :  { %7243 = vrcp.f32 %v6172_v34  ;;  %v2423_v23 = vpop.f32.mrb[73].mxu0 }
 0x709   :  { %7245 = vrcp.f32 %v2423_v23 }
 0x70b   :  { %v6175_v22 = vpop.f32.mrb[74].mxu0 }
 0x70c   :  { %7247 = vrcp.f32 %v6175_v22  ;;  %v2433_v32 = vpop.f32.mrb[75].mxu0 }
 0x70d   :  { %7249 = vrcp.f32 %v2433_v32 }
 0x70e   :  { %v7240_v62 = vpop.eup %7239 }
 0x70f   :  { %v7242_v33 = vpop.eup %7241  ;;  %2515 = vperm.xlu1 %7050, %v7240_v62   ;;  %v6178_v5 = vpop.f32.mrb[76].mxu0 }
 0x710   :  { %7251 = vrcp.f32 %v6178_v5  ;;  %2510 = vperm.xlu0 %7049, %v7242_v33   ;;  %v2443_v7 = vpop.f32.mrb[77].mxu0 }
 0x711   :  { %7253 = vrcp.f32 %v2443_v7 }
 0x712   :  { %v7244_v61 = vpop.eup %7243 }
 0x713   :  { %v7246_v56 = vpop.eup %7245  ;;  %2525 = vperm.xlu1 %7050, %v7244_v61   ;;  %v6181_v9 = vpop.f32.mrb[78].mxu0 }
 0x714   :  { %7255 = vrcp.f32 %v6181_v9  ;;  %2520 = vperm.xlu0 %7049, %v7246_v56   ;;  %v2453_v13 = vpop.f32.mrb[79].mxu0 }
 0x715   :  { %7257 = vrcp.f32 %v2453_v13 }
 0x716   :  { %v7248_v59 = vpop.eup %7247 }
 0x717   :  { %v7250_v39 = vpop.eup %7249  ;;  %2535 = vperm.xlu1 %7050, %v7248_v59  }
 0x718   :  { %2530 = vperm.xlu0 %7049, %v7250_v39  }
 0x71a   :  { %v7252_v51 = vpop.eup %7251 }
 0x71b   :  { %v7254_v21 = vpop.eup %7253  ;;  %2545 = vperm.xlu1 %7050, %v7252_v51  }
 0x71c   :  { %2540 = vperm.xlu0 %7049, %v7254_v21  }
 0x71e   :  { %v7256_v57 = vpop.eup %7255 }
 0x71f   :  { %v7258_v58 = vpop.eup %7257  ;;  %2555 = vperm.xlu1 %7050, %v7256_v57  }
 0x720   :  { %2550 = vperm.xlu0 %7049, %v7258_v58  }
 0x75a   :  { %v2486_v1 = vpop.permute.xlu0 %2485 }
 0x75b   :  { %v2559_v37 = vmul.f32 %v8731_v12, %v2486_v1  ;;  %v2481_v35 = vpop.permute.xlu1 %2480 }
 0x75c   :  { %v2558_v30 = vmul.f32 %v8728_v40, %v2481_v35 }
 0x75e   :  { %v2574_v53 = vpack.c.bf16 %v2559_v37, %v2558_v30 }
 0x75f   :  { %v2491_v47 = vpop.permute.xlu0 %2490  ;;  %v2496_v10 = vpop.permute.xlu1 %2495 }
 0x760   :  { %v2560_v16 = vmul.f32 %v8733_v14, %v2491_v47  ;;  %v2561_v25 = vmul.f32 %v8737_v26, %v2496_v10  ;;  %6198 = vmatprep.mubr.bf16.mxu0 %v2574_v53 }
 0x762   :  { %v2575_v41 = vpack.c.bf16 %v2561_v25, %v2560_v16 }
 0x763   :  { %v2506_v11 = vpop.permute.xlu0 %2505  ;;  %v2501_v34 = vpop.permute.xlu1 %2500 }
 0x764   :  { %v2563_v23 = vmul.f32 %v8743_v60, %v2506_v11  ;;  %v2562_v22 = vmul.f32 %v8739_v3, %v2501_v34  ;;  %6199 = vmatmul.mubr.bf16.vlgmr.msra.gmra.mrb[80].mxu0 %v2575_v41 }
 0x766   :  { %v2576_v12 = vpack.c.bf16 %v2563_v23, %v2562_v22 }
 0x768   :  { %6202 = vmatprep.mubr.bf16.mxu0 %v2576_v12 }
 0x78e   :  { %v2516_v32 = vpop.permute.xlu1 %2515 }
 0x78f   :  { %v2565_v40 = vmul.f32 %v8758_v0, %v2516_v32  ;;  %v2511_v62 = vpop.permute.xlu0 %2510 }
 0x790   :  { %v2564_v33 = vmul.f32 %v8745_v46, %v2511_v62 }
 0x792   :  { %v2577_v14 = vpack.c.bf16 %v2565_v40, %v2564_v33  ;;  %v2526_v5 = vpop.permute.xlu1 %2525  ;;  %v8845_v40 = vld [vmem:[%s9804_s4] ss:$0 sm:$0xff] }
 0x793   :  { %v2567_v26 = vmul.f32 %v8764_v4, %v2526_v5  ;;  %v2521_v7 = vpop.permute.xlu0 %2520 }
 0x794   :  { %v2566_v61 = vmul.f32 %v8760_v38, %v2521_v7  ;;  %6203 = vmatmul.mubr.bf16.gmra.mrb[84].mxu0 %v2577_v14 }
 0x796   :  { %v2578_v60 = vpack.c.bf16 %v2567_v26, %v2566_v61  ;;  %v2536_v56 = vpop.permute.xlu1 %2535 }
 0x797   :  { %v2569_v3 = vmul.f32 %v8770_v6, %v2536_v56  ;;  %v2531_v9 = vpop.permute.xlu0 %2530 }
 0x798   :  { %v2568_v13 = vmul.f32 %v8766_v28, %v2531_v9  ;;  %6206 = vmatprep.mubr.bf16.mxu0 %v2578_v60  ;;  %v7343_v28 = vmov 0.0|0.0  }
 0x799   :  { %6802 = vmatprep.subr.bf16.mxu1 %v7343_v28  ;;  %6826 = vmatprep.subr.bf16.mxu0 %v7343_v28 }
 0x79a   :  { %v2579_v0 = vpack.c.bf16 %v2569_v3, %v2568_v13  ;;  %v2546_v59 = vpop.permute.xlu1 %2545 }
 0x79b   :  { %v2571_v46 = vmul.f32 %v8776_v2, %v2546_v59  ;;  %v2541_v39 = vpop.permute.xlu0 %2540 }
 0x79c   :  { %v2570_v51 = vmul.f32 %v8772_v19, %v2541_v39  ;;  %6207 = vmatmul.mubr.bf16.gmra.mrb[88].mxu0 %v2579_v0 }
 0x79e   :  { %v2580_v4 = vpack.c.bf16 %v2571_v46, %v2570_v51  ;;  %v2556_v21 = vpop.permute.xlu1 %2555 }
 0x79f   :  { %v2573_v38 = vmul.f32 %v8782_v15, %v2556_v21  ;;  %v2551_v57 = vpop.permute.xlu0 %2550 }
 0x7a0   :  { %v2572_v58 = vmul.f32 %v8778_v17, %v2551_v57  ;;  %6210 = vmatprep.mubr.bf16.mxu0 %v2580_v4 }
 0x7a2   :  { %v2581_v6 = vpack.c.bf16 %v2573_v38, %v2572_v58 }
 0x7a4   :  { %6211 = vmatmul.mubr.bf16.gmra.mrb[92].mxu0 %v2581_v6 }
 0x7a5   :  { %6281 = vmatprep.mubr.msk.f32.mxu0 %vm7344_vm3, %v9782_v31 }
 0x837   :  { %v6200_v2 = vpop.f32.mrb[80].mxu0 }
 0x838   :  { %v2648_v1 = vpop.f32.mrb[81].mxu0 }
 0x839   :  { %2727 = vrot.lane.b32.xlu0 %v2648_v1, %s7342_s2  ;;  %v6201_v19 = vpop.f32.mrb[82].mxu0 }
 0x83a   :  { %v2651_v37 = vpop.f32.mrb[83].mxu0 }
 0x83b   :  { %2729 = vrot.lane.b32.xlu1 %v2651_v37, %s7342_s2 }
 0x83d   :  { %2731 = vrot.lane.b32.xlu0 %v6200_v2, %s7342_s2 }
 0x83f   :  { %2733 = vrot.lane.b32.xlu1 %v6201_v19, %s7342_s2 }
 0x867   :  { %v6204_v17 = vpop.f32.mrb[84].mxu0 }
 0x868   :  { %v2664_v15 = vpop.f32.mrb[85].mxu0 }
 0x869   :  { %2735 = vrot.lane.b32.xlu0 %v2664_v15, %s7342_s2  ;;  %v6205_v35 = vpop.f32.mrb[86].mxu0 }
 0x86a   :  { %v2667_v30 = vpop.f32.mrb[87].mxu0 }
 0x86b   :  { %2737 = vrot.lane.b32.xlu1 %v2667_v30, %s7342_s2 }
 0x86d   :  { %2739 = vrot.lane.b32.xlu0 %v6204_v17, %s7342_s2 }
 0x86f   :  { %2741 = vrot.lane.b32.xlu1 %v6205_v35, %s7342_s2  ;;  %v6208_v53 = vpop.f32.mrb[88].mxu0 }
 0x870   :  { %v2680_v47 = vpop.f32.mrb[89].mxu0 }
 0x871   :  { %2743 = vrot.lane.b32.xlu0 %v2680_v47, %s7342_s2  ;;  %v6209_v10 = vpop.f32.mrb[90].mxu0 }
 0x872   :  { %v2683_v16 = vpop.f32.mrb[91].mxu0 }
 0x873   :  { %2745 = vrot.lane.b32.xlu1 %v2683_v16, %s7342_s2 }
 0x875   :  { %2747 = vrot.lane.b32.xlu0 %v6208_v53, %s7342_s2 }
 0x877   :  { %2749 = vrot.lane.b32.xlu1 %v6209_v10, %s7342_s2  ;;  %v6212_v25 = vpop.f32.mrb[92].mxu0 }
 0x878   :  { %v2696_v41 = vpop.f32.mrb[93].mxu0 }
 0x879   :  { %2751 = vrot.lane.b32.xlu0 %v2696_v41, %s7342_s2  ;;  %v6213_v11 = vpop.f32.mrb[94].mxu0 }
 0x87a   :  { %v2699_v34 = vpop.f32.mrb[95].mxu0 }
 0x87b   :  { %2753 = vrot.lane.b32.xlu1 %v2699_v34, %s7342_s2 }
 0x87d   :  { %2755 = vrot.lane.b32.xlu0 %v6212_v25, %s7342_s2 }
 0x87f   :  { %2757 = vrot.lane.b32.xlu1 %v6213_v11, %s7342_s2 }
 0x8ab   :  { %v2728_v23 = vpop.permute.xlu0 %2727 }
 0x8ac   :  { %2776 = vst.msk [vmem:[#allocation2] sm:$0xff] %vm2775_vm4, %v2728_v23 }
 0x8ad   :  { %v2730_v22 = vpop.permute.xlu1 %2729 }
 0x8ae   :  { %2777 = vst.msk [vmem:[#allocation2 + $0x8] sm:$0xff] %vm2775_vm4, %v2730_v22 }
 0x8af   :  { %v2732_v12 = vpop.permute.xlu0 %2731 }
 0x8b0   :  { %2778 = vst.msk [vmem:[#allocation2 + $0x10] sm:$0xff] %vm2775_vm4, %v2732_v12 }
 0x8b1   :  { %v2734_v32 = vpop.permute.xlu1 %2733 }
 0x8b2   :  { %2779 = vst.msk [vmem:[#allocation2 + $0x18] sm:$0xff] %vm2775_vm4, %v2734_v32 }
 0x8b3   :  { %v2792_v62 = vld [vmem:[#allocation2] sm:$0xff] }
 0x8b4   :  { %v2815_v33 = vadd.f32 %v8845_v40, %v2792_v62 }
 0x8b5   :  { %v2793_v14 = vld [vmem:[#allocation2 + $0x8] sm:$0xff] }
 0x8b6   :  { %v2816_v5 = vadd.f32 %v8845_v40, %v2793_v14  ;;  %v2847_v26 = vmul.f32 0.01, %v2815_v33  ;;  %vm2831_vm5 = vcmp.ge.f32.partialorder %v2815_v33, 0.0 }
 0x8b7   :  { %v2794_v7 = vld [vmem:[#allocation2 + $0x10] sm:$0xff] }
 0x8b8   :  { %vm2832_vm6 = vcmp.ge.f32.partialorder %v2816_v5, 0.0  ;;  %v2848_v61 = vmul.f32 0.01, %v2816_v5  ;;  %v2817_v60 = vadd.f32 %v8845_v40, %v2794_v7  ;;  %v8851_v3 = vsel %vm2831_vm5, %v2815_v33, %v2847_v26 }
 0x8b9   :  { %v2795_v56 = vld [vmem:[#allocation2 + $0x18] sm:$0xff] }
 0x8ba   :  { %v8853_v9 = vsel %vm2832_vm6, %v2816_v5, %v2848_v61  ;;  %v2818_v13 = vadd.f32 %v8845_v40, %v2795_v56  ;;  %v2849_v0 = vmul.f32 0.01, %v2817_v60  ;;  %vm2833_vm7 = vcmp.ge.f32.partialorder %v2817_v60, 0.0 }
 0x8bb   :  { %v6803_v59 = vpack.c.bf16 %v8853_v9, %v8851_v3 }
 0x8bc   :  { %vm2834_vm8 = vcmp.ge.f32.partialorder %v2818_v13, 0.0  ;;  %v2850_v46 = vmul.f32 0.01, %v2818_v13  ;;  %v8859_v39 = vsel %vm2833_vm7, %v2817_v60, %v2849_v0 }
 0x8bd   :  { %6804 = vmatpush3.bf16.msra.mxu1 %v6803_v59 }
 0x8be   :  { %6805 = vmatprep.subr.bf16.mxu1 %v7343_v28  ;;  %v8861_v51 = vsel %vm2834_vm8, %v2818_v13, %v2850_v46 }
 0x8bf   :  { %v6806_v4 = vpack.c.bf16 %v8861_v51, %v8859_v39 }
 0x8c1   :  { %6807 = vmatpush3.bf16.msra.mxu1 %v6806_v4 }
 0x8c2   :  { %6808 = vmatprep.subr.bf16.mxu1 %v7343_v28 }
 0x8db   :  { %v2736_v21 = vpop.permute.xlu0 %2735 }
 0x8dc   :  { %2780 = vst.msk [vmem:[#allocation2 + $0x20] sm:$0xff] %vm2775_vm4, %v2736_v21 }
 0x8dd   :  { %v2738_v38 = vpop.permute.xlu1 %2737 }
 0x8de   :  { %2781 = vst.msk [vmem:[#allocation2 + $0x28] sm:$0xff] %vm2775_vm4, %v2738_v38 }
 0x8df   :  { %v2740_v57 = vpop.permute.xlu0 %2739 }
 0x8e0   :  { %2782 = vst.msk [vmem:[#allocation2 + $0x30] sm:$0xff] %vm2775_vm4, %v2740_v57 }
 0x8e1   :  { %v2742_v58 = vpop.permute.xlu1 %2741 }
 0x8e2   :  { %2783 = vst.msk [vmem:[#allocation2 + $0x38] sm:$0xff] %vm2775_vm4, %v2742_v58 }
 0x8e3   :  { %v2744_v6 = vpop.permute.xlu0 %2743  ;;  %v2796_v2 = vld [vmem:[#allocation2 + $0x20] sm:$0xff] }
 0x8e4   :  { %2784 = vst.msk [vmem:[#allocation2 + $0x40] sm:$0xff] %vm2775_vm4, %v2744_v6  ;;  %v2819_v1 = vadd.f32 %v8845_v40, %v2796_v2 }
 0x8e5   :  { %v2746_v19 = vpop.permute.xlu1 %2745  ;;  %v2797_v37 = vld [vmem:[#allocation2 + $0x28] sm:$0xff] }
 0x8e6   :  { %2785 = vst.msk [vmem:[#allocation2 + $0x48] sm:$0xff] %vm2775_vm4, %v2746_v19  ;;  %v2820_v17 = vadd.f32 %v8845_v40, %v2797_v37  ;;  %v2851_v15 = vmul.f32 0.01, %v2819_v1  ;;  %vm2835_vm9 = vcmp.ge.f32.partialorder %v2819_v1, 0.0 }
 0x8e7   :  { %v2748_v35 = vpop.permute.xlu0 %2747  ;;  %v2798_v30 = vld [vmem:[#allocation2 + $0x30] sm:$0xff] }
 0x8e8   :  { %2786 = vst.msk [vmem:[#allocation2 + $0x50] sm:$0xff] %vm2775_vm4, %v2748_v35  ;;  %vm2836_vm10 = vcmp.ge.f32.partialorder %v2820_v17, 0.0  ;;  %v2852_v53 = vmul.f32 0.01, %v2820_v17  ;;  %v2821_v47 = vadd.f32 %v8845_v40, %v2798_v30  ;;  %v8877_v25 = vsel %vm2835_vm9, %v2819_v1, %v2851_v15 }
 0x8e9   :  { %v2750_v10 = vpop.permute.xlu1 %2749  ;;  %v2799_v16 = vld [vmem:[#allocation2 + $0x38] sm:$0xff] }
 0x8ea   :  { %2787 = vst.msk [vmem:[#allocation2 + $0x58] sm:$0xff] %vm2775_vm4, %v2750_v10  ;;  %v8879_v41 = vsel %vm2836_vm10, %v2820_v17, %v2852_v53  ;;  %v2822_v11 = vadd.f32 %v8845_v40, %v2799_v16  ;;  %v2853_v34 = vmul.f32 0.01, %v2821_v47  ;;  %vm2837_vm11 = vcmp.ge.f32.partialorder %v2821_v47, 0.0 }
 0x8eb   :  { %v2752_v23 = vpop.permute.xlu0 %2751  ;;  %v6809_v22 = vpack.c.bf16 %v8879_v41, %v8877_v25  ;;  %v2800_v12 = vld [vmem:[#allocation2 + $0x40] sm:$0xff] }
 0x8ec   :  { %2788 = vst.msk [vmem:[#allocation2 + $0x60] sm:$0xff] %vm2775_vm4, %v2752_v23  ;;  %vm2838_vm12 = vcmp.ge.f32.partialorder %v2822_v11, 0.0  ;;  %v2854_v32 = vmul.f32 0.01, %v2822_v11  ;;  %v2823_v62 = vadd.f32 %v8845_v40, %v2800_v12  ;;  %v8888_v5 = vsel %vm2837_vm11, %v2821_v47, %v2853_v34 }
 0x8ed   :  { %6810 = vmatpush3.bf16.msra.mxu1 %v6809_v22  ;;  %v2754_v33 = vpop.permute.xlu1 %2753  ;;  %v2801_v14 = vld [vmem:[#allocation2 + $0x48] sm:$0xff] }
 0x8ee   :  { %2789 = vst.msk [vmem:[#allocation2 + $0x68] sm:$0xff] %vm2775_vm4, %v2754_v33  ;;  %6811 = vmatprep.subr.bf16.mxu1 %v7343_v28  ;;  %v8890_v26 = vsel %vm2838_vm12, %v2822_v11, %v2854_v32  ;;  %v2824_v7 = vadd.f32 %v8845_v40, %v2801_v14  ;;  %v2855_v61 = vmul.f32 0.01, %v2823_v62  ;;  %vm2839_vm13 = vcmp.ge.f32.partialorder %v2823_v62, 0.0 }
 0x8ef   :  { %v2756_v60 = vpop.permute.xlu0 %2755  ;;  %v6812_v56 = vpack.c.bf16 %v8890_v26, %v8888_v5  ;;  %v2802_v13 = vld [vmem:[#allocation2 + $0x50] sm:$0xff] }
 0x8f0   :  { %2790 = vst.msk [vmem:[#allocation2 + $0x70] sm:$0xff] %vm2775_vm4, %v2756_v60  ;;  %vm2840_vm14 = vcmp.ge.f32.partialorder %v2824_v7, 0.0  ;;  %v2856_v0 = vmul.f32 0.01, %v2824_v7  ;;  %v2825_v59 = vadd.f32 %v8845_v40, %v2802_v13  ;;  %v8899_v21 = vsel %vm2839_vm13, %v2823_v62, %v2855_v61  ;;  %v9805_v61 = vld [vmem:[#allocation11_spill] sm:$0xff]  ;;  %v3135_v13 = vld [vmem:[%s9693_s9 + $0x10] sm:$0xff] }
 0x8f1   :  { %6813 = vmatpush3.bf16.msra.mxu1 %v6812_v56  ;;  %v2758_v46 = vpop.permute.xlu1 %2757  ;;  %v2803_v4 = vld [vmem:[#allocation2 + $0x58] sm:$0xff]  ;;  %vm625_vm10 = vcmp.lt.s32.totalorder %v9805_v61, 64  ;;  %v3133_v60 = vld [vmem:[%s9693_s9] sm:$0xff]  ;;  %v3134_v56 = vld [vmem:[%s9693_s9 + $0x8] sm:$0xff] }
 0x8f2   :  { %2791 = vst.msk [vmem:[#allocation2 + $0x78] sm:$0xff] %vm2775_vm4, %v2758_v46  ;;  %6814 = vmatprep.subr.bf16.mxu1 %v7343_v28  ;;  %v8901_v38 = vsel %vm2840_vm14, %v2824_v7, %v2856_v0  ;;  %v2826_v57 = vadd.f32 %v8845_v40, %v2803_v4  ;;  %v2857_v58 = vmul.f32 0.01, %v2825_v59  ;;  %vm2841_vm5 = vcmp.ge.f32.partialorder %v2825_v59, 0.0 }
 0x8f3   :  { %v6815_v6 = vpack.c.bf16 %v8901_v38, %v8899_v21  ;;  %v2804_v2 = vld [vmem:[#allocation2 + $0x60] sm:$0xff]  ;;  %v3149_v0 = vpack.c.bf16 %v3134_v56, %v3133_v60 }
 0x8f4   :  { %vm2842_vm6 = vcmp.ge.f32.partialorder %v2826_v57, 0.0  ;;  %v2858_v1 = vmul.f32 0.01, %v2826_v57  ;;  %v2827_v19 = vadd.f32 %v8845_v40, %v2804_v2  ;;  %v8908_v17 = vsel %vm2841_vm5, %v2825_v59, %v2857_v58  ;;  %v3136_v59 = vld [vmem:[%s9693_s9 + $0x18] sm:$0xff] }
 0x8f5   :  { %6816 = vmatpush3.bf16.msra.mxu1 %v6815_v6  ;;  %v2805_v37 = vld [vmem:[#allocation2 + $0x68] sm:$0xff]  ;;  %v3150_v46 = vpack.c.bf16 %v3136_v59, %v3135_v13 }
 0x8f6   :  { %6817 = vmatprep.subr.bf16.mxu1 %v7343_v28  ;;  %v8910_v15 = vsel %vm2842_vm6, %v2826_v57, %v2858_v1  ;;  %v2828_v35 = vadd.f32 %v8845_v40, %v2805_v37  ;;  %v2859_v30 = vmul.f32 0.01, %v2827_v19  ;;  %vm2843_vm4 = vcmp.ge.f32.partialorder %v2827_v19, 0.0  ;;  %v9806_v6 = vld [vmem:[#allocation12_spill] sm:$0xff] }
 0x8f7   :  { %v6818_v53 = vpack.c.bf16 %v8910_v15, %v8908_v17  ;;  %v2806_v47 = vld [vmem:[#allocation2 + $0x70] sm:$0xff] }
 0x8f8   :  { %vm2844_vm7 = vcmp.ge.f32.partialorder %v2828_v35, 0.0  ;;  %v2860_v10 = vmul.f32 0.01, %v2828_v35  ;;  %v2829_v16 = vadd.f32 %v8845_v40, %v2806_v47  ;;  %v8917_v34 = vsel %vm2843_vm4, %v2827_v19, %v2859_v30 }
 0x8f9   :  { %6819 = vmatpush3.bf16.msra.mxu1 %v6818_v53  ;;  %v2807_v11 = vld [vmem:[#allocation2 + $0x78] sm:$0xff] }
 0x8fa   :  { %6820 = vmatprep.subr.bf16.mxu1 %v7343_v28  ;;  %v8919_v23 = vsel %vm2844_vm7, %v2828_v35, %v2860_v10  ;;  %v2830_v22 = vadd.f32 %v8845_v40, %v2807_v11  ;;  %v2861_v12 = vmul.f32 0.01, %v2829_v16  ;;  %vm2845_vm8 = vcmp.ge.f32.partialorder %v2829_v16, 0.0 }
 0x8fb   :  { %v6821_v32 = vpack.c.bf16 %v8919_v23, %v8917_v34  ;;  %v7345_v40 = vmov 1.0  }
 0x8fc   :  { %vm2846_vm9 = vcmp.ge.f32.partialorder %v2830_v22, 0.0  ;;  %v2862_v62 = vmul.f32 0.01, %v2830_v22  ;;  %v8925_v33 = vsel %vm2845_vm8, %v2829_v16, %v2861_v12 }
 0x8fd   :  { %6822 = vmatpush3.bf16.msra.mxu1 %v6821_v32 }
 0x8fe   :  { %6823 = vmatprep.subr.bf16.mxu1 %v7343_v28  ;;  %v8927_v14 = vsel %vm2846_vm9, %v2830_v22, %v2862_v62 }
 0x8ff   :  { %v6824_v7 = vpack.c.bf16 %v8927_v14, %v8925_v33 }
 0x901   :  { %6825 = vmatpush3.bf16.msra.mxu1 %v6824_v7 }
 0x902   :  { %6284 = vmatprep.subr.bf16.mxu1 %v3149_v0 }
 0x904   :  { %6247 = vmatmul.mubr.msk.f32.vlgmr.msra.gmra.mrb[64].mxu1 %vm625_vm10, %v7345_v40 }
 0x905   :  { %6285 = vmatpush3.bf16.msra.mxu1 %v3149_v0 }
 0x906   :  { %6286 = vmatprep.subr.bf16.mxu1 %v3150_v46 }
 0x909   :  { %6287 = vmatpush3.bf16.msra.mxu1 %v3150_v46 }
 0x9d7   :  { %v2947_v4 = vpop.f32.mrb[64].mxu1 }
 0x9d8   :  { %v2951_v57 = vmul.f32 0.015625, %v2947_v4  ;;  %v6248_v58 = vpop.f32.mrb[65].mxu1 }
 0x9da   :  { %v2955_v2 = vrot.slane %v2951_v57, %v9806_v6 }
 0x9dc   :  { %v8949_v1 = vsub.f32 %v8851_v3, %v2955_v2  ;;  %v8952_v19 = vsub.f32 %v8853_v9, %v2955_v2  ;;  %v8955_v37 = vsub.f32 %v8859_v39, %v2955_v2  ;;  %v8958_v35 = vsub.f32 %v8861_v51, %v2955_v2 }
 0x9dd   :  { %v8965_v47 = vsub.f32 %v8877_v25, %v2955_v2  ;;  %v8972_v10 = vsub.f32 %v8879_v41, %v2955_v2  ;;  %v8976_v51 = vsub.f32 %v8888_v5, %v2955_v2  ;;  %v8979_v16 = vsub.f32 %v8890_v26, %v2955_v2 }
 0x9de   :  { %v2972_v30 = vmul.f32 %v8949_v1, %v8949_v1  ;;  %v2973_v53 = vmul.f32 %v8952_v19, %v8952_v19  ;;  %v2974_v9 = vmul.f32 %v8955_v37, %v8955_v37  ;;  %v2975_v39 = vmul.f32 %v8958_v35, %v8958_v35 }
 0x9df   :  { %v2976_v11 = vmul.f32 %v8965_v47, %v8965_v47  ;;  %v2977_v22 = vmul.f32 %v8972_v10, %v8972_v10  ;;  %v2978_v41 = vmul.f32 %v8976_v51, %v8976_v51  ;;  %v2979_v5 = vmul.f32 %v8979_v16, %v8979_v16 }
 0x9e0   :  { %v6827_v3 = vpack.c.bf16 %v2973_v53, %v2972_v30  ;;  %v6830_v25 = vpack.c.bf16 %v2975_v39, %v2974_v9  ;;  %v8991_v26 = vsub.f32 %v8899_v21, %v2955_v2  ;;  %v8994_v32 = vsub.f32 %v8901_v38, %v2955_v2  ;;  %v3140_v9 = vld [vmem:[%s9693_s9 + $0x38] sm:$0xff] }
 0x9e1   :  { %v6833_v12 = vpack.c.bf16 %v2977_v22, %v2976_v11  ;;  %v6836_v62 = vpack.c.bf16 %v2979_v5, %v2978_v41  ;;  %v9002_v56 = vsub.f32 %v8908_v17, %v2955_v2  ;;  %v9005_v13 = vsub.f32 %v8910_v15, %v2955_v2  ;;  %v3142_v11 = vld [vmem:[%s9693_s9 + $0x48] sm:$0xff]  ;;  %v3143_v41 = vld [vmem:[%s9693_s9 + $0x50] sm:$0xff]  ;;  %v3144_v5 = vld [vmem:[%s9693_s9 + $0x58] sm:$0xff] }
 0x9e2   :  { %6828 = vmatpush3.bf16.msra.mxu0 %v6827_v3  ;;  %v2980_v7 = vmul.f32 %v8991_v26, %v8991_v26  ;;  %v2981_v60 = vmul.f32 %v8994_v32, %v8994_v32  ;;  %v9009_v21 = vsub.f32 %v8917_v34, %v2955_v2  ;;  %v9016_v46 = vsub.f32 %v8919_v23, %v2955_v2  ;;  %v3139_v3 = vld [vmem:[%s9693_s9 + $0x30] sm:$0xff] }
 0x9e3   :  { %6829 = vmatprep.subr.bf16.mxu0 %v7343_v28  ;;  %v2982_v0 = vmul.f32 %v9002_v56, %v9002_v56  ;;  %v2983_v59 = vmul.f32 %v9005_v13, %v9005_v13  ;;  %v9020_v17 = vsub.f32 %v8925_v33, %v2955_v2  ;;  %v9027_v57 = vsub.f32 %v8927_v14, %v2955_v2  ;;  %v3137_v14 = vld [vmem:[%s9693_s9 + $0x20] sm:$0xff]  ;;  %v3138_v2 = vld [vmem:[%s9693_s9 + $0x28] sm:$0xff] }
 0x9e4   :  { %v6839_v38 = vpack.c.bf16 %v2981_v60, %v2980_v7  ;;  %v2984_v34 = vmul.f32 %v9009_v21, %v9009_v21  ;;  %v2985_v4 = vmul.f32 %v9016_v46, %v9016_v46  ;;  %v3151_v53 = vpack.c.bf16 %v3138_v2, %v3137_v14  ;;  %v3146_v7 = vld [vmem:[%s9693_s9 + $0x68] sm:$0xff] }
 0x9e5   :  { %v6842_v15 = vpack.c.bf16 %v2983_v59, %v2982_v0  ;;  %v2986_v58 = vmul.f32 %v9020_v17, %v9020_v17  ;;  %v2987_v33 = vmul.f32 %v9027_v57, %v9027_v57  ;;  %v3152_v39 = vpack.c.bf16 %v3140_v9, %v3139_v3  ;;  %v3148_v0 = vld [vmem:[%s9693_s9 + $0x78] sm:$0xff]  ;;  %v3259_v14 = vld [vmem:[%s9694_s10 + $0x28] sm:$0xff] }
 0x9e6   :  { %6831 = vmatpush3.bf16.msra.mxu0 %v6830_v25  ;;  %v6845_v23 = vpack.c.bf16 %v2985_v4, %v2984_v34  ;;  %6288 = vmatprep.subr.bf16.mxu1 %v3151_v53  ;;  %v3141_v25 = vld [vmem:[%s9693_s9 + $0x40] sm:$0xff]  ;;  %v3255_v34 = vld [vmem:[%s9694_s10 + $0x8] sm:$0xff]  ;;  %v3256_v4 = vld [vmem:[%s9694_s10 + $0x10] sm:$0xff] }
 0x9e7   :  { %6832 = vmatprep.subr.bf16.mxu0 %v7343_v28  ;;  %v6848_v30 = vpack.c.bf16 %v2987_v33, %v2986_v58  ;;  %6289 = vmatpush3.bf16.msra.mxu1 %v3151_v53  ;;  %v3153_v22 = vpack.c.bf16 %v3142_v11, %v3141_v25  ;;  %v3257_v58 = vld [vmem:[%s9694_s10 + $0x18] sm:$0xff]  ;;  %v3260_v53 = vld [vmem:[%s9694_s10 + $0x30] sm:$0xff] }
 0x9e8   :  { %6290 = vmatprep.subr.bf16.mxu1 %v3152_v39  ;;  %v6854_v33 = vpack.c.bf16 %v3257_v58, %v3256_v4  ;;  %v3261_v3 = vld [vmem:[%s9694_s10 + $0x38] sm:$0xff] }
 0x9e9   :  { %v6862_v9 = vpack.c.bf16 %v3261_v3, %v3260_v53 }
 0x9ea   :  { %6834 = vmatpush3.bf16.msra.mxu0 %v6833_v12  ;;  %v3154_v12 = vpack.c.bf16 %v3144_v5, %v3143_v41 }
 0x9eb   :  { %6835 = vmatprep.subr.bf16.mxu0 %v7343_v28  ;;  %6291 = vmatpush3.bf16.msra.mxu1 %v3152_v39 }
 0x9ec   :  { %6292 = vmatprep.subr.bf16.mxu1 %v3153_v22 }
 0x9ee   :  { %6837 = vmatpush3.bf16.msra.mxu0 %v6836_v62  ;;  %v3145_v62 = vld [vmem:[%s9693_s9 + $0x60] sm:$0xff] }
 0x9ef   :  { %6838 = vmatprep.subr.bf16.mxu0 %v7343_v28  ;;  %6293 = vmatpush3.bf16.msra.mxu1 %v3153_v22  ;;  %v3155_v60 = vpack.c.bf16 %v3146_v7, %v3145_v62 }
 0x9f0   :  { %6294 = vmatprep.subr.bf16.mxu1 %v3154_v12 }
 0x9f2   :  { %6840 = vmatpush3.bf16.msra.mxu0 %v6839_v38  ;;  %v3147_v38 = vld [vmem:[%s9693_s9 + $0x70] sm:$0xff] }
 0x9f3   :  { %6841 = vmatprep.subr.bf16.mxu0 %v7343_v28  ;;  %6295 = vmatpush3.bf16.msra.mxu1 %v3154_v12  ;;  %v3156_v59 = vpack.c.bf16 %v3148_v0, %v3147_v38  ;;  %v5272_v12 = vld [vmem:[%s9695_s7] ss:$0 sm:$0xff] }
 0x9f4   :  { %6296 = vmatprep.subr.bf16.mxu1 %v3155_v60  ;;  %v5273_v0 = vld [vmem:[%s9696_s8] ss:$0 sm:$0xff] }
 0x9f6   :  { %6843 = vmatpush3.bf16.msra.mxu0 %v6842_v15  ;;  %v3254_v15 = vld [vmem:[%s9694_s10] sm:$0xff] }
 0x9f7   :  { %6844 = vmatprep.subr.bf16.mxu0 %v7343_v28  ;;  %6297 = vmatpush3.bf16.msra.mxu1 %v3155_v60 }
 0x9f8   :  { %6298 = vmatprep.subr.bf16.mxu1 %v3156_v59 }
 0x9fa   :  { %6846 = vmatpush3.bf16.msra.mxu0 %v6845_v23  ;;  %v6850_v23 = vpack.c.bf16 %v3255_v34, %v3254_v15 }
 0x9fb   :  { %6847 = vmatprep.subr.bf16.mxu0 %v7343_v28  ;;  %6299 = vmatpush3.bf16.msra.mxu1 %v3156_v59 }
 0x9fe   :  { %6849 = vmatpush3.bf16.msra.mxu0 %v6848_v30  ;;  %v3258_v30 = vld [vmem:[%s9694_s10 + $0x20] sm:$0xff] }
 0x9ff   :  { %6851 = vmatprep.subr.bf16.mxu0 %v6850_v23  ;;  %v6858_v2 = vpack.c.bf16 %v3259_v14, %v3258_v30 }
 0xa01   :  { %6282 = vmatmul.mubr.msk.f32.vlgmr.msra.gmra.mrb[96].mxu0 %vm625_vm10, %v7345_v40 }
 0xa02   :  { %6853 = vmatpush3.bf16.msra.mxu0 %v6850_v23 }
 0xa03   :  { %6855 = vmatprep.subr.bf16.mxu0 %v6854_v33 }
 0xa06   :  { %6857 = vmatpush3.bf16.msra.mxu0 %v6854_v33 }
 0xa07   :  { %6859 = vmatprep.subr.bf16.mxu0 %v6858_v2 }
 0xa0a   :  { %6861 = vmatpush3.bf16.msra.mxu0 %v6858_v2 }
 0xa0b   :  { %6863 = vmatprep.subr.bf16.mxu0 %v6862_v9 }
 0xa0e   :  { %6865 = vmatpush3.bf16.msra.mxu0 %v6862_v9 }
 0xa0f   :  { %6914 = vmatprep.subr.bf16.mxu0 %v9781_v44 }
 0xad4   :  { %v3054_v39 = vpop.f32.mrb[96].mxu0 }
 0xad5   :  { %v3058_v25 = vmul.f32 0.015625, %v3054_v39  ;;  %v6283_v11 = vpop.f32.mrb[97].mxu0 }
 0xad7   :  { %v3059_v22 = vadd.f32 1e-05, %v3058_v25 }
 0xad9   :  { %7259 = vrsqrt.f32 %v3059_v22 }
 0xae3   :  { %v7260_v41 = vpop.eup %7259 }
 0xae4   :  { %v3064_v5 = vrot.slane %v7260_v41, %v9806_v6 }
 0xae6   :  { %v3065_v62 = vmul.f32 %v3064_v5, %v8949_v1  ;;  %v3066_v7 = vmul.f32 %v3064_v5, %v8952_v19  ;;  %v3067_v60 = vmul.f32 %v3064_v5, %v8955_v37  ;;  %v3068_v38 = vmul.f32 %v3064_v5, %v8958_v35 }
 0xae7   :  { %v3069_v59 = vmul.f32 %v3064_v5, %v8965_v47  ;;  %v3070_v15 = vmul.f32 %v3064_v5, %v8972_v10  ;;  %v3071_v19 = vmul.f32 %v3064_v5, %v8976_v51  ;;  %v3072_v37 = vmul.f32 %v3064_v5, %v8979_v16 }
 0xae8   :  { %v3087_v34 = vmul.f32 %v5272_v12, %v3065_v62  ;;  %v3088_v4 = vmul.f32 %v5272_v12, %v3066_v7  ;;  %v3089_v23 = vmul.f32 %v5272_v12, %v3067_v60  ;;  %v3090_v58 = vmul.f32 %v5272_v12, %v3068_v38 }
 0xae9   :  { %v3091_v33 = vmul.f32 %v5272_v12, %v3069_v59  ;;  %v3092_v1 = vmul.f32 %v5272_v12, %v3070_v15  ;;  %v3073_v10 = vmul.f32 %v3064_v5, %v8991_v26  ;;  %v3074_v39 = vmul.f32 %v3064_v5, %v8994_v32 }
 0xaea   :  { %v3109_v30 = vadd.f32 %v5273_v0, %v3087_v34  ;;  %v3110_v35 = vadd.f32 %v5273_v0, %v3088_v4  ;;  %v3111_v14 = vadd.f32 %v5273_v0, %v3089_v23  ;;  %v3112_v2 = vadd.f32 %v5273_v0, %v3090_v58 }
 0xaeb   :  { %v3113_v53 = vadd.f32 %v5273_v0, %v3091_v33  ;;  %v3114_v3 = vadd.f32 %v5273_v0, %v3092_v1  ;;  %v3093_v25 = vmul.f32 %v5272_v12, %v3071_v19  ;;  %v3094_v11 = vmul.f32 %v5272_v12, %v3072_v37 }
 0xaec   :  { %v3125_v9 = vpack.c.bf16 %v3110_v35, %v3109_v30  ;;  %v3126_v47 = vpack.c.bf16 %v3112_v2, %v3111_v14  ;;  %v3095_v41 = vmul.f32 %v5272_v12, %v3073_v10  ;;  %v3096_v51 = vmul.f32 %v5272_v12, %v3074_v39 }
 0xaed   :  { %v3127_v22 = vpack.c.bf16 %v3114_v3, %v3113_v53  ;;  %v3115_v16 = vadd.f32 %v5273_v0, %v3093_v25  ;;  %v3116_v62 = vadd.f32 %v5273_v0, %v3094_v11  ;;  %v3075_v7 = vmul.f32 %v3064_v5, %v9002_v56 }
 0xaee   :  { %6300 = vmatprep.mubr.bf16.mxu1 %v3125_v9  ;;  %v3076_v60 = vmul.f32 %v3064_v5, %v9005_v13  ;;  %v3117_v38 = vadd.f32 %v5273_v0, %v3095_v41  ;;  %v3118_v59 = vadd.f32 %v5273_v0, %v3096_v51  ;;  %v3077_v26 = vmul.f32 %v3064_v5, %v9009_v21 }
 0xaef   :  { %6301 = vmatmul.mubr.bf16.vlgmr.msra.gmra.mrb[68].mxu1 %v3126_v47  ;;  %v3078_v32 = vmul.f32 %v3064_v5, %v9016_v46  ;;  %v3128_v15 = vpack.c.bf16 %v3116_v62, %v3115_v16  ;;  %v3097_v34 = vmul.f32 %v5272_v12, %v3075_v7  ;;  %v3079_v56 = vmul.f32 %v3064_v5, %v9020_v17 }
 0xaf0   :  { %6304 = vmatprep.mubr.bf16.mxu1 %v3127_v22  ;;  %v3098_v4 = vmul.f32 %v5272_v12, %v3076_v60  ;;  %v3129_v23 = vpack.c.bf16 %v3118_v59, %v3117_v38  ;;  %v3099_v58 = vmul.f32 %v5272_v12, %v3077_v26  ;;  %v3080_v13 = vmul.f32 %v3064_v5, %v9027_v57 }
 0xaf1   :  { %v3100_v33 = vmul.f32 %v5272_v12, %v3078_v32  ;;  %v3119_v1 = vadd.f32 %v5273_v0, %v3097_v34  ;;  %v3101_v21 = vmul.f32 %v5272_v12, %v3079_v56 }
 0xaf2   :  { %v3120_v19 = vadd.f32 %v5273_v0, %v3098_v4  ;;  %v3121_v37 = vadd.f32 %v5273_v0, %v3099_v58  ;;  %v3102_v14 = vmul.f32 %v5272_v12, %v3080_v13 }
 0xaf3   :  { %v3122_v30 = vadd.f32 %v5273_v0, %v3100_v33  ;;  %v3123_v2 = vadd.f32 %v5273_v0, %v3101_v21 }
 0xaf4   :  { %v3130_v35 = vpack.c.bf16 %v3120_v19, %v3119_v1  ;;  %v3124_v53 = vadd.f32 %v5273_v0, %v3102_v14 }
 0xaf5   :  { %v3131_v46 = vpack.c.bf16 %v3122_v30, %v3121_v37 }
 0xaf6   :  { %v3132_v3 = vpack.c.bf16 %v3124_v53, %v3123_v2 }
 0xaf7   :  { %6305 = vmatmul.mubr.bf16.gmra.mrb[72].mxu1 %v3128_v15 }
 0xaf8   :  { %6308 = vmatprep.mubr.bf16.mxu1 %v3129_v23 }
 0xaff   :  { %6309 = vmatmul.mubr.bf16.gmra.mrb[76].mxu1 %v3130_v35 }
 0xb00   :  { %6312 = vmatprep.mubr.bf16.mxu1 %v3131_v46 }
 0xb07   :  { %6313 = vmatmul.mubr.bf16.gmra.mrb[80].mxu1 %v3132_v3 }
 0xbc2   :  { %v6302_v9 = vpop.f32.mrb[68].mxu1 }
 0xbc3   :  { %v3191_v47 = vpop.f32.mrb[69].mxu1 }
 0xbc4   :  { %v6303_v10 = vpop.f32.mrb[70].mxu1  ;;  %6332 = vmatprep.mubr.msk.f32.mxu0 %vm1835_vm15, %v3191_v47 }
 0xbc5   :  { %v9123_v17 = vpack.c.bf16 %v6303_v10, %v6302_v9  ;;  %v3194_v57 = vpop.f32.mrb[71].mxu1 }
 0xbc6   :  { %v9125_v5 = vpack.c.bf16 %v3194_v57, %v3191_v47  ;;  %6333 = vmatmul.mubr.msk.f32.vlgmr.msra.gmra.mrb[98].mxu0 %vm1835_vm15, %v3194_v57 }
 0xbc7   :  { %6915 = vmatpush3.bf16.msra.mxu0 %v9781_v44  ;;  %6335 = vmatprep.mubr.msk.f32.mxu0 %vm1835_vm15, %v6302_v9 }
 0xbc8   :  { %6916 = vmatprep.subr.bf16.mxu0 %v9781_v44 }
 0xbca   :  { %v6306_v12 = vpop.f32.mrb[72].mxu1  ;;  %6336 = vmatmul.mubr.msk.f32.gmra.mrb[100].mxu0 %vm1835_vm15, %v6303_v10 }
 0xbcb   :  { %6917 = vmatpush3.bf16.msra.mxu0 %v9781_v44  ;;  %v3207_v0 = vpop.f32.mrb[73].mxu1 }
 0xbcc   :  { %v6307_v39 = vpop.f32.mrb[74].mxu1  ;;  %6338 = vmatprep.mubr.msk.f32.mxu0 %vm1835_vm15, %v3207_v0  ;;  %6918 = vmatprep.subr.bf16.mxu0 %v9781_v44 }
 0xbcd   :  { %v9135_v25 = vpack.c.bf16 %v6307_v39, %v6306_v12  ;;  %v3210_v11 = vpop.f32.mrb[75].mxu1 }
 0xbce   :  { %v9137_v22 = vpack.c.bf16 %v3210_v11, %v3207_v0  ;;  %6339 = vmatmul.mubr.msk.f32.gmra.mrb[102].mxu0 %vm1835_vm15, %v3210_v11 }
 0xbcf   :  { %6919 = vmatpush3.bf16.msra.mxu0 %v9781_v44  ;;  %6341 = vmatprep.mubr.msk.f32.mxu0 %vm1835_vm15, %v6306_v12 }
 0xbd0   :  { %6920 = vmatprep.subr.bf16.mxu0 %v9781_v44 }
 0xbd2   :  { %v6310_v41 = vpop.f32.mrb[76].mxu1  ;;  %6342 = vmatmul.mubr.msk.f32.gmra.mrb[104].mxu0 %vm1835_vm15, %v6307_v39 }
 0xbd3   :  { %6921 = vmatpush3.bf16.msra.mxu0 %v9781_v44  ;;  %v3223_v51 = vpop.f32.mrb[77].mxu1 }
 0xbd4   :  { %v6311_v16 = vpop.f32.mrb[78].mxu1  ;;  %6344 = vmatprep.mubr.msk.f32.mxu0 %vm1835_vm15, %v3223_v51  ;;  %6922 = vmatprep.subr.bf16.mxu0 %v9781_v44 }
 0xbd5   :  { %v9147_v62 = vpack.c.bf16 %v6311_v16, %v6310_v41  ;;  %v3226_v7 = vpop.f32.mrb[79].mxu1 }
 0xbd6   :  { %v9149_v60 = vpack.c.bf16 %v3226_v7, %v3223_v51  ;;  %6345 = vmatmul.mubr.msk.f32.gmra.mrb[106].mxu0 %vm1835_vm15, %v3226_v7 }
 0xbd7   :  { %6923 = vmatpush3.bf16.msra.mxu0 %v9781_v44  ;;  %6347 = vmatprep.mubr.msk.f32.mxu0 %vm1835_vm15, %v6310_v41 }
 0xbd8   :  { %6924 = vmatprep.subr.bf16.mxu0 %v9781_v44 }
 0xbda   :  { %v6314_v38 = vpop.f32.mrb[80].mxu1  ;;  %6348 = vmatmul.mubr.msk.f32.gmra.mrb[108].mxu0 %vm1835_vm15, %v6311_v16 }
 0xbdb   :  { %6925 = vmatpush3.bf16.msra.mxu0 %v9781_v44  ;;  %v3239_v59 = vpop.f32.mrb[81].mxu1 }
 0xbdc   :  { %v6315_v26 = vpop.f32.mrb[82].mxu1  ;;  %6350 = vmatprep.mubr.msk.f32.mxu0 %vm1835_vm15, %v3239_v59  ;;  %6926 = vmatprep.subr.bf16.mxu0 %v9781_v44 }
 0xbdd   :  { %v9159_v32 = vpack.c.bf16 %v6315_v26, %v6314_v38  ;;  %v3242_v15 = vpop.f32.mrb[83].mxu1 }
 0xbde   :  { %v9161_v34 = vpack.c.bf16 %v3242_v15, %v3239_v59  ;;  %6351 = vmatmul.mubr.msk.f32.gmra.mrb[110].mxu0 %vm1835_vm15, %v3242_v15 }
 0xbdf   :  { %6927 = vmatpush3.bf16.msra.mxu0 %v9781_v44  ;;  %6353 = vmatprep.mubr.msk.f32.mxu0 %vm1835_vm15, %v6314_v38 }
 0xbe0   :  { %6928 = vmatprep.subr.bf16.mxu0 %v9781_v44 }
 0xbe2   :  { %6354 = vmatmul.mubr.msk.f32.gmra.mrb[112].mxu0 %vm1835_vm15, %v6315_v26 }
 0xbe3   :  { %6929 = vmatpush3.bf16.msra.mxu0 %v9781_v44 }
 0xbe4   :  { %6468 = vmatprep.subr.bf16.mxu0 %v9125_v5 }
 0xc99   :  { %v6334_v4 = vpop.f32.mrb[98].mxu0 }
 0xc9a   :  { %v3376_v23 = vpop.f32.mrb[99].mxu0 }
 0xc9b   :  { %v7091_v58 = vpack.i.bf16 %v6334_v4, %v3376_v23 }
 0xc9d   :  { %7092 = vrot.lane.b32.xlu0 %v7091_v58, %s7337_s27  ;;  %v6337_v33 = vpop.f32.mrb[100].mxu0 }
 0xc9e   :  { %v3386_v1 = vpop.f32.mrb[101].mxu0 }
 0xc9f   :  { %v7096_v19 = vpack.i.bf16 %v6337_v33, %v3386_v1 }
 0xca1   :  { %7097 = vrot.lane.b32.xlu1 %v7096_v19, %s7337_s27  ;;  %v6340_v56 = vpop.f32.mrb[102].mxu0 }
 0xca2   :  { %v3396_v13 = vpop.f32.mrb[103].mxu0 }
 0xca3   :  { %v7101_v37 = vpack.i.bf16 %v6340_v56, %v3396_v13 }
 0xca5   :  { %7102 = vrot.lane.b32.xlu0 %v7101_v37, %s7337_s27  ;;  %v6343_v30 = vpop.f32.mrb[104].mxu0 }
 0xca6   :  { %v3406_v35 = vpop.f32.mrb[105].mxu0 }
 0xca7   :  { %v7106_v44 = vpack.i.bf16 %v6343_v30, %v3406_v35 }
 0xca9   :  { %7107 = vrot.lane.b32.xlu1 %v7106_v44, %s7337_s27  ;;  %v6346_v21 = vpop.f32.mrb[106].mxu0 }
 0xcaa   :  { %v3416_v14 = vpop.f32.mrb[107].mxu0 }
 0xcab   :  { %v7111_v46 = vpack.i.bf16 %v6346_v21, %v3416_v14 }
 0xcad   :  { %7112 = vrot.lane.b32.xlu0 %v7111_v46, %s7337_s27  ;;  %v6349_v2 = vpop.f32.mrb[108].mxu0 }
 0xcae   :  { %v3426_v53 = vpop.f32.mrb[109].mxu0 }
 0xcaf   :  { %v7116_v3 = vpack.i.bf16 %v6349_v2, %v3426_v53 }
 0xcb1   :  { %7117 = vrot.lane.b32.xlu1 %v7116_v3, %s7337_s27  ;;  %v6352_v9 = vpop.f32.mrb[110].mxu0 }
 0xcb2   :  { %v3436_v47 = vpop.f32.mrb[111].mxu0 }
 0xcb3   :  { %v7121_v10 = vpack.i.bf16 %v6352_v9, %v3436_v47 }
 0xcb5   :  { %7122 = vrot.lane.b32.xlu0 %v7121_v10, %s7337_s27  ;;  %v6355_v57 = vpop.f32.mrb[112].mxu0 }
 0xcb6   :  { %v3446_v12 = vpop.f32.mrb[113].mxu0 }
 0xcb7   :  { %v7126_v0 = vpack.i.bf16 %v6355_v57, %v3446_v12 }
 0xcb9   :  { %3471 = vrot.lane.b32.xlu0 %v3376_v23, %s7338_s1  ;;  %7127 = vrot.lane.b32.xlu1 %v7126_v0, %s7337_s27 }
 0xcbd   :  { %3475 = vrot.lane.b32.xlu0 %v3386_v1, %s7338_s1  ;;  %3473 = vrot.lane.b32.xlu1 %v6334_v4, %s7338_s1 }
 0xcc1   :  { %3479 = vrot.lane.b32.xlu0 %v3396_v13, %s7338_s1  ;;  %3477 = vrot.lane.b32.xlu1 %v6337_v33, %s7338_s1 }
 0xcc5   :  { %3483 = vrot.lane.b32.xlu0 %v3406_v35, %s7338_s1  ;;  %3481 = vrot.lane.b32.xlu1 %v6340_v56, %s7338_s1 }
 0xcc9   :  { %3487 = vrot.lane.b32.xlu0 %v3416_v14, %s7338_s1  ;;  %3485 = vrot.lane.b32.xlu1 %v6343_v30, %s7338_s1 }
 0xccd   :  { %3491 = vrot.lane.b32.xlu0 %v3426_v53, %s7338_s1  ;;  %3489 = vrot.lane.b32.xlu1 %v6346_v21, %s7338_s1 }
 0xcd1   :  { %3495 = vrot.lane.b32.xlu0 %v3436_v47, %s7338_s1  ;;  %3493 = vrot.lane.b32.xlu1 %v6349_v2, %s7338_s1 }
 0xcd5   :  { %3499 = vrot.lane.b32.xlu0 %v3446_v12, %s7338_s1  ;;  %3497 = vrot.lane.b32.xlu1 %v6352_v9, %s7338_s1 }
 0xcd9   :  { %3501 = vrot.lane.b32.xlu1 %v6355_v57, %s7338_s1 }
 0xd0f   :  { %v7093_v39 = vpop.permute.xlu0 %7092 }
 0xd10   :  { %v7095_v11 = vunpack.i.h.bf16 %v7093_v39  ;;  %v7094_v41 = vunpack.i.l.bf16 %v7093_v39 }
 0xd12   :  { %v3584_v51 = vsel %vm998_vm0, 1.0, %v7095_v11  ;;  %v3583_v16 = vsel %vm998_vm0, 1.0, %v7094_v41 }
 0xd13   :  { %v6866_v7 = vpack.c.bf16 %v3584_v51, %v3583_v16  ;;  %v7098_v38 = vpop.permute.xlu1 %7097 }
 0xd14   :  { %v7100_v59 = vunpack.i.h.bf16 %v7098_v38  ;;  %v7099_v26 = vunpack.i.l.bf16 %v7098_v38 }
 0xd15   :  { %6868 = vmatprep.subr.msk.bf16.mxu1 %vm8017_vm2, %v6866_v7 }
 0xd16   :  { %v3586_v15 = vsel %vm998_vm0, 1.0, %v7100_v59  ;;  %v3585_v4 = vsel %vm998_vm0, 1.0, %v7099_v26  ;;  %6871 = vmatpush3.bf16.xpose.msk.msra.mxu1 %vm8017_vm2, %v6866_v7 }
 0xd17   :  { %v6872_v23 = vpack.c.bf16 %v3586_v15, %v3585_v4  ;;  %v7103_v58 = vpop.permute.xlu0 %7102 }
 0xd18   :  { %v7105_v33 = vunpack.i.h.bf16 %v7103_v58  ;;  %v7104_v1 = vunpack.i.l.bf16 %v7103_v58 }
 0xd19   :  { %6874 = vmatprep.subr.msk.bf16.mxu1 %vm8017_vm2, %v6872_v23 }
 0xd1a   :  { %v3588_v19 = vsel %vm998_vm0, 1.0, %v7105_v33  ;;  %v3587_v56 = vsel %vm998_vm0, 1.0, %v7104_v1 }
 0xd1b   :  { %v7108_v13 = vpop.permute.xlu1 %7107  ;;  %v6878_v37 = vpack.c.bf16 %v3588_v19, %v3587_v56 }
 0xd1c   :  { %v7110_v30 = vunpack.i.h.bf16 %v7108_v13  ;;  %v7109_v35 = vunpack.i.l.bf16 %v7108_v13 }
 0xd1e   :  { %6877 = vmatpush3.bf16.xpose.msk.msra.mxu1 %vm8017_vm2, %v6872_v23  ;;  %v3590_v44 = vsel %vm998_vm0, 1.0, %v7110_v30  ;;  %v3589_v21 = vsel %vm998_vm0, 1.0, %v7109_v35 }
 0xd1f   :  { %6880 = vmatprep.subr.msk.bf16.mxu1 %vm8017_vm2, %v6878_v37  ;;  %v7113_v14 = vpop.permute.xlu0 %7112  ;;  %v6884_v46 = vpack.c.bf16 %v3590_v44, %v3589_v21 }
 0xd20   :  { %v7115_v2 = vunpack.i.h.bf16 %v7113_v14  ;;  %v7114_v53 = vunpack.i.l.bf16 %v7113_v14 }
 0xd22   :  { %v3592_v9 = vsel %vm998_vm0, 1.0, %v7115_v2  ;;  %v3591_v47 = vsel %vm998_vm0, 1.0, %v7114_v53 }
 0xd23   :  { %v7118_v10 = vpop.permute.xlu1 %7117  ;;  %v6890_v0 = vpack.c.bf16 %v3592_v9, %v3591_v47 }
 0xd24   :  { %v7120_v39 = vunpack.i.h.bf16 %v7118_v10  ;;  %v7119_v11 = vunpack.i.l.bf16 %v7118_v10 }
 0xd26   :  { %6883 = vmatpush3.bf16.xpose.msk.msra.mxu1 %vm8017_vm2, %v6878_v37  ;;  %v3594_v41 = vsel %vm998_vm0, 1.0, %v7120_v39  ;;  %v3593_v51 = vsel %vm998_vm0, 1.0, %v7119_v11 }
 0xd27   :  { %6886 = vmatprep.subr.msk.bf16.mxu1 %vm8017_vm2, %v6884_v46  ;;  %v7123_v3 = vpop.permute.xlu0 %7122  ;;  %v6896_v16 = vpack.c.bf16 %v3594_v41, %v3593_v51 }
 0xd28   :  { %v7125_v7 = vunpack.i.h.bf16 %v7123_v3  ;;  %v7124_v38 = vunpack.i.l.bf16 %v7123_v3 }
 0xd2a   :  { %v3596_v59 = vsel %vm998_vm0, 1.0, %v7125_v7  ;;  %v3595_v26 = vsel %vm998_vm0, 1.0, %v7124_v38 }
 0xd2b   :  { %v3472_v57 = vpop.permute.xlu0 %3471  ;;  %v7128_v15 = vpop.permute.xlu1 %7127  ;;  %v6902_v4 = vpack.c.bf16 %v3596_v59, %v3595_v26 }
 0xd2c   :  { %v3519_v12 = vsel %vm998_vm0, %v3472_v57, 1.0  ;;  %v7130_v23 = vunpack.i.h.bf16 %v7128_v15  ;;  %v7129_v58 = vunpack.i.l.bf16 %v7128_v15 }
 0xd2d   :  { %6388 = vmatprep.mubr.msk.f32.mxu1 %vm1079_vm1, %v3519_v12 }
 0xd2e   :  { %6889 = vmatpush3.bf16.xpose.msk.msra.mxu1 %vm8017_vm2, %v6884_v46  ;;  %v3598_v33 = vsel %vm998_vm0, 1.0, %v7130_v23  ;;  %v3597_v1 = vsel %vm998_vm0, 1.0, %v7129_v58 }
 0xd2f   :  { %6892 = vmatprep.subr.msk.bf16.mxu1 %vm8017_vm2, %v6890_v0  ;;  %v3474_v19 = vpop.permute.xlu1 %3473  ;;  %v6908_v56 = vpack.c.bf16 %v3598_v33, %v3597_v1  ;;  %v3476_v13 = vpop.permute.xlu0 %3475 }
 0xd30   :  { %v3520_v21 = vsel %vm998_vm0, %v3474_v19, 1.0  ;;  %v3521_v14 = vsel %vm998_vm0, %v3476_v13, 1.0 }
 0xd33   :  { %v3478_v37 = vpop.permute.xlu1 %3477  ;;  %v3480_v30 = vpop.permute.xlu0 %3479 }
 0xd34   :  { %v3522_v2 = vsel %vm998_vm0, %v3478_v37, 1.0  ;;  %v3523_v3 = vsel %vm998_vm0, %v3480_v30, 1.0 }
 0xd36   :  { %6895 = vmatpush3.bf16.xpose.msk.msra.mxu1 %vm8017_vm2, %v6890_v0 }
 0xd37   :  { %6898 = vmatprep.subr.msk.bf16.mxu1 %vm8017_vm2, %v6896_v16  ;;  %v3482_v35 = vpop.permute.xlu1 %3481  ;;  %v3484_v44 = vpop.permute.xlu0 %3483 }
 0xd38   :  { %v3524_v9 = vsel %vm998_vm0, %v3482_v35, 1.0  ;;  %v3525_v47 = vsel %vm998_vm0, %v3484_v44, 1.0 }
 0xd3b   :  { %v3486_v46 = vpop.permute.xlu1 %3485  ;;  %v3488_v53 = vpop.permute.xlu0 %3487 }
 0xd3c   :  { %v3526_v57 = vsel %vm998_vm0, %v3486_v46, 1.0  ;;  %v3527_v12 = vsel %vm998_vm0, %v3488_v53, 1.0 }
 0xd3e   :  { %6901 = vmatpush3.bf16.xpose.msk.msra.mxu1 %vm8017_vm2, %v6896_v16 }
 0xd3f   :  { %6904 = vmatprep.subr.msk.bf16.mxu1 %vm8017_vm2, %v6902_v4  ;;  %v3490_v43 = vpop.permute.xlu1 %3489  ;;  %v3492_v10 = vpop.permute.xlu0 %3491 }
 0xd40   :  { %v3528_v39 = vsel %vm998_vm0, %v3490_v43, 1.0  ;;  %v3529_v41 = vsel %vm998_vm0, %v3492_v10, 1.0 }
 0xd43   :  { %v3494_v0 = vpop.permute.xlu1 %3493  ;;  %v3496_v11 = vpop.permute.xlu0 %3495 }
 0xd44   :  { %v3530_v16 = vsel %vm998_vm0, %v3494_v0, 1.0  ;;  %v3531_v7 = vsel %vm998_vm0, %v3496_v11, 1.0 }
 0xd46   :  { %6907 = vmatpush3.bf16.xpose.msk.msra.mxu1 %vm8017_vm2, %v6902_v4 }
 0xd47   :  { %6910 = vmatprep.subr.msk.bf16.mxu1 %vm8017_vm2, %v6908_v56  ;;  %v3498_v51 = vpop.permute.xlu1 %3497  ;;  %v3500_v38 = vpop.permute.xlu0 %3499 }
 0xd48   :  { %v3532_v59 = vsel %vm998_vm0, %v3498_v51, 1.0  ;;  %v3533_v26 = vsel %vm998_vm0, %v3500_v38, 1.0 }
 0xd4b   :  { %v3502_v15 = vpop.permute.xlu1 %3501 }
 0xd4c   :  { %v3534_v4 = vsel %vm998_vm0, %v3502_v15, 1.0 }
 0xd4e   :  { %6913 = vmatpush3.bf16.xpose.msk.msra.mxu1 %vm8017_vm2, %v6908_v56 }
 0xd4f   :  { %6930 = vmatprep.subr.bf16.mxu1 %v7343_v28 }
 0xd55   :  { %6389 = vmatmul.mubr.msk.f32.vlgmr.msra.gmra.mrb[66].mxu1 %vm1079_vm1, %v3520_v21 }
 0xd56   :  { %6391 = vmatprep.mubr.msk.f32.mxu1 %vm1079_vm1, %v3521_v14 }
 0xd59   :  { %6392 = vmatmul.mubr.msk.f32.gmra.mrb[84].mxu1 %vm1079_vm1, %v3522_v2 }
 0xd5a   :  { %6394 = vmatprep.mubr.msk.f32.mxu1 %vm1079_vm1, %v3523_v3 }
 0xd5d   :  { %6395 = vmatmul.mubr.msk.f32.gmra.mrb[86].mxu1 %vm1079_vm1, %v3524_v9 }
 0xd5e   :  { %6397 = vmatprep.mubr.msk.f32.mxu1 %vm1079_vm1, %v3525_v47 }
 0xd61   :  { %6398 = vmatmul.mubr.msk.f32.gmra.mrb[88].mxu1 %vm1079_vm1, %v3526_v57 }
 0xd62   :  { %6400 = vmatprep.mubr.msk.f32.mxu1 %vm1079_vm1, %v3527_v12 }
 0xd65   :  { %6401 = vmatmul.mubr.msk.f32.gmra.mrb[90].mxu1 %vm1079_vm1, %v3528_v39 }
 0xd66   :  { %6403 = vmatprep.mubr.msk.f32.mxu1 %vm1079_vm1, %v3529_v41 }
 0xd69   :  { %6404 = vmatmul.mubr.msk.f32.gmra.mrb[92].mxu1 %vm1079_vm1, %v3530_v16 }
 0xd6a   :  { %6406 = vmatprep.mubr.msk.f32.mxu1 %vm1079_vm1, %v3531_v7 }
 0xd6d   :  { %6407 = vmatmul.mubr.msk.f32.gmra.mrb[94].mxu1 %vm1079_vm1, %v3532_v59 }
 0xd6e   :  { %6409 = vmatprep.mubr.msk.f32.mxu1 %vm1079_vm1, %v3533_v26 }
 0xd71   :  { %6410 = vmatmul.mubr.msk.f32.gmra.mrb[96].mxu1 %vm1079_vm1, %v3534_v4 }
 0xd72   :  { %6532 = vmatprep.mubr.msk.f32.mxu1 %vm7344_vm3, %v9782_v31 }
 0xe28   :  { %v6390_v23 = vpop.f32.mrb[66].mxu1 }
 0xe29   :  { %vm3841_vm2 = vcmp.ge.f32.partialorder %v6390_v23, 0.0  ;;  %v3857_v58 = vmul.f32 0.2, %v6390_v23  ;;  %v3761_v33 = vpop.f32.mrb[67].mxu1 }
 0xe2a   :  { %vm3840_vm11 = vcmp.ge.f32.partialorder %v3761_v33, 0.0  ;;  %v3856_v1 = vmul.f32 0.2, %v3761_v33 }
 0xe2b   :  { %v3873_v19 = vsel %vm3841_vm2, %v6390_v23, %v3857_v58 }
 0xe2c   :  { %v3872_v56 = vsel %vm3840_vm11, %v3761_v33, %v3856_v1  ;;  %v6393_v13 = vpop.f32.mrb[84].mxu1  ;;  %v9278_v37 = vadd.f32 %v3873_v19, %v8233_v27 }
 0xe2d   :  { %v3771_v30 = vpop.f32.mrb[85].mxu1  ;;  %v9281_v35 = vadd.f32 %v3872_v56, %v8242_v45  ;;  %v3859_v44 = vmul.f32 0.2, %v6393_v13  ;;  %vm3843_vm1 = vcmp.ge.f32.partialorder %v6393_v13, 0.0 }
 0xe2e   :  { %vm3842_vm0 = vcmp.ge.f32.partialorder %v3771_v30, 0.0  ;;  %v3858_v21 = vmul.f32 0.2, %v3771_v30  ;;  %3906 = vmax.xlane.f32.xlu1 %v9278_v37 }
 0xe2f   :  { %3904 = vmax.xlane.f32.xlu0 %v9281_v35  ;;  %v3875_v27 = vsel %vm3843_vm1, %v6393_v13, %v3859_v44 }
 0xe30   :  { %v3874_v14 = vsel %vm3842_vm0, %v3771_v30, %v3858_v21  ;;  %v6396_v46 = vpop.f32.mrb[86].mxu1  ;;  %v9290_v10 = vadd.f32 %v3875_v27, %v8285_v49 }
 0xe31   :  { %v3781_v2 = vpop.f32.mrb[87].mxu1  ;;  %v9286_v53 = vadd.f32 %v3874_v14, %v8272_v54  ;;  %v3861_v3 = vmul.f32 0.2, %v6396_v46  ;;  %vm3845_vm13 = vcmp.ge.f32.partialorder %v6396_v46, 0.0 }
 0xe32   :  { %vm3844_vm12 = vcmp.ge.f32.partialorder %v3781_v2, 0.0  ;;  %v3860_v43 = vmul.f32 0.2, %v3781_v2 }
 0xe33   :  { %3908 = vmax.xlane.f32.xlu0 %v9286_v53  ;;  %v3877_v12 = vsel %vm3845_vm13, %v6396_v46, %v3861_v3 }
 0xe34   :  { %v3876_v45 = vsel %vm3844_vm12, %v3781_v2, %v3860_v43  ;;  %v6399_v9 = vpop.f32.mrb[88].mxu1  ;;  %v9298_v51 = vadd.f32 %v3877_v12, %v8309_v8 }
 0xe35   :  { %v3791_v47 = vpop.f32.mrb[89].mxu1  ;;  %v9293_v57 = vadd.f32 %v3876_v45, %v8289_v50  ;;  %v3863_v0 = vmul.f32 0.2, %v6399_v9  ;;  %vm3847_vm5 = vcmp.ge.f32.partialorder %v6399_v9, 0.0 }
 0xe36   :  { %vm3846_vm14 = vcmp.ge.f32.partialorder %v3791_v47, 0.0  ;;  %v3862_v54 = vmul.f32 0.2, %v3791_v47 }
 0xe37   :  { %3910 = vmax.xlane.f32.xlu0 %v9290_v10  ;;  %3912 = vmax.xlane.f32.xlu1 %v9293_v57  ;;  %v3879_v50 = vsel %vm3847_vm5, %v6399_v9, %v3863_v0 }
 0xe38   :  { %v3878_v39 = vsel %vm3846_vm14, %v3791_v47, %v3862_v54  ;;  %v6402_v11 = vpop.f32.mrb[90].mxu1  ;;  %v9306_v15 = vadd.f32 %v3879_v50, %v8334_v36 }
 0xe39   :  { %v3801_v41 = vpop.f32.mrb[91].mxu1  ;;  %v9301_v49 = vadd.f32 %v3878_v39, %v8313_v63  ;;  %v3865_v16 = vmul.f32 0.2, %v6402_v11  ;;  %vm3849_vm4 = vcmp.ge.f32.partialorder %v6402_v11, 0.0 }
 0xe3a   :  { %vm3848_vm6 = vcmp.ge.f32.partialorder %v3801_v41, 0.0  ;;  %v3864_v7 = vmul.f32 0.2, %v3801_v41 }
 0xe3b   :  { %3914 = vmax.xlane.f32.xlu0 %v9298_v51  ;;  %3916 = vmax.xlane.f32.xlu1 %v9301_v49  ;;  %v3881_v63 = vsel %vm3849_vm4, %v6402_v11, %v3865_v16 }
 0xe3c   :  { %v3880_v38 = vsel %vm3848_vm6, %v3801_v41, %v3864_v7  ;;  %v6405_v59 = vpop.f32.mrb[92].mxu1  ;;  %v9314_v19 = vadd.f32 %v3881_v63, %v8356_v42 }
 0xe3d   :  { %v3811_v26 = vpop.f32.mrb[93].mxu1  ;;  %v9309_v8 = vadd.f32 %v3880_v38, %v8338_v48  ;;  %v3867_v4 = vmul.f32 0.2, %v6405_v59  ;;  %vm3851_vm8 = vcmp.ge.f32.partialorder %v6405_v59, 0.0 }
 0xe3e   :  { %vm3850_vm7 = vcmp.ge.f32.partialorder %v3811_v26, 0.0  ;;  %v3866_v23 = vmul.f32 0.2, %v3811_v26 }
 0xe3f   :  { %3918 = vmax.xlane.f32.xlu0 %v9306_v15  ;;  %3920 = vmax.xlane.f32.xlu1 %v9309_v8  ;;  %v3883_v48 = vsel %vm3851_vm8, %v6405_v59, %v3867_v4 }
 0xe40   :  { %v3882_v58 = vsel %vm3850_vm7, %v3811_v26, %v3866_v23  ;;  %v6408_v33 = vpop.f32.mrb[94].mxu1  ;;  %v9322_v14 = vadd.f32 %v3883_v48, %v8374_v20 }
 0xe41   :  { %v3821_v1 = vpop.f32.mrb[95].mxu1  ;;  %v9317_v36 = vadd.f32 %v3882_v58, %v8360_v29  ;;  %v3869_v56 = vmul.f32 0.2, %v6408_v33  ;;  %vm3853_vm2 = vcmp.ge.f32.partialorder %v6408_v33, 0.0 }
 0xe42   :  { %vm3852_vm9 = vcmp.ge.f32.partialorder %v3821_v1, 0.0  ;;  %v3868_v13 = vmul.f32 0.2, %v3821_v1 }
 0xe43   :  { %3922 = vmax.xlane.f32.xlu0 %v9314_v19  ;;  %3924 = vmax.xlane.f32.xlu1 %v9317_v36  ;;  %v3885_v29 = vsel %vm3853_vm2, %v6408_v33, %v3869_v56 }
 0xe44   :  { %v3884_v30 = vsel %vm3852_vm9, %v3821_v1, %v3868_v13  ;;  %v6411_v44 = vpop.f32.mrb[96].mxu1  ;;  %v9330_v3 = vadd.f32 %v3885_v29, %v8389_v52 }
 0xe45   :  { %v3831_v21 = vpop.f32.mrb[97].mxu1  ;;  %v9325_v42 = vadd.f32 %v3884_v30, %v8377_v55  ;;  %v3871_v46 = vmul.f32 0.2, %v6411_v44  ;;  %vm3855_vm0 = vcmp.ge.f32.partialorder %v6411_v44, 0.0 }
 0xe46   :  { %vm3854_vm11 = vcmp.ge.f32.partialorder %v3831_v21, 0.0  ;;  %v3870_v2 = vmul.f32 0.2, %v3831_v21 }
 0xe47   :  { %3926 = vmax.xlane.f32.xlu0 %v9322_v14  ;;  %3928 = vmax.xlane.f32.xlu1 %v9325_v42  ;;  %v3887_v20 = vsel %vm3855_vm0, %v6411_v44, %v3871_v46 }
 0xe48   :  { %v3886_v27 = vsel %vm3854_vm11, %v3831_v21, %v3870_v2  ;;  %v9338_v55 = vadd.f32 %v3887_v20, %v8396_v18 }
 0xe49   :  { %v9333_v43 = vadd.f32 %v3886_v27, %v8199_v24 }
 0xe4b   :  { %3930 = vmax.xlane.f32.xlu0 %v9330_v3  ;;  %3932 = vmax.xlane.f32.xlu1 %v9333_v43 }
 0xe4f   :  { %3934 = vmax.xlane.f32.xlu0 %v9338_v55 }
 0xebb   :  { %v3907_v45 = vpop.xlane.xlu1 %3906 }
 0xebc   :  { %v3937_v9 = vsub.f32 %v9278_v37, %v3907_v45  ;;  %v3905_v47 = vpop.xlane.xlu0 %3904 }
 0xebd   :  { %v3936_v52 = vsub.f32 %v9281_v35, %v3905_v47 }
 0xebe   :  { %v3954_v12 = vmul.f32 1.442695, %v3937_v9 }
 0xebf   :  { %v3952_v0 = vmul.f32 1.442695, %v3936_v52 }
 0xec0   :  { %v3909_v24 = vpop.xlane.xlu0 %3908 }
 0xec1   :  { %7261 = vpow2.f32 %v3952_v0  ;;  %v3938_v54 = vsub.f32 %v9286_v53, %v3909_v24 }
 0xec2   :  { %7263 = vpow2.f32 %v3954_v12 }
 0xec3   :  { %v3956_v39 = vmul.f32 1.442695, %v3938_v54 }
 0xec4   :  { %v3911_v11 = vpop.xlane.xlu0 %3910  ;;  %v3913_v41 = vpop.xlane.xlu1 %3912 }
 0xec5   :  { %7265 = vpow2.f32 %v3956_v39  ;;  %v3939_v18 = vsub.f32 %v9290_v10, %v3911_v11  ;;  %v3940_v50 = vsub.f32 %v9293_v57, %v3913_v41 }
 0xec7   :  { %v3958_v16 = vmul.f32 1.442695, %v3939_v18  ;;  %v3960_v37 = vmul.f32 1.442695, %v3940_v50 }
 0xec8   :  { %v3915_v7 = vpop.xlane.xlu0 %3914  ;;  %v3917_v38 = vpop.xlane.xlu1 %3916 }
 0xec9   :  { %7267 = vpow2.f32 %v3958_v16  ;;  %v3941_v35 = vsub.f32 %v9298_v51, %v3915_v7  ;;  %v3942_v59 = vsub.f32 %v9301_v49, %v3917_v38 }
 0xeca   :  { %7269 = vpow2.f32 %v3960_v37 }
 0xecb   :  { %v9348_v53 = vpop.eup %7261  ;;  %v3962_v26 = vmul.f32 1.442695, %v3941_v35  ;;  %v3964_v63 = vmul.f32 1.442695, %v3942_v59 }
 0xecc   :  { %v9350_v4 = vpop.eup %7263  ;;  %6444 = vmatprep.mubr.f32.mxu0 %v9348_v53  ;;  %v3919_v10 = vpop.xlane.xlu0 %3918 }
 0xecd   :  { %v3921_v57 = vpop.xlane.xlu1 %3920  ;;  %7271 = vpow2.f32 %v3962_v26  ;;  %v3943_v23 = vsub.f32 %v9306_v15, %v3919_v10  ;;  %6445 = vmatmul.mubr.f32.vlgmr.msra.gmra.mrb[114].mxu0 %v9350_v4 }
 0xece   :  { %v3944_v58 = vsub.f32 %v9309_v8, %v3921_v57  ;;  %7273 = vpow2.f32 %v3964_v63  ;;  %6469 = vmatpush3.bf16.msra.mxu0 %v9125_v5 }
 0xecf   :  { %v9357_v51 = vpop.eup %7265  ;;  %v3966_v49 = vmul.f32 1.442695, %v3943_v23  ;;  %6470 = vmatprep.subr.bf16.mxu0 %v9123_v17 }
 0xed0   :  { %v3968_v33 = vmul.f32 1.442695, %v3944_v58  ;;  %6447 = vmatprep.mubr.f32.mxu0 %v9357_v51  ;;  %v3923_v1 = vpop.xlane.xlu0 %3922 }
 0xed1   :  { %v3925_v48 = vpop.xlane.xlu1 %3924  ;;  %7275 = vpow2.f32 %v3966_v49  ;;  %v3945_v15 = vsub.f32 %v9314_v19, %v3923_v1 }
 0xed2   :  { %v3946_v8 = vsub.f32 %v9317_v36, %v3925_v48  ;;  %7277 = vpow2.f32 %v3968_v33  ;;  %6471 = vmatpush3.bf16.msra.mxu0 %v9123_v17 }
 0xed3   :  { %v9364_v56 = vpop.eup %7267  ;;  %v3970_v5 = vmul.f32 1.442695, %v3945_v15  ;;  %6472 = vmatprep.subr.bf16.mxu0 %v9137_v22 }
 0xed4   :  { %v3972_v13 = vmul.f32 1.442695, %v3946_v8  ;;  %v9367_v30 = vpop.eup %7269  ;;  %6448 = vmatmul.mubr.f32.gmra.mrb[116].mxu0 %v9364_v56  ;;  %v3927_v44 = vpop.xlane.xlu0 %3926 }
 0xed5   :  { %v3929_v21 = vpop.xlane.xlu1 %3928  ;;  %7279 = vpow2.f32 %v3970_v5  ;;  %v3947_v19 = vsub.f32 %v9322_v14, %v3927_v44  ;;  %6450 = vmatprep.mubr.f32.mxu0 %v9367_v30 }
 0xed6   :  { %v3948_v36 = vsub.f32 %v9325_v42, %v3929_v21  ;;  %7281 = vpow2.f32 %v3972_v13  ;;  %6473 = vmatpush3.bf16.msra.mxu0 %v9137_v22 }
 0xed7   :  { %v9374_v17 = vpop.eup %7271  ;;  %v3974_v29 = vmul.f32 1.442695, %v3947_v19  ;;  %6474 = vmatprep.subr.bf16.mxu0 %v9135_v25 }
 0xed8   :  { %v3976_v46 = vmul.f32 1.442695, %v3948_v36  ;;  %v9377_v2 = vpop.eup %7273  ;;  %6451 = vmatmul.mubr.f32.gmra.mrb[118].mxu0 %v9374_v17  ;;  %v3931_v27 = vpop.xlane.xlu0 %3930  ;;  %v4655_v36 = vld [vmem:[%s9697_s3] sm:$0xff] }
 0xed9   :  { %v3933_v20 = vpop.xlane.xlu1 %3932  ;;  %7283 = vpow2.f32 %v3974_v29  ;;  %v3949_v14 = vsub.f32 %v9330_v3, %v3931_v27  ;;  %6453 = vmatprep.mubr.f32.mxu0 %v9377_v2 }
 0xeda   :  { %v3950_v42 = vsub.f32 %v9333_v43, %v3933_v20  ;;  %7285 = vpow2.f32 %v3976_v46  ;;  %6475 = vmatpush3.bf16.msra.mxu0 %v9135_v25  ;;  %v4656_v46 = vld [vmem:[%s9697_s3 + $0x8] sm:$0xff] }
 0xedb   :  { %v9384_v22 = vpop.eup %7275  ;;  %v3978_v45 = vmul.f32 1.442695, %v3949_v14  ;;  %6476 = vmatprep.subr.bf16.mxu0 %v9149_v60 }
 0xedc   :  { %v3980_v9 = vmul.f32 1.442695, %v3950_v42  ;;  %v9387_v47 = vpop.eup %7277  ;;  %6454 = vmatmul.mubr.f32.gmra.mrb[120].mxu0 %v9384_v22  ;;  %v3935_v52 = vpop.xlane.xlu0 %3934 }
 0xedd   :  { %7287 = vpow2.f32 %v3978_v45  ;;  %v3951_v3 = vsub.f32 %v9338_v55, %v3935_v52  ;;  %6456 = vmatprep.mubr.f32.mxu0 %v9387_v47 }
 0xede   :  { %7289 = vpow2.f32 %v3980_v9  ;;  %6477 = vmatpush3.bf16.msra.mxu0 %v9149_v60 }
 0xedf   :  { %v9393_v25 = vpop.eup %7279  ;;  %v3982_v43 = vmul.f32 1.442695, %v3951_v3  ;;  %6478 = vmatprep.subr.bf16.mxu0 %v9147_v62 }
 0xee0   :  { %v9396_v12 = vpop.eup %7281  ;;  %6457 = vmatmul.mubr.f32.gmra.mrb[122].mxu0 %v9393_v25 }
 0xee1   :  { %7291 = vpow2.f32 %v3982_v43  ;;  %6459 = vmatprep.mubr.f32.mxu0 %v9396_v12 }
 0xee2   :  { %6479 = vmatpush3.bf16.msra.mxu0 %v9147_v62 }
 0xee3   :  { %v9401_v55 = vpop.eup %7283  ;;  %6480 = vmatprep.subr.bf16.mxu0 %v9161_v34 }
 0xee4   :  { %v9404_v0 = vpop.eup %7285  ;;  %6460 = vmatmul.mubr.f32.gmra.mrb[124].mxu0 %v9401_v55 }
 0xee5   :  { %6462 = vmatprep.mubr.f32.mxu0 %v9404_v0 }
 0xee6   :  { %6481 = vmatpush3.bf16.msra.mxu0 %v9161_v34 }
 0xee7   :  { %v9409_v60 = vpop.eup %7287  ;;  %6482 = vmatprep.subr.bf16.mxu0 %v9159_v32 }
 0xee8   :  { %v9412_v24 = vpop.eup %7289  ;;  %6463 = vmatmul.mubr.f32.gmra.mrb[126].mxu0 %v9409_v60 }
 0xee9   :  { %6465 = vmatprep.mubr.f32.mxu0 %v9412_v24 }
 0xeea   :  { %6483 = vmatpush3.bf16.msra.mxu0 %v9159_v32 }
 0xeeb   :  { %v9417_v62 = vpop.eup %7291  ;;  %6954 = vmatprep.subr.bf16.mxu0 %v7343_v28 }
 0xeec   :  { %6466 = vmatmul.mubr.f32.gmra.mrb[128].mxu0 %v9417_v62 }
 0xfa0   :  { %v6446_v54 = vpop.f32.mrb[114].mxu0 }
 0xfa1   :  { %7293 = vrcp.f32 %v6446_v54  ;;  %v4050_v34 = vpop.f32.mrb[115].mxu0 }
 0xfa2   :  { %7295 = vrcp.f32 %v4050_v34 }
 0xfa7   :  { %v6449_v39 = vpop.f32.mrb[116].mxu0 }
 0xfa8   :  { %7297 = vrcp.f32 %v6449_v39  ;;  %v4060_v11 = vpop.f32.mrb[117].mxu0 }
 0xfa9   :  { %7299 = vrcp.f32 %v4060_v11 }
 0xfab   :  { %v7294_v41 = vpop.eup %7293  ;;  %v6452_v18 = vpop.f32.mrb[118].mxu0 }
 0xfac   :  { %v7296_v50 = vpop.eup %7295  ;;  %v4070_v16 = vpop.f32.mrb[119].mxu0  ;;  %4152 = vperm.xlu0 %7049, %v7294_v41  }
 0xfad   :  { %7301 = vrcp.f32 %v4070_v16  ;;  %4147 = vperm.xlu1 %7050, %v7296_v50  }
 0xfae   :  { %7303 = vrcp.f32 %v6452_v18 }
 0xfaf   :  { %v6455_v32 = vpop.f32.mrb[120].mxu0 }
 0xfb0   :  { %v4080_v37 = vpop.f32.mrb[121].mxu0 }
 0xfb1   :  { %7305 = vrcp.f32 %v4080_v37 }
 0xfb2   :  { %v7298_v7 = vpop.eup %7297  ;;  %7307 = vrcp.f32 %v6455_v32 }
 0xfb3   :  { %v6458_v38 = vpop.f32.mrb[122].mxu0  ;;  %4162 = vperm.xlu1 %7050, %v7298_v7   ;;  %v7300_v59 = vpop.eup %7299 }
 0xfb4   :  { %v4090_v35 = vpop.f32.mrb[123].mxu0 }
 0xfb5   :  { %7309 = vrcp.f32 %v4090_v35 }
 0xfb6   :  { %7311 = vrcp.f32 %v6458_v38 }
 0xfb7   :  { %v7302_v26 = vpop.eup %7301  ;;  %v6461_v63 = vpop.f32.mrb[124].mxu0  ;;  %4157 = vperm.xlu1 %7050, %v7300_v59  }
 0xfb8   :  { %v4100_v10 = vpop.f32.mrb[125].mxu0  ;;  %4167 = vperm.xlu0 %7049, %v7302_v26   ;;  %v7304_v57 = vpop.eup %7303 }
 0xfb9   :  { %7313 = vrcp.f32 %v4100_v10 }
 0xfba   :  { %7315 = vrcp.f32 %v6461_v63 }
 0xfbb   :  { %v7306_v23 = vpop.eup %7305  ;;  %v6464_v58 = vpop.f32.mrb[126].mxu0  ;;  %4172 = vperm.xlu1 %7050, %v7304_v57  }
 0xfbc   :  { %v4110_v49 = vpop.f32.mrb[127].mxu0  ;;  %4177 = vperm.xlu0 %7049, %v7306_v23   ;;  %v7308_v33 = vpop.eup %7307 }
 0xfbd   :  { %7317 = vrcp.f32 %v4110_v49 }
 0xfbe   :  { %7319 = vrcp.f32 %v6464_v58 }
 0xfbf   :  { %v7310_v1 = vpop.eup %7309  ;;  %4182 = vperm.xlu1 %7050, %v7308_v33   ;;  %v6467_v48 = vpop.f32.mrb[128].mxu0 }
 0xfc0   :  { %4187 = vperm.xlu0 %7049, %v7310_v1   ;;  %v4120_v15 = vpop.f32.mrb[129].mxu0  ;;  %v7312_v8 = vpop.eup %7311 }
 0xfc1   :  { %7321 = vrcp.f32 %v4120_v15 }
 0xfc2   :  { %7323 = vrcp.f32 %v6467_v48 }
 0xfc3   :  { %v7314_v5 = vpop.eup %7313  ;;  %4192 = vperm.xlu1 %7050, %v7312_v8  }
 0xfc4   :  { %4197 = vperm.xlu0 %7049, %v7314_v5   ;;  %v7316_v13 = vpop.eup %7315 }
 0xfc7   :  { %v7318_v44 = vpop.eup %7317  ;;  %4202 = vperm.xlu1 %7050, %v7316_v13  }
 0xfc8   :  { %4207 = vperm.xlu0 %7049, %v7318_v44   ;;  %v7320_v21 = vpop.eup %7319 }
 0xfcb   :  { %v7322_v19 = vpop.eup %7321  ;;  %4212 = vperm.xlu1 %7050, %v7320_v21  }
 0xfcc   :  { %4217 = vperm.xlu0 %7049, %v7322_v19   ;;  %v7324_v29 = vpop.eup %7323 }
 0xfcf   :  { %4222 = vperm.xlu1 %7050, %v7324_v29  }
 0xfd0   :  { %4658 = vperm.xlu0 %7049, %v4655_v36  }
 0xfd3   :  { %4661 = vperm.xlu1 %7050, %v4656_v46  }
0x102b   :  { %v4153_v27 = vpop.permute.xlu0 %4152 }
0x102c   :  { %v4226_v20 = vmul.f32 %v9350_v4, %v4153_v27  ;;  %v4148_v14 = vpop.permute.xlu1 %4147 }
0x102d   :  { %v4225_v42 = vmul.f32 %v9348_v53, %v4148_v14 }
0x102f   :  { %v4241_v45 = vpack.c.bf16 %v4226_v20, %v4225_v42 }
0x1031   :  { %6484 = vmatprep.mubr.bf16.mxu0 %v4241_v45 }
0x1032   :  { %v4163_v9 = vpop.permute.xlu1 %4162 }
0x1033   :  { %v4228_v3 = vmul.f32 %v9364_v56, %v4163_v9 }
0x1036   :  { %v4158_v52 = vpop.permute.xlu1 %4157 }
0x1037   :  { %v4227_v43 = vmul.f32 %v9357_v51, %v4158_v52  ;;  %v4168_v54 = vpop.permute.xlu0 %4167 }
0x1038   :  { %v4229_v11 = vmul.f32 %v9367_v30, %v4168_v54 }
0x1039   :  { %v4242_v34 = vpack.c.bf16 %v4228_v3, %v4227_v43 }
0x103a   :  { %v4173_v39 = vpop.permute.xlu1 %4172 }
0x103b   :  { %v4230_v41 = vmul.f32 %v9374_v17, %v4173_v39  ;;  %v4178_v18 = vpop.permute.xlu0 %4177  ;;  %6485 = vmatmul.mubr.bf16.vlgmr.msra.gmra.mrb[132].mxu0 %v4242_v34 }
0x103c   :  { %v4231_v53 = vmul.f32 %v9377_v2, %v4178_v18 }
0x103d   :  { %v4243_v4 = vpack.c.bf16 %v4230_v41, %v4229_v11 }
0x103e   :  { %v4183_v50 = vpop.permute.xlu1 %4182 }
0x103f   :  { %v4232_v16 = vmul.f32 %v9384_v22, %v4183_v50  ;;  %v4188_v32 = vpop.permute.xlu0 %4187  ;;  %6488 = vmatprep.mubr.bf16.mxu0 %v4243_v4 }
0x1040   :  { %v4233_v51 = vmul.f32 %v9387_v47, %v4188_v32 }
0x1041   :  { %v4244_v56 = vpack.c.bf16 %v4232_v16, %v4231_v53 }
0x1042   :  { %v4193_v37 = vpop.permute.xlu1 %4192 }
0x1043   :  { %v4234_v7 = vmul.f32 %v9393_v25, %v4193_v37  ;;  %v4198_v38 = vpop.permute.xlu0 %4197  ;;  %6489 = vmatmul.mubr.bf16.gmra.mrb[136].mxu0 %v4244_v56 }
0x1044   :  { %v4235_v35 = vmul.f32 %v9396_v12, %v4198_v38 }
0x1045   :  { %v4245_v30 = vpack.c.bf16 %v4234_v7, %v4233_v51 }
0x1046   :  { %v4203_v17 = vpop.permute.xlu1 %4202 }
0x1047   :  { %v4236_v59 = vmul.f32 %v9401_v55, %v4203_v17  ;;  %v4208_v26 = vpop.permute.xlu0 %4207  ;;  %6492 = vmatprep.mubr.bf16.mxu0 %v4245_v30  ;;  %v9448_v55 = vld [vmem:[%s9698_s11] ss:$0 sm:$0xff] }
0x1048   :  { %v4237_v63 = vmul.f32 %v9404_v0, %v4208_v26 }
0x1049   :  { %v4246_v2 = vpack.c.bf16 %v4236_v59, %v4235_v35 }
0x104a   :  { %v4213_v22 = vpop.permute.xlu1 %4212 }
0x104b   :  { %v4238_v10 = vmul.f32 %v9409_v60, %v4213_v22  ;;  %6493 = vmatmul.mubr.bf16.gmra.mrb[140].mxu0 %v4246_v2  ;;  %v4218_v47 = vpop.permute.xlu0 %4217 }
0x104c   :  { %v4239_v23 = vmul.f32 %v9412_v24, %v4218_v47 }
0x104d   :  { %v4247_v57 = vpack.c.bf16 %v4238_v10, %v4237_v63 }
0x104e   :  { %v4223_v25 = vpop.permute.xlu1 %4222 }
0x104f   :  { %v4240_v58 = vmul.f32 %v9417_v62, %v4223_v25  ;;  %6496 = vmatprep.mubr.bf16.mxu0 %v4247_v57 }
0x1051   :  { %v4248_v12 = vpack.c.bf16 %v4240_v58, %v4239_v23 }
0x1053   :  { %6497 = vmatmul.mubr.bf16.gmra.mrb[144].mxu0 %v4248_v12 }
0x1054   :  { %6567 = vmatprep.mubr.msk.f32.mxu0 %vm7344_vm3, %v9782_v31 }
0x110e   :  { %v6486_v0 = vpop.f32.mrb[132].mxu0 }
0x110f   :  { %v4298_v60 = vpop.f32.mrb[133].mxu0  ;;  %v4307_v62 = vadd.f32 %v6486_v0, %v9448_v55 }
0x1110   :  { %v4299_v49 = vadd.f32 %v9448_v55, %v4298_v60  ;;  %v6487_v33 = vpop.f32.mrb[134].mxu0 }
0x1111   :  { %v4310_v24 = vadd.f32 %v6487_v33, %v9448_v55  ;;  %v4301_v1 = vpop.f32.mrb[135].mxu0  ;;  %v4379_v5 = vmul.f32 0.01, %v4307_v62  ;;  %vm4363_vm13 = vcmp.ge.f32.partialorder %v4307_v62, 0.0 }
0x1112   :  { %v4377_v48 = vmul.f32 0.01, %v4299_v49  ;;  %v4302_v15 = vadd.f32 %v9448_v55, %v4301_v1  ;;  %vm4361_vm1 = vcmp.ge.f32.partialorder %v4299_v49, 0.0 }
0x1113   :  { %v4380_v31 = vmul.f32 0.01, %v4310_v24  ;;  %vm4364_vm12 = vcmp.ge.f32.partialorder %v4310_v24, 0.0  ;;  %v9464_v42 = vsel %vm4363_vm13, %v4307_v62, %v4379_v5 }
0x1114   :  { %vm4362_vm3 = vcmp.ge.f32.partialorder %v4302_v15, 0.0  ;;  %v4378_v8 = vmul.f32 0.01, %v4302_v15  ;;  %v9454_v13 = vsel %vm4361_vm1, %v4299_v49, %v4377_v48 }
0x1115   :  { %v9460_v29 = vsel %vm4364_vm12, %v4310_v24, %v4380_v31 }
0x1116   :  { %v9456_v44 = vsel %vm4362_vm3, %v4302_v15, %v4378_v8  ;;  %v6490_v21 = vpop.f32.mrb[136].mxu0  ;;  %v6934_v3 = vpack.c.bf16 %v9460_v29, %v9464_v42 }
0x1117   :  { %v6931_v19 = vpack.c.bf16 %v9456_v44, %v9454_v13  ;;  %v4314_v36 = vpop.f32.mrb[137].mxu0  ;;  %v4323_v45 = vadd.f32 %v6490_v21, %v9448_v55  ;;  %v4659_v21 = vpop.permute.xlu0 %4658 }
0x1118   :  { %v4315_v46 = vadd.f32 %v9448_v55, %v4314_v36  ;;  %v6491_v27 = vpop.f32.mrb[138].mxu0  ;;  %vm4663_vm12 = vcmp.eq.s32.totalorder %v4659_v21, %v9805_v61 }
0x1119   :  { %v4326_v20 = vadd.f32 %v6491_v27, %v9448_v55  ;;  %v4317_v14 = vpop.f32.mrb[139].mxu0  ;;  %6932 = vmatpush3.bf16.msra.mxu1 %v6931_v19  ;;  %v4383_v34 = vmul.f32 0.01, %v4323_v45  ;;  %vm4367_vm4 = vcmp.ge.f32.partialorder %v4323_v45, 0.0 }
0x111a   :  { %v4381_v9 = vmul.f32 0.01, %v4315_v46  ;;  %v4318_v52 = vadd.f32 %v9448_v55, %v4317_v14  ;;  %6933 = vmatprep.subr.bf16.mxu1 %v7343_v28  ;;  %vm4365_vm14 = vcmp.ge.f32.partialorder %v4315_v46, 0.0 }
0x111b   :  { %v4384_v43 = vmul.f32 0.01, %v4326_v20  ;;  %vm4368_vm6 = vcmp.ge.f32.partialorder %v4326_v20, 0.0  ;;  %v9482_v37 = vsel %vm4367_vm4, %v4323_v45, %v4383_v34  ;;  %vm4954_vm4 = vcmask 130048  }
0x111c   :  { %vm4366_vm5 = vcmp.ge.f32.partialorder %v4318_v52, 0.0  ;;  %v4382_v54 = vmul.f32 0.01, %v4318_v52  ;;  %v9471_v39 = vsel %vm4365_vm14, %v4315_v46, %v4381_v9  ;;  %vm4857_vm14 = vcmask 261120  }
0x111d   :  { %6935 = vmatpush3.bf16.msra.mxu1 %v6934_v3  ;;  %v9478_v50 = vsel %vm4368_vm6, %v4326_v20, %v4384_v43 }
0x111e   :  { %v9473_v11 = vsel %vm4366_vm5, %v4318_v52, %v4382_v54  ;;  %v6494_v41 = vpop.f32.mrb[140].mxu0  ;;  %6936 = vmatprep.subr.bf16.mxu1 %v7343_v28  ;;  %v6940_v30 = vpack.c.bf16 %v9478_v50, %v9482_v37 }
0x111f   :  { %v6937_v18 = vpack.c.bf16 %v9473_v11, %v9471_v39  ;;  %v4330_v4 = vpop.f32.mrb[141].mxu0  ;;  %v4339_v51 = vadd.f32 %v6494_v41, %v9448_v55 }
0x1120   :  { %v4331_v53 = vadd.f32 %v9448_v55, %v4330_v4  ;;  %v6495_v16 = vpop.f32.mrb[142].mxu0 }
0x1121   :  { %v4342_v32 = vadd.f32 %v6495_v16, %v9448_v55  ;;  %v4333_v56 = vpop.f32.mrb[143].mxu0  ;;  %6938 = vmatpush3.bf16.msra.mxu1 %v6937_v18  ;;  %v4387_v59 = vmul.f32 0.01, %v4339_v51  ;;  %vm4371_vm2 = vcmp.ge.f32.partialorder %v4339_v51, 0.0 }
0x1122   :  { %v4385_v7 = vmul.f32 0.01, %v4331_v53  ;;  %v4334_v38 = vadd.f32 %v9448_v55, %v4333_v56  ;;  %6939 = vmatprep.subr.bf16.mxu1 %v7343_v28  ;;  %vm4369_vm7 = vcmp.ge.f32.partialorder %v4331_v53, 0.0 }
0x1123   :  { %v4388_v17 = vmul.f32 0.01, %v4342_v32  ;;  %vm4372_vm9 = vcmp.ge.f32.partialorder %v4342_v32, 0.0  ;;  %v4403_v12 = vsel %vm4371_vm2, %v4339_v51, %v4387_v59 }
0x1124   :  { %vm4370_vm8 = vcmp.ge.f32.partialorder %v4334_v38, 0.0  ;;  %v4386_v35 = vmul.f32 0.01, %v4334_v38  ;;  %v9489_v26 = vsel %vm4369_vm7, %v4331_v53, %v4385_v7 }
0x1125   :  { %6941 = vmatpush3.bf16.msra.mxu1 %v6940_v30  ;;  %v9496_v47 = vsel %vm4372_vm9, %v4342_v32, %v4388_v17 }
0x1126   :  { %v9491_v2 = vsel %vm4370_vm8, %v4334_v38, %v4386_v35  ;;  %v6498_v22 = vpop.f32.mrb[144].mxu0  ;;  %6942 = vmatprep.subr.bf16.mxu1 %v7343_v28  ;;  %v6946_v33 = vpack.c.bf16 %v9496_v47, %v4403_v12 }
0x1127   :  { %v6943_v63 = vpack.c.bf16 %v9491_v2, %v9489_v26  ;;  %v4346_v10 = vpop.f32.mrb[145].mxu0  ;;  %v4355_v0 = vadd.f32 %v6498_v22, %v9448_v55 }
0x1128   :  { %v4347_v57 = vadd.f32 %v9448_v55, %v4346_v10  ;;  %v6499_v25 = vpop.f32.mrb[146].mxu0 }
0x1129   :  { %v4358_v23 = vadd.f32 %v6499_v25, %v9448_v55  ;;  %v4349_v58 = vpop.f32.mrb[147].mxu0  ;;  %6944 = vmatpush3.bf16.msra.mxu1 %v6943_v63  ;;  %v4391_v62 = vmul.f32 0.01, %v4355_v0  ;;  %vm4375_vm3 = vcmp.ge.f32.partialorder %v4355_v0, 0.0 }
0x112a   :  { %v4389_v60 = vmul.f32 0.01, %v4347_v57  ;;  %v4350_v49 = vadd.f32 %v9448_v55, %v4349_v58  ;;  %6945 = vmatprep.subr.bf16.mxu1 %v7343_v28  ;;  %vm4373_vm11 = vcmp.ge.f32.partialorder %v4347_v57, 0.0  ;;  %v4744_v58 = vld [vmem:[%s9699_s14] sm:$0xff] }
0x112b   :  { %v4392_v24 = vmul.f32 0.01, %v4358_v23  ;;  %vm4376_vm1 = vcmp.ge.f32.partialorder %v4358_v23, 0.0  ;;  %v4407_v55 = vsel %vm4375_vm3, %v4355_v0, %v4391_v62  ;;  %v4746_v0 = vld [vmem:[%s9699_s14 + $0x10] sm:$0xff] }
0x112c   :  { %vm4374_vm0 = vcmp.ge.f32.partialorder %v4350_v49, 0.0  ;;  %v4390_v1 = vmul.f32 0.01, %v4350_v49  ;;  %v4405_v48 = vsel %vm4373_vm11, %v4347_v57, %v4389_v60  ;;  %v4750_v62 = vld [vmem:[%s9699_s14 + $0x30] sm:$0xff] }
0x112d   :  { %6947 = vmatpush3.bf16.msra.mxu1 %v6946_v33  ;;  %v4408_v8 = vsel %vm4376_vm1, %v4358_v23, %v4392_v24  ;;  %v4748_v33 = vld [vmem:[%s9699_s14 + $0x20] sm:$0xff]  ;;  %v4749_v24 = vld [vmem:[%s9699_s14 + $0x28] sm:$0xff] }
0x112e   :  { %v4406_v15 = vsel %vm4374_vm0, %v4350_v49, %v4390_v1  ;;  %6948 = vmatprep.subr.bf16.mxu1 %v7343_v28  ;;  %v6952_v5 = vpack.c.bf16 %v4408_v8, %v4407_v55  ;;  %v7018_v1 = vpack.c.bf16 %v4749_v24, %v4748_v33 }
0x112f   :  { %v6949_v31 = vpack.c.bf16 %v4406_v15, %v4405_v48 }
0x1131   :  { %6950 = vmatpush3.bf16.msra.mxu1 %v6949_v31 }
0x1132   :  { %6951 = vmatprep.subr.bf16.mxu1 %v7343_v28 }
0x1135   :  { %6953 = vmatpush3.bf16.msra.mxu1 %v6952_v5 }
0x1138   :  { %6533 = vmatmul.mubr.msk.f32.vlgmr.msra.gmra.mrb[98].mxu1 %vm625_vm10, %v7345_v40 }
0x1139   :  { %6602 = vmatprep.mubr.msk.f32.mxu1 %vm4663_vm12, %v7345_v40 }
0x120b   :  { %v4477_v19 = vpop.f32.mrb[98].mxu1 }
0x120c   :  { %v4481_v36 = vmul.f32 0.015625, %v4477_v19  ;;  %v6534_v46 = vpop.f32.mrb[99].mxu1 }
0x120e   :  { %v4485_v27 = vrot.slane %v4481_v36, %v9806_v6  ;;  %v5325_v36 = vld [vmem:[%s9700_s12] ss:$0 sm:$0xff] }
0x1210   :  { %v9513_v20 = vsub.f32 %v9454_v13, %v4485_v27  ;;  %v9516_v14 = vsub.f32 %v9456_v44, %v4485_v27  ;;  %v9519_v45 = vsub.f32 %v9464_v42, %v4485_v27  ;;  %v9522_v9 = vsub.f32 %v9460_v29, %v4485_v27 }
0x1211   :  { %v9529_v43 = vsub.f32 %v9471_v39, %v4485_v27  ;;  %v9536_v54 = vsub.f32 %v9473_v11, %v4485_v27  ;;  %v9540_v29 = vsub.f32 %v9482_v37, %v4485_v27  ;;  %v9543_v34 = vsub.f32 %v9478_v50, %v4485_v27 }
0x1212   :  { %v4502_v52 = vmul.f32 %v9513_v20, %v9513_v20  ;;  %v4503_v3 = vmul.f32 %v9516_v14, %v9516_v14  ;;  %v4504_v44 = vmul.f32 %v9519_v45, %v9519_v45  ;;  %v4505_v42 = vmul.f32 %v9522_v9, %v9522_v9 }
0x1213   :  { %v4506_v41 = vmul.f32 %v9529_v43, %v9529_v43  ;;  %v4507_v18 = vmul.f32 %v9536_v54, %v9536_v54  ;;  %v4508_v11 = vmul.f32 %v9540_v29, %v9540_v29  ;;  %v4509_v4 = vmul.f32 %v9543_v34, %v9543_v34 }
0x1214   :  { %v6955_v13 = vpack.c.bf16 %v4503_v3, %v4502_v52  ;;  %v6958_v39 = vpack.c.bf16 %v4505_v42, %v4504_v44  ;;  %v9555_v50 = vsub.f32 %v9489_v26, %v4485_v27  ;;  %v9558_v16 = vsub.f32 %v9491_v2, %v4485_v27 }
0x1215   :  { %v6961_v53 = vpack.c.bf16 %v4507_v18, %v4506_v41  ;;  %v6964_v32 = vpack.c.bf16 %v4509_v4, %v4508_v11  ;;  %v9565_v51 = vsub.f32 %v4403_v12, %v4485_v27  ;;  %v9568_v7 = vsub.f32 %v9496_v47, %v4485_v27  ;;  %v4745_v12 = vld [vmem:[%s9699_s14 + $0x8] sm:$0xff] }
0x1216   :  { %6956 = vmatpush3.bf16.msra.mxu0 %v6955_v13  ;;  %v4510_v56 = vmul.f32 %v9555_v50, %v9555_v50  ;;  %v4511_v37 = vmul.f32 %v9558_v16, %v9558_v16  ;;  %v9571_v38 = vsub.f32 %v4405_v48, %v4485_v27  ;;  %v9577_v59 = vsub.f32 %v4406_v15, %v4485_v27  ;;  %v4751_v48 = vld [vmem:[%s9699_s14 + $0x38] sm:$0xff]  ;;  %v5326_v13 = vld [vmem:[%s9701_s13] ss:$0 sm:$0xff] }
0x1217   :  { %6957 = vmatprep.subr.bf16.mxu0 %v7343_v28  ;;  %v4512_v17 = vmul.f32 %v9565_v51, %v9565_v51  ;;  %v4513_v35 = vmul.f32 %v9568_v7, %v9568_v7  ;;  %v9580_v26 = vsub.f32 %v4407_v55, %v4485_v27  ;;  %v9586_v10 = vsub.f32 %v4408_v8, %v4485_v27 }
0x1218   :  { %v6967_v30 = vpack.c.bf16 %v4511_v37, %v4510_v56  ;;  %v4514_v22 = vmul.f32 %v9571_v38, %v9571_v38  ;;  %v4515_v63 = vmul.f32 %v9577_v59, %v9577_v59  ;;  %v7010_v60 = vpack.c.bf16 %v4745_v12, %v4744_v58 }
0x1219   :  { %v6970_v2 = vpack.c.bf16 %v4513_v35, %v4512_v17  ;;  %v4516_v57 = vmul.f32 %v9580_v26, %v9580_v26  ;;  %v4517_v25 = vmul.f32 %v9586_v10, %v9586_v10  ;;  %v7022_v15 = vpack.c.bf16 %v4751_v48, %v4750_v62 }
0x121a   :  { %6959 = vmatpush3.bf16.msra.mxu0 %v6958_v39  ;;  %v6973_v47 = vpack.c.bf16 %v4515_v63, %v4514_v22 }
0x121b   :  { %6960 = vmatprep.subr.bf16.mxu0 %v7343_v28  ;;  %v6976_v23 = vpack.c.bf16 %v4517_v25, %v4516_v57 }
0x121e   :  { %6962 = vmatpush3.bf16.msra.mxu0 %v6961_v53 }
0x121f   :  { %6963 = vmatprep.subr.bf16.mxu0 %v7343_v28 }
0x1222   :  { %6965 = vmatpush3.bf16.msra.mxu0 %v6964_v32 }
0x1223   :  { %6966 = vmatprep.subr.bf16.mxu0 %v7343_v28 }
0x1226   :  { %6968 = vmatpush3.bf16.msra.mxu0 %v6967_v30 }
0x1227   :  { %6969 = vmatprep.subr.bf16.mxu0 %v7343_v28 }
0x122a   :  { %6971 = vmatpush3.bf16.msra.mxu0 %v6970_v2 }
0x122b   :  { %6972 = vmatprep.subr.bf16.mxu0 %v7343_v28 }
0x122e   :  { %6974 = vmatpush3.bf16.msra.mxu0 %v6973_v47 }
0x122f   :  { %6975 = vmatprep.subr.bf16.mxu0 %v7343_v28  ;;  %v4747_v28 = vld [vmem:[%s9699_s14 + $0x18] sm:$0xff] }
0x1230   :  { %v7014_v49 = vpack.c.bf16 %v4747_v28, %v4746_v0 }
0x1232   :  { %6977 = vmatpush3.bf16.msra.mxu0 %v6976_v23 }
0x1233   :  { %7011 = vmatprep.subr.bf16.mxu0 %v7010_v60 }
0x1235   :  { %6568 = vmatmul.mubr.msk.f32.vlgmr.msra.gmra.mrb[130].mxu0 %vm625_vm10, %v7345_v40 }
0x1236   :  { %7013 = vmatpush3.bf16.msra.mxu0 %v7010_v60 }
0x1237   :  { %7015 = vmatprep.subr.bf16.mxu0 %v7014_v49 }
0x123a   :  { %7017 = vmatpush3.bf16.msra.mxu0 %v7014_v49 }
0x123b   :  { %7019 = vmatprep.subr.bf16.mxu0 %v7018_v1 }
0x123e   :  { %7021 = vmatpush3.bf16.msra.mxu0 %v7018_v1 }
0x123f   :  { %7023 = vmatprep.subr.bf16.mxu0 %v7022_v15 }
0x1242   :  { %7025 = vmatpush3.bf16.msra.mxu0 %v7022_v15 }
0x1308   :  { %v4584_v31 = vpop.f32.mrb[130].mxu0 }
0x1309   :  { %v4588_v8 = vmul.f32 0.015625, %v4584_v31  ;;  %v6569_v55 = vpop.f32.mrb[131].mxu0 }
0x130b   :  { %v4589_v5 = vadd.f32 1e-05, %v4588_v8 }
0x130d   :  { %7325 = vrsqrt.f32 %v4589_v5 }
0x1317   :  { %v7326_v21 = vpop.eup %7325 }
0x1318   :  { %v4594_v19 = vrot.slane %v7326_v21, %v9806_v6 }
0x131a   :  { %v4595_v46 = vmul.f32 %v4594_v19, %v9513_v20  ;;  %v4596_v27 = vmul.f32 %v4594_v19, %v9516_v14  ;;  %v4597_v52 = vmul.f32 %v4594_v19, %v9519_v45  ;;  %v4598_v3 = vmul.f32 %v4594_v19, %v9522_v9 }
0x131b   :  { %v4599_v44 = vmul.f32 %v4594_v19, %v9529_v43  ;;  %v4600_v6 = vmul.f32 %v4594_v19, %v9536_v54  ;;  %v4601_v14 = vmul.f32 %v4594_v19, %v9540_v29  ;;  %v4602_v45 = vmul.f32 %v4594_v19, %v9543_v34 }
0x131c   :  { %v4617_v42 = vmul.f32 %v5325_v36, %v4595_v46  ;;  %v4618_v39 = vmul.f32 %v5325_v36, %v4596_v27  ;;  %v4619_v41 = vmul.f32 %v5325_v36, %v4597_v52  ;;  %v4620_v18 = vmul.f32 %v5325_v36, %v4598_v3  ;;  %v5331_v52 = vld [vmem:[%s9703_s15] ss:$0 sm:$0xff] }
0x131d   :  { %v4621_v11 = vmul.f32 %v5325_v36, %v4599_v44  ;;  %v4622_v20 = vmul.f32 %v5325_v36, %v4600_v6  ;;  %v4623_v43 = vmul.f32 %v5325_v36, %v4601_v14  ;;  %v4624_v17 = vmul.f32 %v5325_v36, %v4602_v45  ;;  %v5334_v45 = vld [vmem:[%s9705_s17] ss:$0 sm:$0xff] }
0x131e   :  { %v4639_v4 = vadd.f32 %v5326_v13, %v4617_v42  ;;  %v4640_v9 = vadd.f32 %v5326_v13, %v4618_v39  ;;  %v4641_v53 = vadd.f32 %v5326_v13, %v4619_v41  ;;  %v4642_v32 = vadd.f32 %v5326_v13, %v4620_v18 }
0x131f   :  { %v4643_v37 = vadd.f32 %v5326_v13, %v4621_v11  ;;  %v4644_v30 = vadd.f32 %v5326_v13, %v4622_v20  ;;  %v4603_v35 = vmul.f32 %v4594_v19, %v9555_v50  ;;  %v4604_v2 = vmul.f32 %v4594_v19, %v9558_v16  ;;  %v4945_v11 = vld [vmem:[%s9704_s18] sm:$0xff]  ;;  %v4946_v20 = vld [vmem:[%s9704_s18 + $0x8] sm:$0xff] }
0x1320   :  { %v6978_v56 = vpack.c.bf16 %v4640_v9, %v4639_v4  ;;  %v6982_v54 = vpack.c.bf16 %v4642_v32, %v4641_v53  ;;  %v4645_v22 = vadd.f32 %v5326_v13, %v4623_v43  ;;  %v4646_v34 = vadd.f32 %v5326_v13, %v4624_v17  ;;  %v5337_v17 = vld [vmem:[%s9706_s19] ss:$0 sm:$0xff] }
0x1321   :  { %v6986_v29 = vpack.c.bf16 %v4644_v30, %v4643_v37  ;;  %v4625_v63 = vmul.f32 %v5325_v36, %v4603_v35  ;;  %v4626_v47 = vmul.f32 %v5325_v36, %v4604_v2  ;;  %v4605_v57 = vmul.f32 %v4594_v19, %v9565_v51 }
0x1322   :  { %6979 = vmatprep.subr.bf16.mxu1 %v6978_v56  ;;  %v4606_v25 = vmul.f32 %v4594_v19, %v9568_v7  ;;  %v6990_v23 = vpack.c.bf16 %v4646_v34, %v4645_v22  ;;  %v4607_v58 = vmul.f32 %v4594_v19, %v9571_v38  ;;  %v4608_v50 = vmul.f32 %v4594_v19, %v9577_v59 }
0x1323   :  { %6981 = vmatpush3.bf16.msra.mxu1 %v6978_v56  ;;  %v4647_v12 = vadd.f32 %v5326_v13, %v4625_v63  ;;  %v4648_v16 = vadd.f32 %v5326_v13, %v4626_v47  ;;  %v4627_v0 = vmul.f32 %v5325_v36, %v4605_v57  ;;  %v4609_v49 = vmul.f32 %v4594_v19, %v9580_v26 }
0x1324   :  { %6983 = vmatprep.subr.bf16.mxu1 %v6982_v54  ;;  %v4628_v60 = vmul.f32 %v5325_v36, %v4606_v25  ;;  %v4629_v28 = vmul.f32 %v5325_v36, %v4607_v58  ;;  %v4610_v51 = vmul.f32 %v4594_v19, %v9586_v10  ;;  %v4630_v1 = vmul.f32 %v5325_v36, %v4608_v50  ;;  %v4662_v10 = vpop.permute.xlu1 %4661  ;;  %v4846_v19 = vld [vmem:[%s9702_s16] sm:$0xff] }
0x1325   :  { %v6994_v33 = vpack.c.bf16 %v4648_v16, %v4647_v12  ;;  %v4649_v7 = vadd.f32 %v5326_v13, %v4627_v0  ;;  %v4631_v38 = vmul.f32 %v5325_v36, %v4609_v49  ;;  %vm4664_vm10 = vcmp.eq.s32.totalorder %v4662_v10, %v9805_v61  ;;  %v4848_v61 = vld [vmem:[%s9702_s16 + $0x10] sm:$0xff] }
0x1326   :  { %v4650_v24 = vadd.f32 %v5326_v13, %v4628_v60  ;;  %v4651_v59 = vadd.f32 %v5326_v13, %v4629_v28  ;;  %v4652_v48 = vadd.f32 %v5326_v13, %v4630_v1  ;;  %v4632_v15 = vmul.f32 %v5325_v36, %v4610_v51  ;;  %v4847_v36 = vld [vmem:[%s9702_s16 + $0x8] sm:$0xff] }
0x1327   :  { %6985 = vmatpush3.bf16.msra.mxu1 %v6982_v54  ;;  %v4653_v8 = vadd.f32 %v5326_v13, %v4631_v38  ;;  %v7026_v46 = vpack.c.bf16 %v4847_v36, %v4846_v19  ;;  %v7034_v14 = vpack.c.bf16 %v4946_v20, %v4945_v11 }
0x1328   :  { %6987 = vmatprep.subr.bf16.mxu1 %v6986_v29  ;;  %v6998_v62 = vpack.c.bf16 %v4650_v24, %v4649_v7  ;;  %v7002_v31 = vpack.c.bf16 %v4652_v48, %v4651_v59  ;;  %v4654_v55 = vadd.f32 %v5326_v13, %v4632_v15 }
0x1329   :  { %7027 = vmatprep.subr.bf16.mxu0 %v7026_v46 }
0x132a   :  { %v7006_v26 = vpack.c.bf16 %v4654_v55, %v4653_v8 }
0x132b   :  { %6989 = vmatpush3.bf16.msra.mxu1 %v6986_v29 }
0x132c   :  { %6991 = vmatprep.subr.bf16.mxu1 %v6990_v23 }
0x132f   :  { %6993 = vmatpush3.bf16.msra.mxu1 %v6990_v23 }
0x1330   :  { %6995 = vmatprep.subr.bf16.mxu1 %v6994_v33 }
0x1333   :  { %6997 = vmatpush3.bf16.msra.mxu1 %v6994_v33 }
0x1334   :  { %6999 = vmatprep.subr.bf16.mxu1 %v6998_v62 }
0x1337   :  { %7001 = vmatpush3.bf16.msra.mxu1 %v6998_v62 }
0x1338   :  { %7003 = vmatprep.subr.bf16.mxu1 %v7002_v31 }
0x133b   :  { %7005 = vmatpush3.bf16.msra.mxu1 %v7002_v31 }
0x133c   :  { %7007 = vmatprep.subr.bf16.mxu1 %v7006_v26 }
0x133f   :  { %7009 = vmatpush3.bf16.msra.mxu1 %v7006_v26 }
0x1340   :  { %7035 = vmatprep.subr.bf16.mxu1 %v7034_v14 }
0x1342   :  { %6603 = vmatmul.mubr.msk.f32.vlgmr.msra.gmra.mrb[100].mxu1 %vm4664_vm10, %v7345_v40  ;;  %v4849_v40 = vld [vmem:[%s9702_s16 + $0x18] sm:$0xff] }
0x1343   :  { %v7030_v27 = vpack.c.bf16 %v4849_v40, %v4848_v61  ;;  %7037 = vmatpush3.bf16.msra.mxu1 %v7034_v14 }
0x1415   :  { %v6604_v5 = vpop.f32.mrb[100].mxu1 }
0x1416   :  { %v4735_v21 = vpop.f32.mrb[101].mxu1 }
0x1417   :  { %6621 = vmatprep.mubr.msk.f32.mxu0 %vm1835_vm15, %v4735_v21 }
0x1418   :  { %6622 = vmatmul.mubr.msk.f32.vlgmr.msra.gmra.mrb[148].mxu0 %vm1835_vm15, %v6604_v5 }
0x1419   :  { %7029 = vmatpush3.bf16.msra.mxu0 %v7026_v46 }
0x141a   :  { %7031 = vmatprep.subr.bf16.mxu0 %v7030_v27 }
0x141d   :  { %7033 = vmatpush3.bf16.msra.mxu0 %v7030_v27 }
0x14eb   :  { %v6623_v3 = vpop.f32.mrb[148].mxu0 }
0x14ec   :  { %v4837_v13 = vadd.f32 %v6623_v3, %v5331_v52  ;;  %v4831_v44 = vpop.f32.mrb[149].mxu0 }
0x14ed   :  { %v4832_v6 = vadd.f32 %v5331_v52, %v4831_v44 }
0x14ee   :  { %v4843_v42 = vmul.f32 0.01, %v4837_v13  ;;  %vm4841_vm15 = vcmp.ge.f32.partialorder %v4837_v13, 0.0 }
0x14ef   :  { %vm4840_vm13 = vcmp.ge.f32.partialorder %v4832_v6, 0.0  ;;  %v4842_v39 = vmul.f32 0.01, %v4832_v6 }
0x14f0   :  { %v4845_v18 = vsel %vm4841_vm15, %v4837_v13, %v4843_v42 }
0x14f1   :  { %v4844_v41 = vsel %vm4840_vm13, %v4832_v6, %v4842_v39 }
0x14f2   :  { %6632 = vmatprep.mubr.msk.f32.mxu0 %vm4857_vm14, %v4844_v41 }
0x14f3   :  { %6633 = vmatmul.mubr.msk.f32.vlgmr.msra.gmra.mrb[150].mxu0 %vm4857_vm14, %v4845_v18 }
0x15c6   :  { %v6634_v4 = vpop.f32.mrb[150].mxu0 }
0x15c7   :  { %v4936_v9 = vadd.f32 %v6634_v4, %v5334_v45  ;;  %v4930_v53 = vpop.f32.mrb[151].mxu0 }
0x15c8   :  { %v4931_v32 = vadd.f32 %v5334_v45, %v4930_v53 }
0x15c9   :  { %v4942_v56 = vmul.f32 0.01, %v4936_v9  ;;  %vm4940_vm5 = vcmp.ge.f32.partialorder %v4936_v9, 0.0 }
0x15ca   :  { %vm4939_vm6 = vcmp.ge.f32.partialorder %v4931_v32, 0.0  ;;  %v4941_v37 = vmul.f32 0.01, %v4931_v32 }
0x15cb   :  { %v4944_v43 = vsel %vm4940_vm5, %v4936_v9, %v4942_v56 }
0x15cc   :  { %v4943_v30 = vsel %vm4939_vm6, %v4931_v32, %v4941_v37 }
0x15cd   :  { %6639 = vmatprep.mubr.msk.f32.mxu1 %vm4954_vm4, %v4943_v30 }
0x15ce   :  { %6640 = vmatmul.mubr.msk.f32.vlgmr.msra.gmra.mrb[102].mxu1 %vm4954_vm4, %v4944_v43 }
0x16a1   :  { %v6641_v54 = vpop.f32.mrb[102].mxu1 }
0x16a2   :  { %v5033_v35 = vadd.f32 %v6641_v54, %v5337_v17  ;;  %v5027_v2 = vpop.f32.mrb[103].mxu1 }
0x16a3   :  { %v5028_v29 = vadd.f32 %v5337_v17, %v5027_v2 }
0x16a4   :  { %5037 = vst [vmem:[%s9707_s20 + $0x8] sm:$0xff] %v5033_v35  ;;  %v5039_v22 = vsub.f32 0.0, %v5033_v35 }
0x16a5   :  { %5036 = vst [vmem:[%s9707_s20] sm:$0xff] %v5028_v29  ;;  %v5038_v34 = vsub.f32 0.0, %v5028_v29 }
0x16a6   :  { %v5042_v63 = vmul.f32 1.442695, %v5039_v22 }
0x16a7   :  { %v5040_v47 = vmul.f32 1.442695, %v5038_v34 }
0x16a8   :  { %7327 = vpow2.f32 %v5042_v63 }
0x16a9   :  { %7329 = vpow2.f32 %v5040_v47 }
0x16b2   :  { %v7328_v57 = vpop.eup %7327 }
0x16b3   :  { %v7330_v25 = vpop.eup %7329  ;;  %v5045_v23 = vadd.f32 1.0, %v7328_v57 }
0x16b4   :  { %v5044_v58 = vadd.f32 1.0, %v7330_v25 }
0x16b5   :  { %7331 = vrcp.f32 %v5045_v23 }
0x16b6   :  { %7333 = vrcp.f32 %v5044_v58 }
0x16bf   :  { %v7332_v50 = vpop.eup %7331 }
0x16c0   :  { %v7334_v12 = vpop.eup %7333  ;;  %5051 = vst [vmem:[%s9708_s21 + $0x8] sm:$0xff] %v7332_v50 }
0x16c1   :  { %5050 = vst [vmem:[%s9708_s21] sm:$0xff] %v7334_v12 }

</bundles_post_ra>
